<compile_context>
chip_gen: v7x
topology: tpu7x:2x2x1
jax: 0.10.0
libtpu: 0.0.40
codegen_flags: <defaults>
</compile_context>

<pallas_src>
import math
import functools

import jax
import jax.numpy as jnp
from jax.experimental import pallas as pl
from jax.experimental.pallas import tpu as pltpu


# --------------------------- in-kernel math helpers ---------------------------

_SQRT1_2 = 1.0 / math.sqrt(2.0)


def _erf_approx(x):
    """Abramowitz & Stegun 7.1.26 erf (max abs err ~1.5e-7); exp rides the EUP."""
    # TODO(synk): switch to lax.erf when Mosaic guarantees an erf lowering.
    a1, a2, a3, a4, a5 = (0.254829592, -0.284496736, 1.421413741,
                          -1.453152027, 1.061405429)
    p = 0.3275911
    sgn = jnp.where(x >= 0.0, 1.0, -1.0)
    ax = jnp.abs(x)
    t = 1.0 / (1.0 + p * ax)
    poly = ((((a5 * t + a4) * t + a3) * t + a2) * t + a1) * t
    return sgn * (1.0 - poly * jnp.exp(-ax * ax))


def _gelu_exact(x):
    return 0.5 * x * (1.0 + _erf_approx(x * _SQRT1_2))


def _layernorm(x, g, b, eps=1e-5):
    mu = jnp.mean(x, axis=-1, keepdims=True)
    xc = x - mu
    var = jnp.mean(xc * xc, axis=-1, keepdims=True)
    return xc * jax.lax.rsqrt(var + eps) * g + b


def _mm(a, w):
    """bf16 MXU operands, fp32 accumulation."""
    return jnp.dot(a.astype(jnp.bfloat16), w.astype(jnp.bfloat16),
                   preferred_element_type=jnp.float32)


# ------------- kernel 1: Conv1d embedding + bias + positional add -------------

def _embed_kernel(p_ref, w_ref, b_ref, pos_ref, o_ref):
    acc = jnp.dot(p_ref[0], w_ref[...], preferred_element_type=jnp.float32)
    o_ref[0] = (acc + b_ref[...] + pos_ref[...]).astype(o_ref.dtype)


def conv1d_embed(x, w, b, pos_emb, stride):
    """PyTorch Conv1d (NCL in) + bias + positional embedding -> (B, L, D)."""
    B, C, S = x.shape
    D, Cin, K = w.shape
    L = (S - K) // stride + 1
    # im2col gather kept in XLA glue (tiny); patch flattened (Cin, K)-major so it
    # matches PyTorch's w.reshape(D, Cin*K).
    idx = jnp.arange(L)[:, None] * stride + jnp.arange(K)[None, :]      # (L, K)
    patches = jnp.transpose(x[:, :, idx], (0, 2, 1, 3)).reshape(B, L, C * K)
    w2 = w.reshape(D, Cin * K).T                                        # (C*K, D)
    return pl.pallas_call(
        _embed_kernel,
        out_shape=jax.ShapeDtypeStruct((B, L, D), jnp.float32),
        grid=(B,),
        in_specs=[
            pl.BlockSpec((1, L, C * K), lambda i: (i, 0, 0)),
            pl.BlockSpec((C * K, D), lambda i: (0, 0)),
            pl.BlockSpec((1, D), lambda i: (0, 0)),
            pl.BlockSpec((L, D), lambda i: (0, 0)),
        ],
        out_specs=pl.BlockSpec((1, L, D), lambda i: (i, 0, 0)),
        compiler_params=pltpu.CompilerParams(dimension_semantics=("parallel",)),
    )(patches, w2, b.reshape(1, D), pos_emb)


# ---------- kernel 2: fully fused pre-norm TransformerEncoderLayer ----------

def _encoder_layer_kernel(x_ref,
                          ln1_g_ref, ln1_b_ref, qkv_w_ref, qkv_b_ref,
                          out_w_ref, out_b_ref,
                          ln2_g_ref, ln2_b_ref, ff1_w_ref, ff1_b_ref,
                          ff2_w_ref, ff2_b_ref,
                          o_ref, *, nhead, scale):
    x = x_ref[0]                                            # (L, D) fp32
    D = x.shape[-1]
    hd = D // nhead

    # ---- self-attention block: x = x + out_proj(MHA(LN1(x))) ----
    h = _layernorm(x, ln1_g_ref[...], ln1_b_ref[...])
    attn = out_b_ref[...]                                   # (1, D), broadcasts
    for i in range(nhead):
        qo, ko, vo = i * hd, D + i * hd, 2 * D + i * hd
        q = _mm(h, qkv_w_ref[:, qo:qo + hd]) + qkv_b_ref[:, qo:qo + hd]
        k = _mm(h, qkv_w_ref[:, ko:ko + hd]) + qkv_b_ref[:, ko:ko + hd]
        v = _mm(h, qkv_w_ref[:, vo:vo + hd]) + qkv_b_ref[:, vo:vo + hd]
        # scores = q @ k^T (contract last dims, no explicit transpose)
        s = jax.lax.dot_general(
            q.astype(jnp.bfloat16), k.astype(jnp.bfloat16),
            (((1,), (1,)), ((), ())),
            preferred_element_type=jnp.float32) * scale      # (L, L)
        s = s - jnp.max(s, axis=-1, keepdims=True)
        p = jnp.exp(s)
        p = p * pl.reciprocal(jnp.sum(p, axis=-1, keepdims=True), approx=True)
        o_h = _mm(p, v)                                      # (L, hd)
        # out_proj applied per head on its weight slice and accumulated ==
        # out_proj(concat_h(o_h)); avoids in-kernel concatenation.
        attn = attn + _mm(o_h, out_w_ref[i * hd:(i + 1) * hd, :])
    x = x + attn

    # ---- feed-forward block: x = x + FF2(GELU(FF1(LN2(x)))) ----
    h = _layernorm(x, ln2_g_ref[...], ln2_b_ref[...])
    h = _gelu_exact(_mm(h, ff1_w_ref[...]) + ff1_b_ref[...])
    x = x + _mm(h, ff2_w_ref[...]) + ff2_b_ref[...]

    o_ref[0] = x.astype(o_ref.dtype)


def encoder_layer(x, p, nhead):
    """One fused pre-norm TransformerEncoderLayer. x: (B, L, D)."""
    B, L, D = x.shape
    assert D % nhead == 0
    scale = 1.0 / math.sqrt(D // nhead)
    kern = functools.partial(_encoder_layer_kernel, nhead=nhead, scale=scale)
    row = lambda a: a.reshape(1, -1)

    def rep(shape):                       # weight block, same for every grid step
        n = len(shape)
        return pl.BlockSpec(shape, lambda b: (0,) * n)

    return pl.pallas_call(
        kern,
        out_shape=jax.ShapeDtypeStruct((B, L, D), jnp.float32),
        grid=(B,),
        in_specs=[
            pl.BlockSpec((1, L, D), lambda b: (b, 0, 0)),
            rep((1, D)), rep((1, D)),                 # ln1 gamma / beta
            rep((D, 3 * D)), rep((1, 3 * D)),         # qkv in-proj
            rep((D, D)), rep((1, D)),                 # attention out-proj
            rep((1, D)), rep((1, D)),                 # ln2 gamma / beta
            rep((D, 4 * D)), rep((1, 4 * D)),         # ff1
            rep((4 * D, D)), rep((1, D)),             # ff2
        ],
        out_specs=pl.BlockSpec((1, L, D), lambda b: (b, 0, 0)),
        compiler_params=pltpu.CompilerParams(dimension_semantics=("parallel",)),
    )(x,
      row(p["ln1_g"]), row(p["ln1_b"]), p["qkv_w"], row(p["qkv_b"]),
      p["out_w"], row(p["out_b"]),
      row(p["ln2_g"]), row(p["ln2_b"]), p["ff1_w"], row(p["ff1_b"]),
      p["ff2_w"], row(p["ff2_b"]))


# -------------- kernel 3: conv2 + flatten + proj_out (composed) --------------

def _head_kernel(x_ref, w_ref, b_ref, o_ref):
    acc = jnp.dot(x_ref[...], w_ref[...], preferred_element_type=jnp.float32)
    o_ref[...] = (acc + b_ref[...]).astype(o_ref.dtype)


def conv2_proj_head(h, conv2_w, conv2_b, proj_w, proj_b, stride):
    """conv2 (dim->1, k, stride) then Linear(proj_in -> classes), as ONE matmul.

    Both ops are linear in h, so their weights are composed once (tiny outer
    product in XLA glue) and applied in a single Pallas matmul+bias kernel.
    """
    B, L, D = h.shape
    _, _, K = conv2_w.shape
    L2 = (L - K) // stride + 1
    NC = proj_w.shape[1]
    # im2col on the (B, L, D) activations; patch flattened (D, K)-major to match
    # conv2_w.reshape(D*K).
    idx = jnp.arange(L2)[:, None] * stride + jnp.arange(K)[None, :]     # (L2, K)
    g = jnp.transpose(h[:, idx, :], (0, 1, 3, 2)).reshape(B, L2 * D * K)
    w2 = conv2_w.reshape(D * K)
    w_comb = (proj_w[:, None, :] * w2[None, :, None]).reshape(L2 * D * K, NC)
    b_comb = conv2_b[0] * jnp.sum(proj_w, axis=0) + proj_b               # (NC,)
    return pl.pallas_call(
        _head_kernel,
        out_shape=jax.ShapeDtypeStruct((B, NC), jnp.float32),
        grid=(1,),
        in_specs=[
            pl.BlockSpec((B, L2 * D * K), lambda i: (0, 0)),
            pl.BlockSpec((L2 * D * K, NC), lambda i: (0, 0)),
            pl.BlockSpec((1, NC), lambda i: (0, 0)),
        ],
        out_specs=pl.BlockSpec((B, NC), lambda i: (0, 0)),
    )(g, w_comb, b_comb.reshape(1, NC))


# -------------------------------- model glue --------------------------------

def sinusoidal_pos_emb(positions, dim, M=10000):
    """positions: (1, L) int -> (1, L, dim) float32 (sin | cos)."""
    half = dim // 2
    freq = jnp.exp(jnp.arange(half, dtype=jnp.float32) * (-math.log(M) / half))
    emb = positions[..., None].astype(jnp.float32) * freq[None, None, :]
    return jnp.concatenate([jnp.sin(emb), jnp.cos(emb)], axis=-1)


def transformer_model_forward(params, x, *, seq_len, stride, downsample_factor,
                              dim, nhead):
    L1 = seq_len // (stride * downsample_factor)
    pos = jnp.arange(L1)[None, :]
    pos_emb = sinusoidal_pos_emb(pos, dim)[0]                 # (L1, dim)
    h = conv1d_embed(x, params["emb_w"], params["emb_b"], pos_emb, stride)
    for lyr in params["layers"]:
        h = encoder_layer(h, lyr, nhead)                      # (B, L1, dim)
    return conv2_proj_head(h, params["conv2_w"], params["conv2_b"],
                           params["proj_w"], params["proj_b"], stride)


# -------------------------------- params init --------------------------------

def init_params(key, num_channels, dim, depth, k_size, num_classes, proj_in):
    keys = iter(jax.random.split(key, 8 + 12 * depth))

    def nrm(shape, scale=0.02):
        return jax.random.normal(next(keys), shape, jnp.float32) * scale

    params = {
        "emb_w": nrm((dim, num_channels, k_size)),   # PyTorch conv layout (out,in,k)
        "emb_b": nrm((dim,)),
        "conv2_w": nrm((1, dim, k_size)),
        "conv2_b": nrm((1,)),
        "proj_w": nrm((proj_in, num_classes)),       # stored (in, out)
        "proj_b": nrm((num_classes,)),
        "layers": [],
    }
    for _ in range(depth):
        params["layers"].append(dict(
            ln1_g=jnp.ones((dim,), jnp.float32), ln1_b=jnp.zeros((dim,), jnp.float32),
            qkv_w=nrm((dim, 3 * dim)), qkv_b=nrm((3 * dim,)),
            out_w=nrm((dim, dim)), out_b=nrm((dim,)),
            ln2_g=jnp.ones((dim,), jnp.float32), ln2_b=jnp.zeros((dim,), jnp.float32),
            ff1_w=nrm((dim, 4 * dim)), ff1_b=nrm((4 * dim,)),
            ff2_w=nrm((4 * dim, dim)), ff2_b=nrm((dim,)),
        ))
    return params


# ----------------------------------- main ------------------------------------

if __name__ == "__main__":
    # small config consistent with the module defaults' structure
    B, C, S = 2, 4, 200                 # batch, num_channels, seq_len
    dim, depth, head_size = 64, 2, 32   # d_model, encoder depth, head size
    k_size, stride, num_classes = 5, 5, 3
    downsample_factor = 1
    nhead = dim // head_size
    proj_in = S // (stride * stride * downsample_factor)      # = 8

    key = jax.random.PRNGKey(0)
    pkey, xkey = jax.random.split(key)
    params = init_params(pkey, C, dim, depth, k_size, num_classes, proj_in)
    x = jax.random.normal(xkey, (B, C, S), jnp.float32)

    fwd = jax.jit(functools.partial(
        transformer_model_forward,
        seq_len=S, stride=stride, downsample_factor=downsample_factor,
        dim=dim, nhead=nhead))

    out = fwd(params, x)
    jax.block_until_ready(out)
    assert out.shape == (B, num_classes), out.shape
    assert bool(jnp.all(jnp.isfinite(out)))
    print("KERNEL_OK")
</pallas_src>

<mosaic_0001>
module attributes {stable_mosaic.version = 11 : i64} {
  func.func @_embed_kernel(%arg0: i32, %arg1: memref<1x40x20xf32, #tpu.memory_space<vmem>>, %arg2: memref<20x64xf32, #tpu.memory_space<vmem>>, %arg3: memref<1x64xf32, #tpu.memory_space<vmem>>, %arg4: memref<40x64xf32, #tpu.memory_space<vmem>>, %arg5: memref<1x40x64xf32, #tpu.memory_space<vmem>>) attributes {dimension_semantics = [#tpu.dimension_semantics<parallel>], iteration_bounds = array<i64: 2>, scalar_prefetch = 0 : i64, scratch_operands = 0 : i64, tpu.core_type = #tpu.core_type<tc>, window_params = [{transform_indices = @transform_0, window_bounds = array<i64: 1, 40, 20>}, {pipeline_mode = #tpu.pipeline_mode<synchronous>, transform_indices = @transform_1, window_bounds = array<i64: 20, 64>}, {pipeline_mode = #tpu.pipeline_mode<synchronous>, transform_indices = @transform_2, window_bounds = array<i64: 1, 64>}, {pipeline_mode = #tpu.pipeline_mode<synchronous>, transform_indices = @transform_3, window_bounds = array<i64: 40, 64>}, {transform_indices = @transform_4, window_bounds = array<i64: 1, 40, 64>}]} {
    %c0 = arith.constant 0 : index
    %c0_0 = arith.constant 0 : index
    %c0_1 = arith.constant 0 : index
    %0 = vector.load %arg1[%c0, %c0_0, %c0_1] : memref<1x40x20xf32, #tpu.memory_space<vmem>>, vector<1x40x20xf32>
    %1 = vector.shape_cast %0 : vector<1x40x20xf32> to vector<40x20xf32>
    %c0_2 = arith.constant 0 : index
    %c0_3 = arith.constant 0 : index
    %2 = vector.load %arg2[%c0_2, %c0_3] : memref<20x64xf32, #tpu.memory_space<vmem>>, vector<20x64xf32>
    %cst = arith.constant dense<0.000000e+00> : vector<40x64xf32>
    %3 = tpu.matmul %1, %2, %cst {dimension_numbers = #tpu.dot_dimension_numbers<[1], [0], [0], [1], [0, 0, 1, 1], [], []>} : vector<40x20xf32>, vector<20x64xf32>, vector<40x64xf32> -> vector<40x64xf32>
    %c0_4 = arith.constant 0 : index
    %c0_5 = arith.constant 0 : index
    %4 = vector.load %arg3[%c0_4, %c0_5] : memref<1x64xf32, #tpu.memory_space<vmem>>, vector<1x64xf32>
    %5 = vector.broadcast %4 : vector<1x64xf32> to vector<40x64xf32>
    %6 = arith.addf %3, %5 : vector<40x64xf32>
    %c0_6 = arith.constant 0 : index
    %c0_7 = arith.constant 0 : index
    %7 = vector.load %arg4[%c0_6, %c0_7] : memref<40x64xf32, #tpu.memory_space<vmem>>, vector<40x64xf32>
    %8 = arith.addf %6, %7 : vector<40x64xf32>
    %c0_8 = arith.constant 0 : index
    %c0_9 = arith.constant 0 : index
    %c0_10 = arith.constant 0 : index
    %9 = vector.load %arg5[%c0_8, %c0_9, %c0_10] : memref<1x40x64xf32, #tpu.memory_space<vmem>>, vector<1x40x64xf32>
    %10 = vector.shape_cast %9 : vector<1x40x64xf32> to vector<40x64xf32>
    %11 = vector.shape_cast %8 : vector<40x64xf32> to vector<1x40x64xf32>
    tpu.vector_store %arg5[%c0_8, %c0_9, %c0_10], %11 {strides = array<i32>} : memref<1x40x64xf32, #tpu.memory_space<vmem>>, vector<1x40x64xf32>,
    return
  }
  func.func @transform_0(%arg0: i32) -> (i32, i32, i32) {
    %c0_i32 = arith.constant 0 : i32
    %c0_i32_0 = arith.constant 0 : i32
    %c0_i32_1 = arith.constant 0 : i32
    return %arg0, %c0_i32, %c0_i32_0 : i32, i32, i32
  }
  func.func @transform_1(%arg0: i32) -> (i32, i32) {
    %c0_i32 = arith.constant 0 : i32
    %c0_i32_0 = arith.constant 0 : i32
    %c0_i32_1 = arith.constant 0 : i32
    return %c0_i32, %c0_i32_0 : i32, i32
  }
  func.func @transform_2(%arg0: i32) -> (i32, i32) {
    %c0_i32 = arith.constant 0 : i32
    %c0_i32_0 = arith.constant 0 : i32
    %c0_i32_1 = arith.constant 0 : i32
    return %c0_i32, %c0_i32_0 : i32, i32
  }
  func.func @transform_3(%arg0: i32) -> (i32, i32) {
    %c0_i32 = arith.constant 0 : i32
    %c0_i32_0 = arith.constant 0 : i32
    %c0_i32_1 = arith.constant 0 : i32
    return %c0_i32, %c0_i32_0 : i32, i32
  }
  func.func @transform_4(%arg0: i32) -> (i32, i32, i32) {
    %c0_i32 = arith.constant 0 : i32
    %c0_i32_0 = arith.constant 0 : i32
    %c0_i32_1 = arith.constant 0 : i32
    return %arg0, %c0_i32, %c0_i32_0 : i32, i32, i32
  }
}

module attributes {stable_mosaic.version = 11 : i64} {
  func.func @_encoder_layer_kernel(%arg0: i32, %arg1: memref<1x40x64xf32, #tpu.memory_space<vmem>>, %arg2: memref<1x64xf32, #tpu.memory_space<vmem>>, %arg3: memref<1x64xf32, #tpu.memory_space<vmem>>, %arg4: memref<64x192xf32, #tpu.memory_space<vmem>>, %arg5: memref<1x192xf32, #tpu.memory_space<vmem>>, %arg6: memref<64x64xf32, #tpu.memory_space<vmem>>, %arg7: memref<1x64xf32, #tpu.memory_space<vmem>>, %arg8: memref<1x64xf32, #tpu.memory_space<vmem>>, %arg9: memref<1x64xf32, #tpu.memory_space<vmem>>, %arg10: memref<64x256xf32, #tpu.memory_space<vmem>>, %arg11: memref<1x256xf32, #tpu.memory_space<vmem>>, %arg12: memref<256x64xf32, #tpu.memory_space<vmem>>, %arg13: memref<1x64xf32, #tpu.memory_space<vmem>>, %arg14: memref<1x40x64xf32, #tpu.memory_space<vmem>>) attributes {dimension_semantics = [#tpu.dimension_semantics<parallel>], iteration_bounds = array<i64: 2>, scalar_prefetch = 0 : i64, scratch_operands = 0 : i64, tpu.core_type = #tpu.core_type<tc>, window_params = [{transform_indices = @transform_0, window_bounds = array<i64: 1, 40, 64>}, {pipeline_mode = #tpu.pipeline_mode<synchronous>, transform_indices = @transform_1, window_bounds = array<i64: 1, 64>}, {pipeline_mode = #tpu.pipeline_mode<synchronous>, transform_indices = @transform_2, window_bounds = array<i64: 1, 64>}, {pipeline_mode = #tpu.pipeline_mode<synchronous>, transform_indices = @transform_3, window_bounds = array<i64: 64, 192>}, {pipeline_mode = #tpu.pipeline_mode<synchronous>, transform_indices = @transform_4, window_bounds = array<i64: 1, 192>}, {pipeline_mode = #tpu.pipeline_mode<synchronous>, transform_indices = @transform_5, window_bounds = array<i64: 64, 64>}, {pipeline_mode = #tpu.pipeline_mode<synchronous>, transform_indices = @transform_6, window_bounds = array<i64: 1, 64>}, {pipeline_mode = #tpu.pipeline_mode<synchronous>, transform_indices = @transform_7, window_bounds = array<i64: 1, 64>}, {pipeline_mode = #tpu.pipeline_mode<synchronous>, transform_indices = @transform_8, window_bounds = array<i64: 1, 64>}, {pipeline_mode = #tpu.pipeline_mode<synchronous>, transform_indices = @transform_9, window_bounds = array<i64: 64, 256>}, {pipeline_mode = #tpu.pipeline_mode<synchronous>, transform_indices = @transform_10, window_bounds = array<i64: 1, 256>}, {pipeline_mode = #tpu.pipeline_mode<synchronous>, transform_indices = @transform_11, window_bounds = array<i64: 256, 64>}, {pipeline_mode = #tpu.pipeline_mode<synchronous>, transform_indices = @transform_12, window_bounds = array<i64: 1, 64>}, {transform_indices = @transform_13, window_bounds = array<i64: 1, 40, 64>}]} {
    %c0 = arith.constant 0 : index
    %c0_0 = arith.constant 0 : index
    %c0_1 = arith.constant 0 : index
    %0 = vector.load %arg1[%c0, %c0_0, %c0_1] : memref<1x40x64xf32, #tpu.memory_space<vmem>>, vector<1x40x64xf32>
    %1 = vector.shape_cast %0 : vector<1x40x64xf32> to vector<40x64xf32>
    %c0_2 = arith.constant 0 : index
    %c0_3 = arith.constant 0 : index
    %2 = vector.load %arg2[%c0_2, %c0_3] : memref<1x64xf32, #tpu.memory_space<vmem>>, vector<1x64xf32>
    %c0_4 = arith.constant 0 : index
    %c0_5 = arith.constant 0 : index
    %3 = vector.load %arg3[%c0_4, %c0_5] : memref<1x64xf32, #tpu.memory_space<vmem>>, vector<1x64xf32>
    %cst = arith.constant dense<0.000000e+00> : vector<40xf32>
    %4 = vector.multi_reduction <add>, %1, %cst [1] : vector<40x64xf32> to vector<40xf32>
    %5 = vector.shape_cast %4 : vector<40xf32> to vector<40x1xf32>
    %cst_6 = arith.constant 6.400000e+01 : f32
    %6 = vector.broadcast %cst_6 : f32 to vector<40x1xf32>
    %7 = arith.divf %5, %6 : vector<40x1xf32>
    %8 = vector.broadcast %7 : vector<40x1xf32> to vector<40x64xf32>
    %9 = arith.subf %1, %8 : vector<40x64xf32>
    %10 = arith.mulf %9, %9 : vector<40x64xf32>
    %cst_7 = arith.constant dense<0.000000e+00> : vector<40xf32>
    %11 = vector.multi_reduction <add>, %10, %cst_7 [1] : vector<40x64xf32> to vector<40xf32>
    %12 = vector.shape_cast %11 : vector<40xf32> to vector<40x1xf32>
    %cst_8 = arith.constant 6.400000e+01 : f32
    %13 = vector.broadcast %cst_8 : f32 to vector<40x1xf32>
    %14 = arith.divf %12, %13 : vector<40x1xf32>
    %cst_9 = arith.constant 9.99999974E-6 : f32
    %15 = vector.broadcast %cst_9 : f32 to vector<40x1xf32>
    %16 = arith.addf %14, %15 : vector<40x1xf32>
    %17 = math.rsqrt %16 : vector<40x1xf32>
    %18 = vector.broadcast %17 : vector<40x1xf32> to vector<40x64xf32>
    %19 = arith.mulf %9, %18 : vector<40x64xf32>
    %20 = vector.broadcast %2 : vector<1x64xf32> to vector<40x64xf32>
    %21 = arith.mulf %19, %20 : vector<40x64xf32>
    %22 = vector.broadcast %3 : vector<1x64xf32> to vector<40x64xf32>
    %23 = arith.addf %21, %22 : vector<40x64xf32>
    %c0_10 = arith.constant 0 : index
    %c0_11 = arith.constant 0 : index
    %24 = vector.load %arg7[%c0_10, %c0_11] : memref<1x64xf32, #tpu.memory_space<vmem>>, vector<1x64xf32>
    %c0_12 = arith.constant 0 : index
    %c0_13 = arith.constant 0 : index
    %25 = vector.load %arg4[%c0_12, %c0_13] : memref<64x192xf32, #tpu.memory_space<vmem>>, vector<64x32xf32>
    %26 = arith.truncf %23 : vector<40x64xf32> to vector<40x64xbf16>
    %27 = arith.truncf %25 : vector<64x32xf32> to vector<64x32xbf16>
    %cst_14 = arith.constant dense<0.000000e+00> : vector<40x32xf32>
    %28 = tpu.matmul %26, %27, %cst_14 {dimension_numbers = #tpu.dot_dimension_numbers<[1], [0], [0], [1], [0, 0, 1, 1], [], []>} : vector<40x64xbf16>, vector<64x32xbf16>, vector<40x32xf32> -> vector<40x32xf32>
    %c0_15 = arith.constant 0 : index
    %c0_16 = arith.constant 0 : index
    %29 = vector.load %arg5[%c0_15, %c0_16] : memref<1x192xf32, #tpu.memory_space<vmem>>, vector<1x32xf32>
    %30 = vector.broadcast %29 : vector<1x32xf32> to vector<40x32xf32>
    %31 = arith.addf %28, %30 : vector<40x32xf32>
    %c0_17 = arith.constant 0 : index
    %c64 = arith.constant 64 : index
    %32 = vector.load %arg4[%c0_17, %c64] : memref<64x192xf32, #tpu.memory_space<vmem>>, vector<64x32xf32>
    %33 = arith.truncf %23 : vector<40x64xf32> to vector<40x64xbf16>
    %34 = arith.truncf %32 : vector<64x32xf32> to vector<64x32xbf16>
    %cst_18 = arith.constant dense<0.000000e+00> : vector<40x32xf32>
    %35 = tpu.matmul %33, %34, %cst_18 {dimension_numbers = #tpu.dot_dimension_numbers<[1], [0], [0], [1], [0, 0, 1, 1], [], []>} : vector<40x64xbf16>, vector<64x32xbf16>, vector<40x32xf32> -> vector<40x32xf32>
    %c0_19 = arith.constant 0 : index
    %c64_20 = arith.constant 64 : index
    %36 = vector.load %arg5[%c0_19, %c64_20] : memref<1x192xf32, #tpu.memory_space<vmem>>, vector<1x32xf32>
    %37 = vector.broadcast %36 : vector<1x32xf32> to vector<40x32xf32>
    %38 = arith.addf %35, %37 : vector<40x32xf32>
    %c0_21 = arith.constant 0 : index
    %c128 = arith.constant 128 : index
    %39 = vector.load %arg4[%c0_21, %c128] : memref<64x192xf32, #tpu.memory_space<vmem>>, vector<64x32xf32>
    %40 = arith.truncf %23 : vector<40x64xf32> to vector<40x64xbf16>
    %41 = arith.truncf %39 : vector<64x32xf32> to vector<64x32xbf16>
    %cst_22 = arith.constant dense<0.000000e+00> : vector<40x32xf32>
    %42 = tpu.matmul %40, %41, %cst_22 {dimension_numbers = #tpu.dot_dimension_numbers<[1], [0], [0], [1], [0, 0, 1, 1], [], []>} : vector<40x64xbf16>, vector<64x32xbf16>, vector<40x32xf32> -> vector<40x32xf32>
    %c0_23 = arith.constant 0 : index
    %c128_24 = arith.constant 128 : index
    %43 = vector.load %arg5[%c0_23, %c128_24] : memref<1x192xf32, #tpu.memory_space<vmem>>, vector<1x32xf32>
    %44 = vector.broadcast %43 : vector<1x32xf32> to vector<40x32xf32>
    %45 = arith.addf %42, %44 : vector<40x32xf32>
    %46 = arith.truncf %31 : vector<40x32xf32> to vector<40x32xbf16>
    %47 = arith.truncf %38 : vector<40x32xf32> to vector<40x32xbf16>
    %cst_25 = arith.constant dense<0.000000e+00> : vector<40x40xf32>
    %48 = tpu.matmul %46, %47, %cst_25 {dimension_numbers = #tpu.dot_dimension_numbers<[1], [1], [0], [0], [0, 0, 1, 0], [], []>} : vector<40x32xbf16>, vector<40x32xbf16>, vector<40x40xf32> -> vector<40x40xf32>
    %cst_26 = arith.constant 0.176776692 : f32
    %49 = vector.broadcast %cst_26 : f32 to vector<40x40xf32>
    %50 = arith.mulf %48, %49 : vector<40x40xf32>
    %cst_27 = arith.constant dense<0xFF800000> : vector<40xf32>
    %51 = vector.multi_reduction <maximumf>, %50, %cst_27 [1] : vector<40x40xf32> to vector<40xf32>
    %52 = vector.shape_cast %51 : vector<40xf32> to vector<40x1xf32>
    %53 = vector.broadcast %52 : vector<40x1xf32> to vector<40x40xf32>
    %54 = arith.subf %50, %53 : vector<40x40xf32>
    %55 = math.exp %54 : vector<40x40xf32>
    %cst_28 = arith.constant dense<0.000000e+00> : vector<40xf32>
    %56 = vector.multi_reduction <add>, %55, %cst_28 [1] : vector<40x40xf32> to vector<40xf32>
    %57 = vector.shape_cast %56 : vector<40xf32> to vector<40x1xf32>
    %58 = tpu.reciprocal %57 {approx = true} : vector<40x1xf32> -> vector<40x1xf32>
    %59 = vector.broadcast %58 : vector<40x1xf32> to vector<40x40xf32>
    %60 = arith.mulf %55, %59 : vector<40x40xf32>
    %61 = arith.truncf %60 : vector<40x40xf32> to vector<40x40xbf16>
    %62 = arith.truncf %45 : vector<40x32xf32> to vector<40x32xbf16>
    %cst_29 = arith.constant dense<0.000000e+00> : vector<40x32xf32>
    %63 = tpu.matmul %61, %62, %cst_29 {dimension_numbers = #tpu.dot_dimension_numbers<[1], [0], [0], [1], [0, 0, 1, 1], [], []>} : vector<40x40xbf16>, vector<40x32xbf16>, vector<40x32xf32> -> vector<40x32xf32>
    %c0_30 = arith.constant 0 : index
    %c0_31 = arith.constant 0 : index
    %64 = vector.load %arg6[%c0_30, %c0_31] : memref<64x64xf32, #tpu.memory_space<vmem>>, vector<32x64xf32>
    %65 = arith.truncf %63 : vector<40x32xf32> to vector<40x32xbf16>
    %66 = arith.truncf %64 : vector<32x64xf32> to vector<32x64xbf16>
    %cst_32 = arith.constant dense<0.000000e+00> : vector<40x64xf32>
    %67 = tpu.matmul %65, %66, %cst_32 {dimension_numbers = #tpu.dot_dimension_numbers<[1], [0], [0], [1], [0, 0, 1, 1], [], []>} : vector<40x32xbf16>, vector<32x64xbf16>, vector<40x64xf32> -> vector<40x64xf32>
    %68 = vector.broadcast %24 : vector<1x64xf32> to vector<40x64xf32>
    %69 = arith.addf %68, %67 : vector<40x64xf32>
    %c0_33 = arith.constant 0 : index
    %c32 = arith.constant 32 : index
    %70 = vector.load %arg4[%c0_33, %c32] : memref<64x192xf32, #tpu.memory_space<vmem>>, vector<64x32xf32>
    %71 = arith.truncf %23 : vector<40x64xf32> to vector<40x64xbf16>
    %72 = arith.truncf %70 : vector<64x32xf32> to vector<64x32xbf16>
    %cst_34 = arith.constant dense<0.000000e+00> : vector<40x32xf32>
    %73 = tpu.matmul %71, %72, %cst_34 {dimension_numbers = #tpu.dot_dimension_numbers<[1], [0], [0], [1], [0, 0, 1, 1], [], []>} : vector<40x64xbf16>, vector<64x32xbf16>, vector<40x32xf32> -> vector<40x32xf32>
    %c0_35 = arith.constant 0 : index
    %c32_36 = arith.constant 32 : index
    %74 = vector.load %arg5[%c0_35, %c32_36] : memref<1x192xf32, #tpu.memory_space<vmem>>, vector<1x32xf32>
    %75 = vector.broadcast %74 : vector<1x32xf32> to vector<40x32xf32>
    %76 = arith.addf %73, %75 : vector<40x32xf32>
    %c0_37 = arith.constant 0 : index
    %c96 = arith.constant 96 : index
    %77 = vector.load %arg4[%c0_37, %c96] : memref<64x192xf32, #tpu.memory_space<vmem>>, vector<64x32xf32>
    %78 = arith.truncf %23 : vector<40x64xf32> to vector<40x64xbf16>
    %79 = arith.truncf %77 : vector<64x32xf32> to vector<64x32xbf16>
    %cst_38 = arith.constant dense<0.000000e+00> : vector<40x32xf32>
    %80 = tpu.matmul %78, %79, %cst_38 {dimension_numbers = #tpu.dot_dimension_numbers<[1], [0], [0], [1], [0, 0, 1, 1], [], []>} : vector<40x64xbf16>, vector<64x32xbf16>, vector<40x32xf32> -> vector<40x32xf32>
    %c0_39 = arith.constant 0 : index
    %c96_40 = arith.constant 96 : index
    %81 = vector.load %arg5[%c0_39, %c96_40] : memref<1x192xf32, #tpu.memory_space<vmem>>, vector<1x32xf32>
    %82 = vector.broadcast %81 : vector<1x32xf32> to vector<40x32xf32>
    %83 = arith.addf %80, %82 : vector<40x32xf32>
    %c0_41 = arith.constant 0 : index
    %c160 = arith.constant 160 : index
    %84 = vector.load %arg4[%c0_41, %c160] : memref<64x192xf32, #tpu.memory_space<vmem>>, vector<64x32xf32>
    %85 = arith.truncf %23 : vector<40x64xf32> to vector<40x64xbf16>
    %86 = arith.truncf %84 : vector<64x32xf32> to vector<64x32xbf16>
    %cst_42 = arith.constant dense<0.000000e+00> : vector<40x32xf32>
    %87 = tpu.matmul %85, %86, %cst_42 {dimension_numbers = #tpu.dot_dimension_numbers<[1], [0], [0], [1], [0, 0, 1, 1], [], []>} : vector<40x64xbf16>, vector<64x32xbf16>, vector<40x32xf32> -> vector<40x32xf32>
    %c0_43 = arith.constant 0 : index
    %c160_44 = arith.constant 160 : index
    %88 = vector.load %arg5[%c0_43, %c160_44] : memref<1x192xf32, #tpu.memory_space<vmem>>, vector<1x32xf32>
    %89 = vector.broadcast %88 : vector<1x32xf32> to vector<40x32xf32>
    %90 = arith.addf %87, %89 : vector<40x32xf32>
    %91 = arith.truncf %76 : vector<40x32xf32> to vector<40x32xbf16>
    %92 = arith.truncf %83 : vector<40x32xf32> to vector<40x32xbf16>
    %cst_45 = arith.constant dense<0.000000e+00> : vector<40x40xf32>
    %93 = tpu.matmul %91, %92, %cst_45 {dimension_numbers = #tpu.dot_dimension_numbers<[1], [1], [0], [0], [0, 0, 1, 0], [], []>} : vector<40x32xbf16>, vector<40x32xbf16>, vector<40x40xf32> -> vector<40x40xf32>
    %cst_46 = arith.constant 0.176776692 : f32
    %94 = vector.broadcast %cst_46 : f32 to vector<40x40xf32>
    %95 = arith.mulf %93, %94 : vector<40x40xf32>
    %cst_47 = arith.constant dense<0xFF800000> : vector<40xf32>
    %96 = vector.multi_reduction <maximumf>, %95, %cst_47 [1] : vector<40x40xf32> to vector<40xf32>
    %97 = vector.shape_cast %96 : vector<40xf32> to vector<40x1xf32>
    %98 = vector.broadcast %97 : vector<40x1xf32> to vector<40x40xf32>
    %99 = arith.subf %95, %98 : vector<40x40xf32>
    %100 = math.exp %99 : vector<40x40xf32>
    %cst_48 = arith.constant dense<0.000000e+00> : vector<40xf32>
    %101 = vector.multi_reduction <add>, %100, %cst_48 [1] : vector<40x40xf32> to vector<40xf32>
    %102 = vector.shape_cast %101 : vector<40xf32> to vector<40x1xf32>
    %103 = tpu.reciprocal %102 {approx = true} : vector<40x1xf32> -> vector<40x1xf32>
    %104 = vector.broadcast %103 : vector<40x1xf32> to vector<40x40xf32>
    %105 = arith.mulf %100, %104 : vector<40x40xf32>
    %106 = arith.truncf %105 : vector<40x40xf32> to vector<40x40xbf16>
    %107 = arith.truncf %90 : vector<40x32xf32> to vector<40x32xbf16>
    %cst_49 = arith.constant dense<0.000000e+00> : vector<40x32xf32>
    %108 = tpu.matmul %106, %107, %cst_49 {dimension_numbers = #tpu.dot_dimension_numbers<[1], [0], [0], [1], [0, 0, 1, 1], [], []>} : vector<40x40xbf16>, vector<40x32xbf16>, vector<40x32xf32> -> vector<40x32xf32>
    %c32_50 = arith.constant 32 : index
    %c0_51 = arith.constant 0 : index
    %109 = vector.load %arg6[%c32_50, %c0_51] : memref<64x64xf32, #tpu.memory_space<vmem>>, vector<32x64xf32>
    %110 = arith.truncf %108 : vector<40x32xf32> to vector<40x32xbf16>
    %111 = arith.truncf %109 : vector<32x64xf32> to vector<32x64xbf16>
    %cst_52 = arith.constant dense<0.000000e+00> : vector<40x64xf32>
    %112 = tpu.matmul %110, %111, %cst_52 {dimension_numbers = #tpu.dot_dimension_numbers<[1], [0], [0], [1], [0, 0, 1, 1], [], []>} : vector<40x32xbf16>, vector<32x64xbf16>, vector<40x64xf32> -> vector<40x64xf32>
    %113 = arith.addf %69, %112 : vector<40x64xf32>
    %114 = arith.addf %1, %113 : vector<40x64xf32>
    %c0_53 = arith.constant 0 : index
    %c0_54 = arith.constant 0 : index
    %115 = vector.load %arg8[%c0_53, %c0_54] : memref<1x64xf32, #tpu.memory_space<vmem>>, vector<1x64xf32>
    %c0_55 = arith.constant 0 : index
    %c0_56 = arith.constant 0 : index
    %116 = vector.load %arg9[%c0_55, %c0_56] : memref<1x64xf32, #tpu.memory_space<vmem>>, vector<1x64xf32>
    %cst_57 = arith.constant dense<0.000000e+00> : vector<40xf32>
    %117 = vector.multi_reduction <add>, %114, %cst_57 [1] : vector<40x64xf32> to vector<40xf32>
    %118 = vector.shape_cast %117 : vector<40xf32> to vector<40x1xf32>
    %cst_58 = arith.constant 6.400000e+01 : f32
    %119 = vector.broadcast %cst_58 : f32 to vector<40x1xf32>
    %120 = arith.divf %118, %119 : vector<40x1xf32>
    %121 = vector.broadcast %120 : vector<40x1xf32> to vector<40x64xf32>
    %122 = arith.subf %114, %121 : vector<40x64xf32>
    %123 = arith.mulf %122, %122 : vector<40x64xf32>
    %cst_59 = arith.constant dense<0.000000e+00> : vector<40xf32>
    %124 = vector.multi_reduction <add>, %123, %cst_59 [1] : vector<40x64xf32> to vector<40xf32>
    %125 = vector.shape_cast %124 : vector<40xf32> to vector<40x1xf32>
    %cst_60 = arith.constant 6.400000e+01 : f32
    %126 = vector.broadcast %cst_60 : f32 to vector<40x1xf32>
    %127 = arith.divf %125, %126 : vector<40x1xf32>
    %cst_61 = arith.constant 9.99999974E-6 : f32
    %128 = vector.broadcast %cst_61 : f32 to vector<40x1xf32>
    %129 = arith.addf %127, %128 : vector<40x1xf32>
    %130 = math.rsqrt %129 : vector<40x1xf32>
    %131 = vector.broadcast %130 : vector<40x1xf32> to vector<40x64xf32>
    %132 = arith.mulf %122, %131 : vector<40x64xf32>
    %133 = vector.broadcast %115 : vector<1x64xf32> to vector<40x64xf32>
    %134 = arith.mulf %132, %133 : vector<40x64xf32>
    %135 = vector.broadcast %116 : vector<1x64xf32> to vector<40x64xf32>
    %136 = arith.addf %134, %135 : vector<40x64xf32>
    %c0_62 = arith.constant 0 : index
    %c0_63 = arith.constant 0 : index
    %137 = vector.load %arg10[%c0_62, %c0_63] : memref<64x256xf32, #tpu.memory_space<vmem>>, vector<64x256xf32>
    %138 = arith.truncf %136 : vector<40x64xf32> to vector<40x64xbf16>
    %139 = arith.truncf %137 : vector<64x256xf32> to vector<64x256xbf16>
    %cst_64 = arith.constant dense<0.000000e+00> : vector<40x256xf32>
    %140 = tpu.matmul %138, %139, %cst_64 {dimension_numbers = #tpu.dot_dimension_numbers<[1], [0], [0], [1], [0, 0, 1, 1], [], []>} : vector<40x64xbf16>, vector<64x256xbf16>, vector<40x256xf32> -> vector<40x256xf32>
    %c0_65 = arith.constant 0 : index
    %c0_66 = arith.constant 0 : index
    %141 = vector.load %arg11[%c0_65, %c0_66] : memref<1x256xf32, #tpu.memory_space<vmem>>, vector<1x256xf32>
    %142 = vector.broadcast %141 : vector<1x256xf32> to vector<40x256xf32>
    %143 = arith.addf %140, %142 : vector<40x256xf32>
    %cst_67 = arith.constant 5.000000e-01 : f32
    %144 = vector.broadcast %cst_67 : f32 to vector<40x256xf32>
    %145 = arith.mulf %144, %143 : vector<40x256xf32>
    %cst_68 = arith.constant 0.707106769 : f32
    %146 = vector.broadcast %cst_68 : f32 to vector<40x256xf32>
    %147 = arith.mulf %143, %146 : vector<40x256xf32>
    %cst_69 = arith.constant 0.000000e+00 : f32
    %148 = vector.broadcast %cst_69 : f32 to vector<40x256xf32>
    %149 = arith.cmpf oge, %147, %148 : vector<40x256xf32>
    %cst_70 = arith.constant 1.000000e+00 : f32
    %cst_71 = arith.constant -1.000000e+00 : f32
    %150 = vector.broadcast %cst_70 : f32 to vector<40x256xf32>
    %151 = vector.broadcast %cst_71 : f32 to vector<40x256xf32>
    %152 = arith.select %149, %150, %151 : vector<40x256xi1>, vector<40x256xf32>
    %153 = math.absf %147 : vector<40x256xf32>
    %cst_72 = arith.constant 0.327591091 : f32
    %154 = vector.broadcast %cst_72 : f32 to vector<40x256xf32>
    %155 = arith.mulf %154, %153 : vector<40x256xf32>
    %cst_73 = arith.constant 1.000000e+00 : f32
    %156 = vector.broadcast %cst_73 : f32 to vector<40x256xf32>
    %157 = arith.addf %156, %155 : vector<40x256xf32>
    %cst_74 = arith.constant 1.000000e+00 : f32
    %158 = vector.broadcast %cst_74 : f32 to vector<40x256xf32>
    %159 = arith.divf %158, %157 : vector<40x256xf32>
    %cst_75 = arith.constant 1.06140542 : f32
    %160 = vector.broadcast %cst_75 : f32 to vector<40x256xf32>
    %161 = arith.mulf %160, %159 : vector<40x256xf32>
    %cst_76 = arith.constant -1.45315206 : f32
    %162 = vector.broadcast %cst_76 : f32 to vector<40x256xf32>
    %163 = arith.addf %161, %162 : vector<40x256xf32>
    %164 = arith.mulf %163, %159 : vector<40x256xf32>
    %cst_77 = arith.constant 1.42141378 : f32
    %165 = vector.broadcast %cst_77 : f32 to vector<40x256xf32>
    %166 = arith.addf %164, %165 : vector<40x256xf32>
    %167 = arith.mulf %166, %159 : vector<40x256xf32>
    %cst_78 = arith.constant -0.284496725 : f32
    %168 = vector.broadcast %cst_78 : f32 to vector<40x256xf32>
    %169 = arith.addf %167, %168 : vector<40x256xf32>
    %170 = arith.mulf %169, %159 : vector<40x256xf32>
    %cst_79 = arith.constant 0.254829586 : f32
    %171 = vector.broadcast %cst_79 : f32 to vector<40x256xf32>
    %172 = arith.addf %170, %171 : vector<40x256xf32>
    %173 = arith.mulf %172, %159 : vector<40x256xf32>
    %cst_80 = arith.constant 0.000000e+00 : f32
    %174 = vector.broadcast %cst_80 : f32 to vector<40x256xf32>
    %175 = arith.subf %174, %153 : vector<40x256xf32>
    %176 = arith.mulf %175, %153 : vector<40x256xf32>
    %177 = math.exp %176 : vector<40x256xf32>
    %178 = arith.mulf %173, %177 : vector<40x256xf32>
    %cst_81 = arith.constant 1.000000e+00 : f32
    %179 = vector.broadcast %cst_81 : f32 to vector<40x256xf32>
    %180 = arith.subf %179, %178 : vector<40x256xf32>
    %181 = arith.mulf %152, %180 : vector<40x256xf32>
    %cst_82 = arith.constant 1.000000e+00 : f32
    %182 = vector.broadcast %cst_82 : f32 to vector<40x256xf32>
    %183 = arith.addf %182, %181 : vector<40x256xf32>
    %184 = arith.mulf %145, %183 : vector<40x256xf32>
    %c0_83 = arith.constant 0 : index
    %c0_84 = arith.constant 0 : index
    %185 = vector.load %arg12[%c0_83, %c0_84] : memref<256x64xf32, #tpu.memory_space<vmem>>, vector<256x64xf32>
    %186 = arith.truncf %184 : vector<40x256xf32> to vector<40x256xbf16>
    %187 = arith.truncf %185 : vector<256x64xf32> to vector<256x64xbf16>
    %cst_85 = arith.constant dense<0.000000e+00> : vector<40x64xf32>
    %188 = tpu.matmul %186, %187, %cst_85 {dimension_numbers = #tpu.dot_dimension_numbers<[1], [0], [0], [1], [0, 0, 1, 1], [], []>} : vector<40x256xbf16>, vector<256x64xbf16>, vector<40x64xf32> -> vector<40x64xf32>
    %189 = arith.addf %114, %188 : vector<40x64xf32>
    %c0_86 = arith.constant 0 : index
    %c0_87 = arith.constant 0 : index
    %190 = vector.load %arg13[%c0_86, %c0_87] : memref<1x64xf32, #tpu.memory_space<vmem>>, vector<1x64xf32>
    %191 = vector.broadcast %190 : vector<1x64xf32> to vector<40x64xf32>
    %192 = arith.addf %189, %191 : vector<40x64xf32>
    %c0_88 = arith.constant 0 : index
    %c0_89 = arith.constant 0 : index
    %c0_90 = arith.constant 0 : index
    %193 = vector.load %arg14[%c0_88, %c0_89, %c0_90] : memref<1x40x64xf32, #tpu.memory_space<vmem>>, vector<1x40x64xf32>
    %194 = vector.shape_cast %193 : vector<1x40x64xf32> to vector<40x64xf32>
    %195 = vector.shape_cast %192 : vector<40x64xf32> to vector<1x40x64xf32>
    tpu.vector_store %arg14[%c0_88, %c0_89, %c0_90], %195 {strides = array<i32>} : memref<1x40x64xf32, #tpu.memory_space<vmem>>, vector<1x40x64xf32>,
    return
  }
  func.func @transform_0(%arg0: i32) -> (i32, i32, i32) {
    %c0_i32 = arith.constant 0 : i32
    %c0_i32_0 = arith.constant 0 : i32
    %c0_i32_1 = arith.constant 0 : i32
    return %arg0, %c0_i32, %c0_i32_0 : i32, i32, i32
  }
  func.func @transform_1(%arg0: i32) -> (i32, i32) {
    %c0_i32 = arith.constant 0 : i32
    %c0_i32_0 = arith.constant 0 : i32
    %c0_i32_1 = arith.constant 0 : i32
    return %c0_i32, %c0_i32_0 : i32, i32
  }
  func.func @transform_2(%arg0: i32) -> (i32, i32) {
    %c0_i32 = arith.constant 0 : i32
    %c0_i32_0 = arith.constant 0 : i32
    %c0_i32_1 = arith.constant 0 : i32
    return %c0_i32, %c0_i32_0 : i32, i32
  }
  func.func @transform_3(%arg0: i32) -> (i32, i32) {
    %c0_i32 = arith.constant 0 : i32
    %c0_i32_0 = arith.constant 0 : i32
    %c0_i32_1 = arith.constant 0 : i32
    return %c0_i32, %c0_i32_0 : i32, i32
  }
  func.func @transform_4(%arg0: i32) -> (i32, i32) {
    %c0_i32 = arith.constant 0 : i32
    %c0_i32_0 = arith.constant 0 : i32
    %c0_i32_1 = arith.constant 0 : i32
    return %c0_i32, %c0_i32_0 : i32, i32
  }
  func.func @transform_5(%arg0: i32) -> (i32, i32) {
    %c0_i32 = arith.constant 0 : i32
    %c0_i32_0 = arith.constant 0 : i32
    %c0_i32_1 = arith.constant 0 : i32
    return %c0_i32, %c0_i32_0 : i32, i32
  }
  func.func @transform_6(%arg0: i32) -> (i32, i32) {
    %c0_i32 = arith.constant 0 : i32
    %c0_i32_0 = arith.constant 0 : i32
    %c0_i32_1 = arith.constant 0 : i32
    return %c0_i32, %c0_i32_0 : i32, i32
  }
  func.func @transform_7(%arg0: i32) -> (i32, i32) {
    %c0_i32 = arith.constant 0 : i32
    %c0_i32_0 = arith.constant 0 : i32
    %c0_i32_1 = arith.constant 0 : i32
    return %c0_i32, %c0_i32_0 : i32, i32
  }
  func.func @transform_8(%arg0: i32) -> (i32, i32) {
    %c0_i32 = arith.constant 0 : i32
    %c0_i32_0 = arith.constant 0 : i32
    %c0_i32_1 = arith.constant 0 : i32
    return %c0_i32, %c0_i32_0 : i32, i32
  }
  func.func @transform_9(%arg0: i32) -> (i32, i32) {
    %c0_i32 = arith.constant 0 : i32
    %c0_i32_0 = arith.constant 0 : i32
    %c0_i32_1 = arith.constant 0 : i32
    return %c0_i32, %c0_i32_0 : i32, i32
  }
  func.func @transform_10(%arg0: i32) -> (i32, i32) {
    %c0_i32 = arith.constant 0 : i32
    %c0_i32_0 = arith.constant 0 : i32
    %c0_i32_1 = arith.constant 0 : i32
    return %c0_i32, %c0_i32_0 : i32, i32
  }
  func.func @transform_11(%arg0: i32) -> (i32, i32) {
    %c0_i32 = arith.constant 0 : i32
    %c0_i32_0 = arith.constant 0 : i32
    %c0_i32_1 = arith.constant 0 : i32
    return %c0_i32, %c0_i32_0 : i32, i32
  }
  func.func @transform_12(%arg0: i32) -> (i32, i32) {
    %c0_i32 = arith.constant 0 : i32
    %c0_i32_0 = arith.constant 0 : i32
    %c0_i32_1 = arith.constant 0 : i32
    return %c0_i32, %c0_i32_0 : i32, i32
  }
  func.func @transform_13(%arg0: i32) -> (i32, i32, i32) {
    %c0_i32 = arith.constant 0 : i32
    %c0_i32_0 = arith.constant 0 : i32
    %c0_i32_1 = arith.constant 0 : i32
    return %arg0, %c0_i32, %c0_i32_0 : i32, i32, i32
  }
}

module attributes {stable_mosaic.version = 11 : i64} {
  func.func @_head_kernel(%arg0: i32, %arg1: memref<2x2560xf32, #tpu.memory_space<vmem>>, %arg2: memref<2560x3xf32, #tpu.memory_space<vmem>>, %arg3: memref<1x3xf32, #tpu.memory_space<vmem>>, %arg4: memref<2x3xf32, #tpu.memory_space<vmem>>) attributes {dimension_semantics = [#tpu.dimension_semantics<arbitrary>], iteration_bounds = array<i64: 1>, scalar_prefetch = 0 : i64, scratch_operands = 0 : i64, tpu.core_type = #tpu.core_type<tc>, window_params = [{pipeline_mode = #tpu.pipeline_mode<synchronous>, transform_indices = @transform_0, window_bounds = array<i64: 2, 2560>}, {pipeline_mode = #tpu.pipeline_mode<synchronous>, transform_indices = @transform_1, window_bounds = array<i64: 2560, 3>}, {pipeline_mode = #tpu.pipeline_mode<synchronous>, transform_indices = @transform_2, window_bounds = array<i64: 1, 3>}, {pipeline_mode = #tpu.pipeline_mode<synchronous>, transform_indices = @transform_3, window_bounds = array<i64: 2, 3>}]} {
    %c0 = arith.constant 0 : index
    %c0_0 = arith.constant 0 : index
    %0 = vector.load %arg1[%c0, %c0_0] : memref<2x2560xf32, #tpu.memory_space<vmem>>, vector<2x2560xf32>
    %c0_1 = arith.constant 0 : index
    %c0_2 = arith.constant 0 : index
    %1 = vector.load %arg2[%c0_1, %c0_2] : memref<2560x3xf32, #tpu.memory_space<vmem>>, vector<2560x3xf32>
    %cst = arith.constant dense<0.000000e+00> : vector<2x3xf32>
    %2 = tpu.matmul %0, %1, %cst {dimension_numbers = #tpu.dot_dimension_numbers<[1], [0], [0], [1], [0, 0, 1, 1], [], []>} : vector<2x2560xf32>, vector<2560x3xf32>, vector<2x3xf32> -> vector<2x3xf32>
    %c0_3 = arith.constant 0 : index
    %c0_4 = arith.constant 0 : index
    %3 = vector.load %arg3[%c0_3, %c0_4] : memref<1x3xf32, #tpu.memory_space<vmem>>, vector<1x3xf32>
    %4 = vector.broadcast %3 : vector<1x3xf32> to vector<2x3xf32>
    %5 = arith.addf %2, %4 : vector<2x3xf32>
    %c0_5 = arith.constant 0 : index
    %c0_6 = arith.constant 0 : index
    %6 = vector.load %arg4[%c0_5, %c0_6] : memref<2x3xf32, #tpu.memory_space<vmem>>, vector<2x3xf32>
    tpu.vector_store %arg4[%c0_5, %c0_6], %5 {strides = array<i32>} : memref<2x3xf32, #tpu.memory_space<vmem>>, vector<2x3xf32>,
    return
  }
  func.func @transform_0(%arg0: i32) -> (i32, i32) {
    %c0_i32 = arith.constant 0 : i32
    %c0_i32_0 = arith.constant 0 : i32
    %c0_i32_1 = arith.constant 0 : i32
    return %c0_i32, %c0_i32_0 : i32, i32
  }
  func.func @transform_1(%arg0: i32) -> (i32, i32) {
    %c0_i32 = arith.constant 0 : i32
    %c0_i32_0 = arith.constant 0 : i32
    %c0_i32_1 = arith.constant 0 : i32
    return %c0_i32, %c0_i32_0 : i32, i32
  }
  func.func @transform_2(%arg0: i32) -> (i32, i32) {
    %c0_i32 = arith.constant 0 : i32
    %c0_i32_0 = arith.constant 0 : i32
    %c0_i32_1 = arith.constant 0 : i32
    return %c0_i32, %c0_i32_0 : i32, i32
  }
  func.func @transform_3(%arg0: i32) -> (i32, i32) {
    %c0_i32 = arith.constant 0 : i32
    %c0_i32_0 = arith.constant 0 : i32
    %c0_i32_1 = arith.constant 0 : i32
    return %c0_i32, %c0_i32_0 : i32, i32
  }
}

</mosaic_0001>

<bundles_post_ra>
// kernel: transformer_model_forward.4
= control target key start
LH: loop header
LB: loop body
LE: loop exit
PB: predicated region body
PF: predicated region fallthrough
CT: control target
= control target key end

     0   :  { %s494_s15 = smov 0   ;;  %s556_s0 = inlined_call_operand.vmem [shape: f32[2,40,20], index: 0, kind: input, shape index: {}]   ;;  %s557_s1 = inlined_call_operand.vmem [shape: f32[20,64], index: 1, kind: input, shape index: {}]   ;;  %s558_s2 = inlined_call_operand.vmem [shape: f32[1,64], index: 2, kind: input, shape index: {}]   ;;  %s559_s3 = inlined_call_operand.vmem [shape: f32[40,64], index: 3, kind: input, shape index: {}]   ;;  %s560_s4 = inlined_call_operand.vmem [shape: f32[2,40,64], index: 4, kind: output, shape index: {}]  }
   0x1 LB: > { %s394_s16 = sadd.s32 4294967295, %s464_s15   ;;  %p398_p0 = scmp.ge.s32.totalorder %s464_s15, 1  ;;  %s464_s15 = sphi %s494_s15, %s14_s15  }
   0x2   : > { %p162_p1 = scmp.lt.s32.totalorder %s464_s15, 3 }
   0x4   : > { %p163_p2 = pnand %p398_p0, %p162_p1 }
   0x5   : > { %v203_v0 = vld [vmem:[%s557_s1] sm:$0xff] (!%p163_p2)  ;;  %v204_v1 = vld [vmem:[%s557_s1 + $0x8] sm:$0xff] (!%p163_p2)  ;;  %v466_v2 = vmov (!%p163_p2), 0.0|0.0   ;;  %p188_p3 = scmp.lt.s32.totalorder (!%p163_p2), %s394_s16, 1  ;;  %vm467_vm0 = vmmov (!%p163_p2), 0   ;;  %v468_v4 = vmov (!%p163_p2), 0.0  }
   0x6   : > { %166 = sbr.rel (%p163_p2) target bundleno = 243 (0xf3), region = 36  ;;  %439 = vmatprep.subr.bf16.mxu0 (!%p163_p2), %v466_v2  ;;  %v440_v3 = vpack.c.bf16 (!%p163_p2), %v204_v1, %v203_v0  ;;  %442 = vmatprep.subr.bf16.mxu1 (!%p163_p2), %v466_v2  ;;  %v205_v5 = vld [vmem:[%s557_s1 + $0x10] sm:$0xf] (!%p163_p2)  ;;  %vm229_vm1 = vcmask (!%p163_p2), 1043456   ;;  %vm213_vm2 = vcmask (!%p163_p2), 162816   ;;  %v323_v13 = vld [vmem:[%s559_s3] sm:$0xff] (!%p163_p2) }
   0x7   : > { %424 = vmatprep.mubr.msk.f32.mxu0 (!%p163_p2), %vm467_vm0, %v468_v4  ;;  %433 = vmatprep.mubr.msk.f32.mxu1 (!%p163_p2), %vm467_vm0, %v468_v4  ;;  %v401_v11 = vld [vmem:[%s558_s2] ss:$0 sm:$0xff] (!%p163_p2)  ;;  %v326_v15 = vld [vmem:[%s559_s3 + $0x18] sm:$0xff] (!%p163_p2)  ;;  %vm333_vm3 = vcmask (!%p163_p2), 523264   ;;  %v324_v23 = vld [vmem:[%s559_s3 + $0x8] sm:$0xff] (!%p163_p2) }
   0x8   : > { %441 = vmatpush3.bf16.msra.mxu0 (!%p163_p2), %v440_v3  ;;  %444 = vmatpush3.bf16.msra.mxu1 (!%p163_p2), %v440_v3  ;;  %v327_v25 = vld [vmem:[%s559_s3 + $0x20] sm:$0xff] (!%p163_p2)  ;;  %v325_v33 = vld [vmem:[%s559_s3 + $0x10] sm:$0xff] (!%p163_p2) }
   0x9   : > { %422 = vmatprep.subr.mxu0 (!%p163_p2), %v468_v4  ;;  %443 = vmatprep.subr.mxu1 (!%p163_p2), %v468_v4 }
   0xc   : > { %423 = vmatpush3.msk.msra.mxu0 (!%p163_p2), %vm229_vm1, %v205_v5  ;;  %445 = vmatpush3.msk.msra.mxu1 (!%p163_p2), %vm229_vm1, %v205_v5 }
   0xd   : > { %s562_s16 = smov (!%p188_p3, %s394_s16), 1 }
   0xe   : > { %s446_s23 = smul.u32 40, %s562_s16 }
  0x10   : > { %s192_s26 = scalar_lea.vmem %s556_s0, %s446_s23  ;;  %s197_s9 = scalar_lea.vmem %s560_s4, %s446_s23 }
  0x11   : > { %v198_v6 = vld [vmem:[%s192_s26] sm:$0xff]  ;;  %v201_v7 = vld [vmem:[%s192_s26 + $0x18] sm:$0xff]  ;;  %v199_v8 = vld [vmem:[%s192_s26 + $0x8] sm:$0xff] }
  0x12   : > { %425 = vmatmul.mubr.msk.f32.vlgmr.msra.gmra.mrb[0].mxu0 %vm213_vm2, %v198_v6  ;;  %434 = vmatmul.mubr.msk.f32.vlgmr.msra.gmra.mrb[0].mxu1 %vm213_vm2, %v201_v7  ;;  %v202_v9 = vld [vmem:[%s192_s26 + $0x20] sm:$0xff]  ;;  %v200_v10 = vld [vmem:[%s192_s26 + $0x10] sm:$0xff] }
  0x13   : > { %427 = vmatprep.mubr.msk.f32.mxu0 %vm467_vm0, %v468_v4  ;;  %436 = vmatprep.mubr.msk.f32.mxu1 %vm467_vm0, %v468_v4 }
  0x16   : > { %428 = vmatmul.mubr.msk.f32.gmra.mrb[2].mxu0 %vm213_vm2, %v199_v8  ;;  %437 = vmatmul.mubr.msk.f32.gmra.mrb[2].mxu1 %vm213_vm2, %v202_v9 }
  0x17   : > { %430 = vmatprep.mubr.msk.f32.mxu0 %vm467_vm0, %v468_v4 }
  0x1a   : > { %431 = vmatmul.mubr.msk.f32.gmra.mrb[4].mxu0 %vm213_vm2, %v200_v10 }
  0xe5   : > { %v299_v12 = vpop.f32.mrb[0].mxu0  ;;  %v314_v14 = vpop.f32.mrb[0].mxu1 }
  0xe6   : > { %v300_v16 = vadd.f32 %v401_v11, %v299_v12  ;;  %v426_v17 = vpop.f32.mrb[1].mxu0  ;;  %v315_v18 = vadd.f32 %v401_v11, %v314_v14  ;;  %v435_v19 = vpop.f32.mrb[1].mxu1 }
  0xe8   : > { %v328_v20 = vadd.f32 %v323_v13, %v300_v16  ;;  %v331_v21 = vadd.f32 %v326_v15, %v315_v18 }
  0xe9   : > { %v304_v22 = vpop.f32.mrb[2].mxu0  ;;  %v319_v24 = vpop.f32.mrb[2].mxu1 }
  0xea   : > { %334 = vst.msk [vmem:[%s197_s9] sm:$0xff] %vm333_vm3, %v328_v20  ;;  %337 = vst.msk [vmem:[%s197_s9 + $0x18] sm:$0xff] %vm333_vm3, %v331_v21  ;;  %v305_v26 = vadd.f32 %v401_v11, %v304_v22  ;;  %v429_v27 = vpop.f32.mrb[3].mxu0  ;;  %v320_v28 = vadd.f32 %v401_v11, %v319_v24  ;;  %v438_v29 = vpop.f32.mrb[3].mxu1 }
  0xec   : > { %v329_v30 = vadd.f32 %v324_v23, %v305_v26  ;;  %v332_v31 = vadd.f32 %v327_v25, %v320_v28 }
  0xed   : > { %v309_v32 = vpop.f32.mrb[4].mxu0 }
  0xee   : > { %335 = vst.msk [vmem:[%s197_s9 + $0x8] sm:$0xff] %vm333_vm3, %v329_v30  ;;  %338 = vst.msk [vmem:[%s197_s9 + $0x20] sm:$0xff] %vm333_vm3, %v332_v31  ;;  %v310_v34 = vadd.f32 %v401_v11, %v309_v32  ;;  %v432_v35 = vpop.f32.mrb[5].mxu0 }
  0xf0   : > { %v330_v36 = vadd.f32 %v325_v33, %v310_v34 }
  0xf2   : > { %336 = vst.msk [vmem:[%s197_s9 + $0x10] sm:$0xff] %vm333_vm3, %v330_v36 }
  0xf3 PF: > { %s14_s15 = sadd.s32 1, %s464_s15  }
  0xf4   : > { %p11_p4 = scmp.ge.s32.totalorder %s14_s15, 4  }
  0xf6   :  { %13 = sbr.rel (!%p11_p4) target bundleno = 1 (0x1), region = 66 }

// kernel: transformer_model_forward.5
= control target key start
LH: loop header
LB: loop body
LE: loop exit
PB: predicated region body
PF: predicated region fallthrough
CT: control target
= control target key end

     0   :  { %s2844_s25 = smov 0   ;;  %s3754_s0 = inlined_call_operand.vmem [shape: f32[2,40,64], index: 0, kind: input, shape index: {}]   ;;  %s3755_s1 = inlined_call_operand.vmem [shape: f32[1,64], index: 1, kind: input, shape index: {}]   ;;  %s3756_s2 = inlined_call_operand.vmem [shape: f32[1,64], index: 2, kind: input, shape index: {}]   ;;  %s3757_s3 = inlined_call_operand.vmem [shape: f32[64,192], index: 3, kind: input, shape index: {}]   ;;  %s3758_s4 = inlined_call_operand.vmem [shape: f32[1,192], index: 4, kind: input, shape index: {}]   ;;  %s3759_s5 = inlined_call_operand.vmem [shape: f32[64,64], index: 5, kind: input, shape index: {}]   ;;  %s3760_s6 = inlined_call_operand.vmem [shape: f32[1,64], index: 6, kind: input, shape index: {}]   ;;  %s3761_s7 = inlined_call_operand.vmem [shape: f32[1,64], index: 7, kind: input, shape index: {}]   ;;  %s3762_s8 = inlined_call_operand.vmem [shape: f32[1,64], index: 8, kind: input, shape index: {}]   ;;  %s3763_s9 = inlined_call_operand.vmem [shape: f32[64,256], index: 9, kind: input, shape index: {}]   ;;  %s3764_s10 = inlined_call_operand.vmem [shape: f32[1,256], index: 10, kind: input, shape index: {}]   ;;  %s3765_s11 = inlined_call_operand.vmem [shape: f32[256,64], index: 11, kind: input, shape index: {}]   ;;  %s3766_s12 = inlined_call_operand.vmem [shape: f32[1,64], index: 12, kind: input, shape index: {}]   ;;  %s3767_s13 = inlined_call_operand.vmem [shape: f32[2,40,64], index: 13, kind: output, shape index: {}]  }
   0x1 LB: > { %s2248_s26 = sadd.s32 4294967295, %s2765_s25   ;;  %p2252_p0 = scmp.ge.s32.totalorder %s2765_s25, 1  ;;  %s2765_s25 = sphi %s2844_s25, %s23_s25  }
   0x2   : > { %p387_p1 = scmp.lt.s32.totalorder %s2765_s25, 3 }
   0x4   : > { %p388_p2 = pnand %p2252_p0, %p387_p1 }
   0x5   : > { %p431_p3 = scmp.lt.s32.totalorder (!%p388_p2), %s2248_s26, 1  ;;  %vm449_vm0 = vcmask (!%p388_p2), 523264   ;;  %v541_v30 = vld [vmem:[%s3757_s3 + $0x20] sm:$0xff] (!%p388_p2)  ;;  %v542_v31 = vld [vmem:[%s3757_s3 + $0x30] sm:$0xff] (!%p388_p2)  ;;  %s2767_s22 = smov (!%p388_p2), 64   ;;  %v2768_v39 = vmov (!%p388_p2), 0.0  }
   0x6   : > { %391 = sbr.rel (%p388_p2) target bundleno = 3460 (0xd84), region = 72  ;;  %v2898_v32 = vpack.c.bf16 (!%p388_p2), %v542_v31, %v541_v30  ;;  %v543_v33 = vld [vmem:[%s3757_s3 + $0x40] sm:$0xff] (!%p388_p2)  ;;  %v544_v34 = vld [vmem:[%s3757_s3 + $0x50] sm:$0xff] (!%p388_p2)  ;;  %2414 = vmatprep.subr.bf16.mxu0 (!%p388_p2), %v2768_v39  ;;  %2434 = vmatprep.subr.bf16.mxu1 (!%p388_p2), %v2768_v39  ;;  %vm2769_vm1 = vmmov (!%p388_p2), 0   ;;  %v708_v30 = vld [vmem:[%s3757_s3 + $0x78] sm:$0xff] (!%p388_p2)  ;;  %vm782_vm2 = vcmask (!%p388_p2), 261120  }
   0x7   : > { %v2908_v35 = vpack.c.bf16 (!%p388_p2), %v544_v34, %v543_v33  ;;  %v539_v36 = vld [vmem:[%s3757_s3] sm:$0xff] (!%p388_p2)  ;;  %v540_v37 = vld [vmem:[%s3757_s3 + $0x10] sm:$0xff] (!%p388_p2)  ;;  %2422 = vmatprep.mubr.msk.bf16.mxu0 (!%p388_p2), %vm2769_vm1, %v2768_v39  ;;  %2442 = vmatprep.mubr.msk.bf16.mxu1 (!%p388_p2), %vm2769_vm1, %v2768_v39  ;;  %vm933_vm3 = vcmask (!%p388_p2), 1043456   ;;  %vm862_vm4 = vcmask (!%p388_p2), 326656   ;;  %s2770_s16 = smov (!%p388_p2), 32   ;;  %s2771_s17 = smov (!%p388_p2), 96  }
   0x8   : > { %v2918_v38 = vpack.c.bf16 (!%p388_p2), %v540_v37, %v539_v36  ;;  %v545_v40 = vld [vmem:[%s3757_s3 + $0x60] sm:$0xff] (!%p388_p2)  ;;  %v546_v41 = vld [vmem:[%s3757_s3 + $0x70] sm:$0xff] (!%p388_p2) }
   0x9   : > { %v2936_v42 = vpack.c.bf16 (!%p388_p2), %v546_v41, %v545_v40  ;;  %v2954_v48 = vld [vmem:[%s3758_s4] ss:$0 sm:$0xff] (!%p388_p2) }
   0xa   : > { %2415 = vmatpush3.bf16.msra.mxu0 (!%p388_p2), %v2918_v38 }
   0xb   : > { %2416 = vmatprep.subr.bf16.mxu0 (!%p388_p2), %v2768_v39 }
   0xd   : > { %s3769_s26 = smov (!%p431_p3, %s2248_s26), 1 }
   0xe   : > { %s2638_s27 = smul.u32 40, %s3769_s26  ;;  %2417 = vmatpush3.bf16.msra.mxu0 %v2898_v32 }
   0xf   : > { %2418 = vmatprep.subr.bf16.mxu0 %v2768_v39 }
  0x10   : > { %s2860_s30 = scalar_lea.vmem %s3754_s0, %s2638_s27 }
  0x11   : > { %v442_v0 = vld [vmem:[%s2860_s30] sm:$0xff]  ;;  %v444_v1 = vld [vmem:[%s2860_s30 + $0x10] sm:$0xff]  ;;  %v443_v2 = vld [vmem:[%s2860_s30 + $0x8] sm:$0xff] }
  0x12   : > { %v450_v3 = vsel %vm449_vm0, %v442_v0, 0.0  ;;  %v456_v4 = vsel %vm449_vm0, %v444_v1, 0.0  ;;  %v445_v5 = vld [vmem:[%s2860_s30 + $0x18] sm:$0xff]  ;;  %v453_v6 = vsel %vm449_vm0, %v443_v2, 0.0  ;;  %v446_v8 = vld [vmem:[%s2860_s30 + $0x20] sm:$0xff]  ;;  %2419 = vmatpush3.bf16.msra.mxu0 %v2908_v35 }
  0x13   : > { %451 = vadd.xlane.f32.xlu0 %v450_v3  ;;  %457 = vadd.xlane.f32.xlu1 %v456_v4  ;;  %v459_v7 = vsel %vm449_vm0, %v445_v5, 0.0  ;;  %v462_v9 = vsel %vm449_vm0, %v446_v8, 0.0 }
  0x14   : > { %2420 = vmatprep.subr.bf16.mxu0 %v2768_v39 }
  0x16   : > { %2421 = vmatpush3.bf16.msra.mxu0 %v2936_v42 }
  0x17   : > { %454 = vadd.xlane.f32.xlu0 %v453_v6  ;;  %460 = vadd.xlane.f32.xlu1 %v459_v7  ;;  %v2256_v7 = vld [vmem:[%s3756_s2] ss:$0 sm:$0xff] }
  0x18   : > { %2454 = vmatprep.subr.bf16.mxu0 %v2768_v39 }
  0x1b   : > { %463 = vadd.xlane.f32.xlu0 %v462_v9 }
  0xa0   : > { %v452_v10 = vpop.xlane.xlu0 %451  ;;  %v458_v11 = vpop.xlane.xlu1 %457 }
  0xa1   : > { %v466_v12 = vmul.f32 0.015625, %v452_v10  ;;  %v468_v13 = vmul.f32 0.015625, %v458_v11  ;;  %v701_v10 = vld [vmem:[%s3757_s3 + $0x8] sm:$0xff]  ;;  %v702_v11 = vld [vmem:[%s3757_s3 + $0x18] sm:$0xff] }
  0xa3   : > { %v2872_v14 = vsub.f32 %v442_v0, %v466_v12  ;;  %v2874_v15 = vsub.f32 %v444_v1, %v468_v13  ;;  %v2255_v1 = vld [vmem:[%s3755_s1] ss:$0 sm:$0xff] }
  0xa4   : > { %v455_v16 = vpop.xlane.xlu0 %454  ;;  %v461_v17 = vpop.xlane.xlu1 %460 }
  0xa5   : > { %v467_v18 = vmul.f32 0.015625, %v455_v16  ;;  %v469_v19 = vmul.f32 0.015625, %v461_v17  ;;  %v476_v20 = vmul.f32 %v2872_v14, %v2872_v14  ;;  %v478_v21 = vmul.f32 %v2874_v15, %v2874_v15 }
  0xa6   : > { %v2977_v17 = vpack.c.bf16 %v702_v11, %v701_v10 }
  0xa7   : > { %v2880_v22 = vsub.f32 %v443_v2, %v467_v18  ;;  %v2882_v23 = vsub.f32 %v445_v5, %v469_v19  ;;  %v481_v24 = vsel %vm449_vm0, %v476_v20, 0.0  ;;  %v487_v25 = vsel %vm449_vm0, %v478_v21, 0.0  ;;  %v703_v20 = vld [vmem:[%s3757_s3 + $0x28] sm:$0xff]  ;;  %v704_v21 = vld [vmem:[%s3757_s3 + $0x38] sm:$0xff] }
  0xa8   : > { %482 = vadd.xlane.f32.xlu1 %v481_v24  ;;  %v464_v43 = vpop.xlane.xlu0 %463  ;;  %v705_v24 = vld [vmem:[%s3757_s3 + $0x48] sm:$0xff] }
  0xa9   : > { %v477_v26 = vmul.f32 %v2880_v22, %v2880_v22  ;;  %v479_v27 = vmul.f32 %v2882_v23, %v2882_v23  ;;  %v470_v44 = vmul.f32 0.015625, %v464_v43 }
  0xab   : > { %v484_v28 = vsel %vm449_vm0, %v477_v26, 0.0  ;;  %v490_v29 = vsel %vm449_vm0, %v479_v27, 0.0  ;;  %v2944_v45 = vsub.f32 %v446_v8, %v470_v44 }
  0xac   : > { %488 = vadd.xlane.f32.xlu1 %v487_v25  ;;  %485 = vadd.xlane.f32.xlu0 %v484_v28  ;;  %v706_v25 = vld [vmem:[%s3757_s3 + $0x58] sm:$0xff] }
  0xad   : > { %v480_v46 = vmul.f32 %v2944_v45, %v2944_v45  ;;  %v3002_v27 = vpack.c.bf16 %v706_v25, %v705_v24 }
  0xaf   : > { %v493_v47 = vsel %vm449_vm0, %v480_v46, 0.0 }
  0xb0   : > { %491 = vadd.xlane.f32.xlu0 %v490_v29  ;;  %v707_v29 = vld [vmem:[%s3757_s3 + $0x68] sm:$0xff] }
  0xb1   : > { %v3018_v31 = vpack.c.bf16 %v708_v30, %v707_v29  ;;  %v3067_v30 = vld [vmem:[%s3758_s4 + $0x1] ss:$0 sm:$0xff] }
  0xbd   : > { %632 = vrot.lane.b32.xlu1 %v2898_v32, %s2767_s22 }
  0xc1   : > { %634 = vrot.lane.b32.xlu1 %v2908_v35, %s2767_s22 }
  0xc6   : > { %630 = vrot.lane.b32.xlu0 %v2918_v38, %s2767_s22 }
  0xca   : > { %642 = vrot.lane.b32.xlu0 %v2954_v48, %s2767_s22 }
  0xe5   : > { %494 = vadd.xlane.f32.xlu1 %v493_v47 }
  0xf6   : > { %636 = vrot.lane.b32.xlu1 %v2936_v42, %s2767_s22 }
 0x135   : > { %v483_v49 = vpop.xlane.xlu1 %482 }
 0x136   : > { %v496_v50 = vmul.f32 0.015625, %v483_v49 }
 0x138   : > { %v501_v51 = vadd.f32 1e-05, %v496_v50 }
 0x139   : > { %v489_v52 = vpop.xlane.xlu1 %488  ;;  %v486_v53 = vpop.xlane.xlu0 %485 }
 0x13a   : > { %2654 = vrsqrt.f32 %v501_v51  ;;  %v498_v54 = vmul.f32 0.015625, %v489_v52  ;;  %v497_v55 = vmul.f32 0.015625, %v486_v53 }
 0x13c   : > { %v502_v56 = vadd.f32 1e-05, %v497_v55  ;;  %v503_v57 = vadd.f32 1e-05, %v498_v54 }
 0x13d   : > { %v492_v58 = vpop.xlane.xlu0 %491  ;;  %v633_v62 = vpop.permute.xlu1 %632 }
 0x13e   : > { %v499_v59 = vmul.f32 0.015625, %v492_v58  ;;  %2656 = vrsqrt.f32 %v502_v56 }
 0x13f   : > { %2658 = vrsqrt.f32 %v503_v57 }
 0x140   : > { %v504_v60 = vadd.f32 1e-05, %v499_v59 }
 0x141   : > { %v631_v61 = vpop.permute.xlu0 %630  ;;  %v635_v3 = vpop.permute.xlu1 %634 }
 0x142   : > { %2660 = vrsqrt.f32 %v504_v60  ;;  %2435 = vmatpush3.bf16.msra.mxu1 %v631_v61 }
 0x143   : > { %2436 = vmatprep.subr.bf16.mxu1 %v2768_v39 }
 0x144   : > { %v2655_v63 = vpop.eup %2654 }
 0x145   : > { %v511_v0 = vmul.f32 %v2655_v63, %v2872_v14 }
 0x146   : > { %2437 = vmatpush3.bf16.msra.mxu1 %v633_v62  ;;  %v643_v62 = vpop.permute.xlu0 %642 }
 0x147   : > { %2438 = vmatprep.subr.bf16.mxu1 %v2768_v39  ;;  %v522_v4 = vmul.f32 %v2255_v1, %v511_v0 }
 0x148   : > { %v2657_v2 = vpop.eup %2656 }
 0x149   : > { %v512_v5 = vmul.f32 %v2657_v2, %v2880_v22  ;;  %v2659_v6 = vpop.eup %2658  ;;  %v533_v13 = vadd.f32 %v2256_v7, %v522_v4 }
 0x14a   : > { %2439 = vmatpush3.bf16.msra.mxu1 %v635_v3  ;;  %v513_v14 = vmul.f32 %v2659_v6, %v2874_v15  ;;  %v2992_v15 = vpack.c.bf16 %v704_v21, %v703_v20 }
 0x14b   : > { %2440 = vmatprep.subr.bf16.mxu1 %v2768_v39  ;;  %v523_v9 = vmul.f32 %v2255_v1, %v512_v5 }
 0x14c   : > { %v2661_v8 = vpop.eup %2660  ;;  %v524_v22 = vmul.f32 %v2255_v1, %v513_v14 }
 0x14d   : > { %v514_v12 = vmul.f32 %v2661_v8, %v2882_v23  ;;  %v534_v16 = vadd.f32 %v2256_v7, %v523_v9 }
 0x14e   : > { %v535_v26 = vadd.f32 %v2256_v7, %v524_v22 }
 0x14f   : > { %v525_v18 = vmul.f32 %v2255_v1, %v514_v12  ;;  %v2979_v19 = vpack.c.bf16 %v534_v16, %v533_v13 }
 0x151   : > { %2423 = vmatmul.mubr.msk.bf16.vlgmr.msra.gmra.mrb[0].mxu0 %vm449_vm0, %v2979_v19  ;;  %v536_v23 = vadd.f32 %v2256_v7, %v525_v18 }
 0x152   : > { %2426 = vmatprep.mubr.msk.bf16.mxu0 %vm2769_vm1, %v2768_v39  ;;  %2455 = vmatpush3.bf16.msra.mxu0 %v2977_v17 }
 0x153   : > { %2456 = vmatprep.subr.bf16.mxu0 %v2768_v39  ;;  %v3004_v28 = vpack.c.bf16 %v536_v23, %v535_v26 }
 0x156   : > { %2457 = vmatpush3.bf16.msra.mxu0 %v2992_v15 }
 0x157   : > { %2458 = vmatprep.subr.bf16.mxu0 %v2768_v39 }
 0x159   : > { %2427 = vmatmul.mubr.msk.bf16.gmra.mrb[4].mxu0 %vm449_vm0, %v3004_v28 }
 0x15a   : > { %2430 = vmatprep.mubr.msk.bf16.mxu0 %vm2769_vm1, %v2768_v39  ;;  %2459 = vmatpush3.bf16.msra.mxu0 %v3002_v27 }
 0x15b   : > { %2460 = vmatprep.subr.bf16.mxu0 %v2768_v39 }
 0x15e   : > { %2461 = vmatpush3.bf16.msra.mxu0 %v3018_v31 }
 0x15f   : > { %2492 = vmatprep.subr.bf16.mxu0 %v2768_v39 }
 0x172   : > { %v495_v33 = vpop.xlane.xlu1 %494 }
 0x173   : > { %v500_v34 = vmul.f32 0.015625, %v495_v33 }
 0x175   : > { %v505_v36 = vadd.f32 1e-05, %v500_v34 }
 0x176   : > { %v637_v37 = vpop.permute.xlu1 %636 }
 0x177   : > { %2662 = vrsqrt.f32 %v505_v36  ;;  %2441 = vmatpush3.bf16.msra.mxu1 %v637_v37 }
 0x178   : > { %2474 = vmatprep.subr.bf16.mxu1 %v2768_v39 }
 0x17a   : > { %2443 = vmatmul.mubr.msk.bf16.vlgmr.msra.gmra.mrb[0].mxu1 %vm449_vm0, %v2979_v19 }
 0x17b   : > { %2446 = vmatprep.mubr.msk.bf16.mxu1 %vm2769_vm1, %v2768_v39 }
 0x181   : > { %v2663_v40 = vpop.eup %2662 }
 0x182   : > { %v515_v41 = vmul.f32 %v2663_v40, %v2944_v45  ;;  %2447 = vmatmul.mubr.msk.bf16.gmra.mrb[4].mxu1 %vm449_vm0, %v3004_v28 }
 0x183   : > { %2450 = vmatprep.mubr.msk.bf16.mxu1 %vm2769_vm1, %v2768_v39 }
 0x184   : > { %v526_v43 = vmul.f32 %v2255_v1, %v515_v41 }
 0x186   : > { %v537_v44 = vadd.f32 %v2256_v7, %v526_v43 }
 0x188   : > { %v3033_v46 = vpack.c.bf16 %v537_v44, %v537_v44 }
 0x18a   : > { %2431 = vmatmul.mubr.msk.bf16.gmra.mrb[8].mxu0 %vm449_vm0, %v3033_v46  ;;  %2451 = vmatmul.mubr.msk.bf16.gmra.mrb[8].mxu1 %vm449_vm0, %v3033_v46 }
 0x18b   : > { %2462 = vmatprep.mubr.msk.bf16.mxu0 %vm2769_vm1, %v2768_v39  ;;  %2480 = vmatprep.mubr.msk.bf16.mxu1 %vm2769_vm1, %v2768_v39 }
 0x192   : > { %2463 = vmatmul.mubr.msk.bf16.vlgmr.msra.gmra.mrb[12].mxu0 %vm449_vm0, %v2979_v19 }
 0x193   : > { %2466 = vmatprep.mubr.msk.bf16.mxu0 %vm2769_vm1, %v2768_v39 }
 0x19a   : > { %2467 = vmatmul.mubr.msk.bf16.gmra.mrb[16].mxu0 %vm449_vm0, %v3004_v28 }
 0x19b   : > { %2470 = vmatprep.mubr.msk.bf16.mxu0 %vm2769_vm1, %v2768_v39 }
 0x1a2   : > { %2471 = vmatmul.mubr.msk.bf16.gmra.mrb[20].mxu0 %vm449_vm0, %v3033_v46 }
 0x1a3   : > { %2498 = vmatprep.mubr.msk.bf16.mxu0 %vm2769_vm1, %v2768_v39 }
 0x224   : > { %v604_v45 = vpop.f32.mrb[0].mxu0 }
 0x225   : > { %v2424_v47 = vpop.f32.mrb[1].mxu0  ;;  %v605_v50 = vadd.f32 %v2954_v48, %v604_v45 }
 0x226   : > { %v607_v49 = vpop.f32.mrb[2].mxu0 }
 0x227   : > { %v608_v51 = vadd.f32 %v2954_v48, %v607_v49  ;;  %v2425_v52 = vpop.f32.mrb[3].mxu0 }
 0x229   : > { %v776_v53 = vpack.c.bf16 %v608_v51, %v605_v50 }
 0x22c   : > { %v612_v54 = vpop.f32.mrb[4].mxu0 }
 0x22d   : > { %v2428_v55 = vpop.f32.mrb[5].mxu0  ;;  %v613_v57 = vadd.f32 %v2954_v48, %v612_v54 }
 0x22e   : > { %v615_v56 = vpop.f32.mrb[6].mxu0 }
 0x22f   : > { %v616_v58 = vadd.f32 %v2954_v48, %v615_v56  ;;  %v2429_v59 = vpop.f32.mrb[7].mxu0 }
 0x231   : > { %v777_v60 = vpack.c.bf16 %v616_v58, %v613_v57 }
 0x24d   : > { %v679_v61 = vpop.f32.mrb[0].mxu1 }
 0x24e   : > { %v2444_v63 = vpop.f32.mrb[1].mxu1  ;;  %v680_v1 = vadd.f32 %v679_v61, %v643_v62 }
 0x24f   : > { %v682_v0 = vpop.f32.mrb[2].mxu1 }
 0x250   : > { %v683_v2 = vadd.f32 %v682_v0, %v643_v62  ;;  %v2445_v3 = vpop.f32.mrb[3].mxu1 }
 0x252   : > { %v779_v4 = vpack.c.bf16 %v683_v2, %v680_v1 }
 0x254   : > { %v793_v5 = vsel %vm782_vm2, %v779_v4, 0 }
 0x255   : > { %v687_v6 = vpop.f32.mrb[4].mxu1  ;;  %2475 = vmatpush3.bf16.xpose.msra.mxu1 %v793_v5 }
 0x256   : > { %v2448_v7 = vpop.f32.mrb[5].mxu1  ;;  %2476 = vmatprep.subr.bf16.mxu1 %v2768_v39  ;;  %v688_v9 = vadd.f32 %v687_v6, %v643_v62 }
 0x257   : > { %v690_v8 = vpop.f32.mrb[6].mxu1 }
 0x258   : > { %v691_v10 = vadd.f32 %v690_v8, %v643_v62  ;;  %v2449_v11 = vpop.f32.mrb[7].mxu1 }
 0x25a   : > { %v780_v12 = vpack.c.bf16 %v691_v10, %v688_v9 }
 0x25c   : > { %v796_v13 = vsel %vm782_vm2, %v780_v12, 0 }
 0x25d   : > { %v620_v14 = vpop.f32.mrb[8].mxu0  ;;  %v695_v16 = vpop.f32.mrb[8].mxu1  ;;  %2477 = vmatpush3.bf16.xpose.msra.mxu1 %v796_v13 }
 0x25e   : > { %v696_v18 = vadd.f32 %v695_v16, %v643_v62  ;;  %v2432_v20 = vpop.f32.mrb[9].mxu0  ;;  %v2452_v21 = vpop.f32.mrb[9].mxu1  ;;  %2478 = vmatprep.subr.bf16.mxu1 %v2768_v39 }
 0x25f   : > { %v623_v22 = vpop.f32.mrb[10].mxu0  ;;  %v698_v23 = vpop.f32.mrb[10].mxu1 }
 0x260   : > { %v781_v24 = vpack.c.bf16 %v696_v18, %v696_v18  ;;  %v2433_v25 = vpop.f32.mrb[11].mxu0  ;;  %v2453_v26 = vpop.f32.mrb[11].mxu1 }
 0x262   : > { %v799_v29 = vsel %vm782_vm2, %v781_v24, 0 }
 0x265   : > { %v754_v33 = vpop.f32.mrb[12].mxu0  ;;  %2479 = vmatpush3.bf16.xpose.msra.mxu1 %v799_v29 }
 0x266   : > { %v2464_v34 = vpop.f32.mrb[13].mxu0  ;;  %2510 = vmatprep.subr.bf16.mxu1 %v2768_v39  ;;  %v755_v37 = vadd.f32 %v3067_v30, %v754_v33 }
 0x267   : > { %v757_v36 = vpop.f32.mrb[14].mxu0 }
 0x268   : > { %v758_v40 = vadd.f32 %v3067_v30, %v757_v36  ;;  %v2465_v41 = vpop.f32.mrb[15].mxu0 }
 0x26a   : > { %v921_v43 = vpack.c.bf16 %v758_v40, %v755_v37 }
 0x26c   : > { %2481 = vmatmul.mubr.msk.bf16.vlgmr.msra.gmra.mrb[12].mxu1 %vm782_vm2, %v776_v53  ;;  %2493 = vmatpush3.bf16.msra.mxu0 %v921_v43  ;;  %v621_v53 = vadd.f32 %v2954_v48, %v620_v14 }
 0x26d   : > { %v762_v44 = vpop.f32.mrb[16].mxu0  ;;  %2484 = vmatprep.mubr.msk.bf16.mxu1 %vm2769_vm1, %v2768_v39  ;;  %2494 = vmatprep.subr.bf16.mxu0 %v2768_v39 }
 0x26e   : > { %v2468_v45 = vpop.f32.mrb[17].mxu0  ;;  %v763_v49 = vadd.f32 %v3067_v30, %v762_v44  ;;  %v778_v61 = vpack.c.bf16 %v621_v53, %v621_v53 }
 0x26f   : > { %v765_v47 = vpop.f32.mrb[18].mxu0 }
 0x270   : > { %v766_v50 = vadd.f32 %v3067_v30, %v765_v47  ;;  %v2469_v51 = vpop.f32.mrb[19].mxu0 }
 0x272   : > { %v922_v52 = vpack.c.bf16 %v766_v50, %v763_v49 }
 0x274   : > { %2485 = vmatmul.mubr.msk.bf16.gmra.mrb[16].mxu1 %vm782_vm2, %v777_v60  ;;  %2495 = vmatpush3.bf16.msra.mxu0 %v922_v52 }
 0x275   : > { %v770_v54 = vpop.f32.mrb[20].mxu0  ;;  %2496 = vmatprep.subr.bf16.mxu0 %v2768_v39  ;;  %2488 = vmatprep.mubr.msk.bf16.mxu1 %vm2769_vm1, %v2768_v39 }
 0x276   : > { %v771_v55 = vadd.f32 %v3067_v30, %v770_v54  ;;  %v2472_v56 = vpop.f32.mrb[21].mxu0 }
 0x277   : > { %v773_v57 = vpop.f32.mrb[22].mxu0 }
 0x278   : > { %v923_v58 = vpack.c.bf16 %v771_v55, %v771_v55  ;;  %v2473_v59 = vpop.f32.mrb[23].mxu0 }
 0x27a   : > { %v935_v62 = vsel %vm933_vm3, %v923_v58, 0 }
 0x27b   : > { %2497 = vmatpush3.bf16.msra.mxu0 %v935_v62 }
 0x27c   : > { %2489 = vmatmul.mubr.msk.bf16.gmra.mrb[20].mxu1 %vm782_vm2, %v778_v61  ;;  %2526 = vmatprep.subr.bf16.mxu0 %v2768_v39 }
 0x27d   : > { %2514 = vmatprep.mubr.msk.bf16.mxu1 %vm2769_vm1, %v2768_v39 }
 0x33f   : > { %v835_v60 = vpop.f32.mrb[12].mxu1 }
 0x340   : > { %v857_v63 = vmul.f32 0.17677669, %v835_v60  ;;  %v2482_v0 = vpop.f32.mrb[13].mxu1 }
 0x341   : > { %v838_v1 = vpop.f32.mrb[14].mxu1 }
 0x342   : > { %v858_v2 = vmul.f32 0.17677669, %v838_v1  ;;  %v2483_v3 = vpop.f32.mrb[15].mxu1  ;;  %v863_v4 = vsel %vm862_vm4, %v857_v63, -inf }
 0x343   : > { %864 = vmax.xlane.f32.xlu1 %v863_v4 }
 0x344   : > { %v866_v5 = vsel %vm862_vm4, %v858_v2, -inf }
 0x345   : > { %867 = vmax.xlane.f32.xlu0 %v866_v5 }
 0x347   : > { %v843_v6 = vpop.f32.mrb[16].mxu1 }
 0x348   : > { %v859_v7 = vmul.f32 0.17677669, %v843_v6  ;;  %v2486_v8 = vpop.f32.mrb[17].mxu1 }
 0x349   : > { %v846_v9 = vpop.f32.mrb[18].mxu1 }
 0x34a   : > { %v860_v10 = vmul.f32 0.17677669, %v846_v9  ;;  %v2487_v11 = vpop.f32.mrb[19].mxu1  ;;  %v869_v12 = vsel %vm862_vm4, %v859_v7, -inf }
 0x34b   : > { %870 = vmax.xlane.f32.xlu0 %v869_v12 }
 0x34c   : > { %v872_v13 = vsel %vm862_vm4, %v860_v10, -inf }
 0x34f   : > { %873 = vmax.xlane.f32.xlu0 %v872_v13  ;;  %v851_v14 = vpop.f32.mrb[20].mxu1 }
 0x350   : > { %v861_v16 = vmul.f32 0.17677669, %v851_v14  ;;  %v2490_v18 = vpop.f32.mrb[21].mxu1 }
 0x351   : > { %v854_v20 = vpop.f32.mrb[22].mxu1 }
 0x352   : > { %v2491_v21 = vpop.f32.mrb[23].mxu1  ;;  %v875_v22 = vsel %vm862_vm4, %v861_v16, -inf }
 0x353   : > { %876 = vmax.xlane.f32.xlu1 %v875_v22 }
 0x3d0   : > { %v865_v23 = vpop.xlane.xlu1 %864 }
 0x3d1   : > { %v878_v24 = vsub.f32 %v857_v63, %v865_v23 }
 0x3d2   : > { %v868_v25 = vpop.xlane.xlu0 %867 }
 0x3d3   : > { %v883_v26 = vmul.f32 1.442695, %v878_v24  ;;  %v879_v29 = vsub.f32 %v858_v2, %v868_v25  ;;  %v995_v24 = vld [vmem:[%s3759_s5 + $0x10] sm:$0xff]  ;;  %v996_v25 = vld [vmem:[%s3759_s5 + $0x18] sm:$0xff] }
 0x3d5   : > { %2664 = vpow2.f32 %v883_v26  ;;  %v885_v33 = vmul.f32 1.442695, %v879_v29  ;;  %v1001_v26 = vpack.c.bf16 %v996_v25, %v995_v24 }
 0x3d7   : > { %2666 = vpow2.f32 %v885_v33 }
 0x3d8   : > { %v871_v34 = vpop.xlane.xlu0 %870 }
 0x3d9   : > { %v880_v36 = vsub.f32 %v859_v7, %v871_v34 }
 0x3db   : > { %v887_v37 = vmul.f32 1.442695, %v880_v36 }
 0x3dc   : > { %v874_v40 = vpop.xlane.xlu0 %873 }
 0x3dd   : > { %2668 = vpow2.f32 %v887_v37  ;;  %v881_v41 = vsub.f32 %v860_v10, %v874_v40 }
 0x3df   : > { %v2665_v43 = vpop.eup %2664  ;;  %v889_v44 = vmul.f32 1.442695, %v881_v41 }
 0x3e0   : > { %v877_v45 = vpop.xlane.xlu1 %876  ;;  %v893_v47 = vsel %vm862_vm4, %v2665_v43, 0.0 }
 0x3e1   : > { %v2667_v49 = vpop.eup %2666  ;;  %2670 = vpow2.f32 %v889_v44  ;;  %v882_v50 = vsub.f32 %v861_v16, %v877_v45  ;;  %894 = vadd.xlane.f32.xlu0 %v893_v47 }
 0x3e2   : > { %v896_v51 = vsel %vm862_vm4, %v2667_v49, 0.0 }
 0x3e3   : > { %v891_v52 = vmul.f32 1.442695, %v882_v50  ;;  %897 = vadd.xlane.f32.xlu1 %v896_v51 }
 0x3e5   : > { %2672 = vpow2.f32 %v891_v52 }
 0x3e7   : > { %v2669_v54 = vpop.eup %2668 }
 0x3e8   : > { %v899_v53 = vsel %vm862_vm4, %v2669_v54, 0.0 }
 0x3e9   : > { %900 = vadd.xlane.f32.xlu0 %v899_v53 }
 0x3eb   : > { %v2671_v55 = vpop.eup %2670 }
 0x3ec   : > { %v902_v56 = vsel %vm862_vm4, %v2671_v55, 0.0 }
 0x3ed   : > { %903 = vadd.xlane.f32.xlu1 %v902_v56 }
 0x3ef   : > { %v2673_v57 = vpop.eup %2672 }
 0x3f0   : > { %v905_v58 = vsel %vm862_vm4, %v2673_v57, 0.0 }
 0x3f1   : > { %906 = vadd.xlane.f32.xlu0 %v905_v58 }
 0x3fe   : > { %1149 = vrot.lane.b32.xlu1 %v2918_v38, %s2770_s16 }
 0x402   : > { %1153 = vrot.lane.b32.xlu1 %v2908_v35, %s2770_s16 }
 0x406   : > { %1155 = vrot.lane.b32.xlu1 %v2936_v42, %s2770_s16 }
 0x407   : > { %1151 = vrot.lane.b32.xlu0 %v2898_v32, %s2770_s16 }
 0x40a   : > { %1078 = vrot.lane.b32.xlu1 %v2918_v38, %s2771_s17 }
 0x40b   : > { %1080 = vrot.lane.b32.xlu0 %v2898_v32, %s2771_s17  ;;  %v993_v32 = vld [vmem:[%s3759_s5] sm:$0xff] }
 0x40e   : > { %1082 = vrot.lane.b32.xlu1 %v2908_v35, %s2771_s17  ;;  %v994_v35 = vld [vmem:[%s3759_s5 + $0x8] sm:$0xff] }
 0x40f   : > { %1084 = vrot.lane.b32.xlu0 %v2936_v42, %s2771_s17  ;;  %v1000_v38 = vpack.c.bf16 %v994_v35, %v993_v32 }
 0x411   : > { %2511 = vmatpush3.bf16.msra.mxu1 %v1000_v38 }
 0x412   : > { %1161 = vrot.lane.b32.xlu1 %v2954_v48, %s2770_s16  ;;  %2512 = vmatprep.subr.bf16.mxu1 %v2768_v39 }
 0x413   : > { %1090 = vrot.lane.b32.xlu0 %v2954_v48, %s2771_s17 }
 0x415   : > { %2513 = vmatpush3.bf16.msra.mxu1 %v1001_v26 }
 0x416   : > { %1224 = vrot.lane.b32.xlu1 %v2977_v17, %s2771_s17  ;;  %2546 = vmatprep.subr.bf16.mxu1 %v2768_v39 }
 0x417   : > { %1226 = vrot.lane.b32.xlu0 %v2992_v15, %s2771_s17 }
 0x41a   : > { %1228 = vrot.lane.b32.xlu1 %v3002_v27, %s2771_s17 }
 0x41b   : > { %1230 = vrot.lane.b32.xlu0 %v3018_v31, %s2771_s17 }
 0x46e   : > { %v895_v42 = vpop.xlane.xlu0 %894 }
 0x46f   : > { %2674 = vrcp.f32 %v895_v42 }
 0x470   : > { %v898_v48 = vpop.xlane.xlu1 %897 }
 0x471   : > { %2676 = vrcp.f32 %v898_v48 }
 0x476   : > { %v901_v17 = vpop.xlane.xlu0 %900 }
 0x477   : > { %2678 = vrcp.f32 %v901_v17 }
 0x479   : > { %v2675_v15 = vpop.eup %2674 }
 0x47a   : > { %v904_v27 = vpop.xlane.xlu1 %903  ;;  %v913_v59 = vmul.f32 %v2675_v15, %v2665_v43 }
 0x47b   : > { %v2677_v31 = vpop.eup %2676  ;;  %2680 = vrcp.f32 %v904_v27 }
 0x47c   : > { %v914_v61 = vmul.f32 %v2677_v31, %v2667_v49 }
 0x47e   : > { %v918_v62 = vpack.c.bf16 %v914_v61, %v913_v59  ;;  %v907_v60 = vpop.xlane.xlu0 %906  ;;  %v3129_v63 = vpop.permute.xlu1 %1149 }
 0x47f   : > { %2682 = vrcp.f32 %v907_v60 }
 0x480   : > { %2499 = vmatmul.mubr.msk.bf16.vlgmr.msra.gmra.mrb[24].mxu0 %vm862_vm4, %v918_v62 }
 0x481   : > { %2502 = vmatprep.mubr.msk.bf16.mxu0 %vm2769_vm1, %v2768_v39  ;;  %v2679_v1 = vpop.eup %2678 }
 0x482   : > { %v3134_v0 = vpop.permute.xlu1 %1153  ;;  %v3138_v4 = vpop.permute.xlu0 %1151  ;;  %v915_v5 = vmul.f32 %v2679_v1, %v2669_v54 }
 0x485   : > { %v2681_v2 = vpop.eup %2680 }
 0x486   : > { %v3136_v3 = vpop.permute.xlu1 %1155  ;;  %v916_v6 = vmul.f32 %v2681_v2, %v2671_v55  ;;  %v1081_v10 = vpop.permute.xlu0 %1080 }
 0x488   : > { %v919_v7 = vpack.c.bf16 %v916_v6, %v915_v5 }
 0x489   : > { %v2683_v8 = vpop.eup %2682 }
 0x48a   : > { %2503 = vmatmul.mubr.msk.bf16.gmra.mrb[28].mxu0 %vm862_vm4, %v919_v7  ;;  %v1079_v9 = vpop.permute.xlu1 %1078  ;;  %v917_v11 = vmul.f32 %v2683_v8, %v2673_v57  ;;  %v1085_v14 = vpop.permute.xlu0 %1084 }
 0x48b   : > { %2527 = vmatpush3.bf16.msra.mxu0 %v1079_v9  ;;  %2506 = vmatprep.mubr.msk.bf16.mxu0 %vm2769_vm1, %v2768_v39 }
 0x48c   : > { %2528 = vmatprep.subr.bf16.mxu0 %v2768_v39  ;;  %v920_v13 = vpack.c.bf16 %v917_v11, %v917_v11 }
 0x48e   : > { %v1083_v12 = vpop.permute.xlu1 %1082  ;;  %v3151_v18 = vpop.permute.xlu0 %1090 }
 0x48f   : > { %2529 = vmatpush3.bf16.msra.mxu0 %v1081_v10 }
 0x490   : > { %2530 = vmatprep.subr.bf16.mxu0 %v2768_v39 }
 0x492   : > { %2507 = vmatmul.mubr.msk.bf16.gmra.mrb[32].mxu0 %vm862_vm4, %v920_v13  ;;  %v3146_v16 = vpop.permute.xlu1 %1161  ;;  %v1227_v21 = vpop.permute.xlu0 %1226 }
 0x493   : > { %2531 = vmatpush3.bf16.msra.mxu0 %v1083_v12  ;;  %2534 = vmatprep.mubr.msk.bf16.mxu0 %vm2769_vm1, %v2768_v39 }
 0x494   : > { %2532 = vmatprep.subr.bf16.mxu0 %v2768_v39 }
 0x496   : > { %v1225_v20 = vpop.permute.xlu1 %1224  ;;  %v1231_v23 = vpop.permute.xlu0 %1230 }
 0x497   : > { %2533 = vmatpush3.bf16.msra.mxu0 %v1085_v14 }
 0x498   : > { %2566 = vmatprep.subr.bf16.mxu0 %v2768_v39 }
 0x49a   : > { %2535 = vmatmul.mubr.msk.bf16.vlgmr.msra.gmra.mrb[36].mxu0 %vm449_vm0, %v2979_v19  ;;  %v1229_v22 = vpop.permute.xlu1 %1228 }
 0x49b   : > { %2538 = vmatprep.mubr.msk.bf16.mxu0 %vm2769_vm1, %v2768_v39  ;;  %2567 = vmatpush3.bf16.msra.mxu0 %v1225_v20 }
 0x49c   : > { %2568 = vmatprep.subr.bf16.mxu0 %v2768_v39 }
 0x49f   : > { %2569 = vmatpush3.bf16.msra.mxu0 %v1227_v21 }
 0x4a0   : > { %2570 = vmatprep.subr.bf16.mxu0 %v2768_v39 }
 0x4a2   : > { %2539 = vmatmul.mubr.msk.bf16.gmra.mrb[40].mxu0 %vm449_vm0, %v3004_v28 }
 0x4a3   : > { %2542 = vmatprep.mubr.msk.bf16.mxu0 %vm2769_vm1, %v2768_v39  ;;  %2571 = vmatpush3.bf16.msra.mxu0 %v1229_v22 }
 0x4a4   : > { %2572 = vmatprep.subr.bf16.mxu0 %v2768_v39 }
 0x4a7   : > { %2573 = vmatpush3.bf16.msra.mxu0 %v1231_v23 }
 0x4a8   : > { %2604 = vmatprep.subr.bf16.mxu0 %v2768_v39 }
 0x4aa   : > { %2543 = vmatmul.mubr.msk.bf16.gmra.mrb[44].mxu0 %vm449_vm0, %v3033_v46 }
 0x4ab   : > { %2574 = vmatprep.mubr.msk.bf16.mxu0 %vm2769_vm1, %v2768_v39 }
 0x4b2   : > { %2575 = vmatmul.mubr.msk.bf16.vlgmr.msra.gmra.mrb[48].mxu0 %vm449_vm0, %v2979_v19 }
 0x4b3   : > { %2578 = vmatprep.mubr.msk.bf16.mxu0 %vm2769_vm1, %v2768_v39 }
 0x4ba   : > { %2579 = vmatmul.mubr.msk.bf16.gmra.mrb[52].mxu0 %vm449_vm0, %v3004_v28 }
 0x4bb   : > { %2582 = vmatprep.mubr.msk.bf16.mxu0 %vm2769_vm1, %v2768_v39 }
 0x4c2   : > { %2583 = vmatmul.mubr.msk.bf16.gmra.mrb[56].mxu0 %vm449_vm0, %v3033_v46 }
 0x4c3   : > { %2610 = vmatprep.mubr.msk.bf16.mxu0 %vm2769_vm1, %v2768_v39 }
 0x553   : > { %v971_v29 = vpop.f32.mrb[24].mxu0 }
 0x554   : > { %v2500_v33 = vpop.f32.mrb[25].mxu0 }
 0x555   : > { %v974_v34 = vpop.f32.mrb[26].mxu0 }
 0x556   : > { %v997_v36 = vpack.c.bf16 %v974_v34, %v971_v29  ;;  %v2501_v37 = vpop.f32.mrb[27].mxu0 }
 0x558   : > { %2515 = vmatmul.mubr.msk.bf16.vlgmr.msra.gmra.mrb[24].mxu1 %vm782_vm2, %v997_v36 }
 0x559   : > { %2518 = vmatprep.mubr.msk.bf16.mxu1 %vm2769_vm1, %v2768_v39  ;;  %2547 = vmatpush3.bf16.msra.mxu1 %v3129_v63 }
 0x55a   : > { %2548 = vmatprep.subr.bf16.mxu1 %v2768_v39 }
 0x55d   : > { %v979_v40 = vpop.f32.mrb[28].mxu0  ;;  %2549 = vmatpush3.bf16.msra.mxu1 %v3138_v4 }
 0x55e   : > { %v2504_v41 = vpop.f32.mrb[29].mxu0  ;;  %2550 = vmatprep.subr.bf16.mxu1 %v2768_v39 }
 0x55f   : > { %v982_v43 = vpop.f32.mrb[30].mxu0 }
 0x560   : > { %v998_v44 = vpack.c.bf16 %v982_v43, %v979_v40  ;;  %v2505_v45 = vpop.f32.mrb[31].mxu0 }
 0x561   : > { %2551 = vmatpush3.bf16.msra.mxu1 %v3134_v0 }
 0x562   : > { %2519 = vmatmul.mubr.msk.bf16.gmra.mrb[28].mxu1 %vm782_vm2, %v998_v44  ;;  %2552 = vmatprep.subr.bf16.mxu1 %v2768_v39 }
 0x563   : > { %2522 = vmatprep.mubr.msk.bf16.mxu1 %vm2769_vm1, %v2768_v39 }
 0x565   : > { %v987_v47 = vpop.f32.mrb[32].mxu0  ;;  %2553 = vmatpush3.bf16.msra.mxu1 %v3136_v3 }
 0x566   : > { %v2508_v49 = vpop.f32.mrb[33].mxu0  ;;  %2586 = vmatprep.subr.bf16.mxu1 %v2768_v39  ;;  %v999_v51 = vpack.c.bf16 %v987_v47, %v987_v47 }
 0x567   : > { %v990_v50 = vpop.f32.mrb[34].mxu0 }
 0x568   : > { %v2509_v52 = vpop.f32.mrb[35].mxu0 }
 0x56a   : > { %2523 = vmatmul.mubr.msk.bf16.gmra.mrb[32].mxu1 %vm782_vm2, %v999_v51 }
 0x56b   : > { %2554 = vmatprep.mubr.msk.bf16.mxu1 %vm2769_vm1, %v2768_v39 }
 0x56d   : > { %v1127_v54 = vpop.f32.mrb[36].mxu0 }
 0x56e   : > { %v2536_v53 = vpop.f32.mrb[37].mxu0  ;;  %v3207_v56 = vadd.f32 %v1127_v54, %v3151_v18 }
 0x56f   : > { %v1130_v55 = vpop.f32.mrb[38].mxu0 }
 0x570   : > { %v3210_v57 = vadd.f32 %v1130_v55, %v3151_v18  ;;  %v2537_v58 = vpop.f32.mrb[39].mxu0 }
 0x572   : > { %v1295_v32 = vpack.c.bf16 %v3210_v57, %v3207_v56  ;;  %2555 = vmatmul.mubr.msk.bf16.vlgmr.msra.gmra.mrb[36].mxu1 %vm449_vm0, %v2979_v19 }
 0x573   : > { %2558 = vmatprep.mubr.msk.bf16.mxu1 %vm2769_vm1, %v2768_v39 }
 0x575   : > { %v1135_v35 = vpop.f32.mrb[40].mxu0 }
 0x576   : > { %v2540_v38 = vpop.f32.mrb[41].mxu0  ;;  %v3219_v48 = vadd.f32 %v1135_v35, %v3151_v18 }
 0x577   : > { %v1138_v42 = vpop.f32.mrb[42].mxu0 }
 0x578   : > { %v3222_v17 = vadd.f32 %v1138_v42, %v3151_v18  ;;  %v2541_v15 = vpop.f32.mrb[43].mxu0 }
 0x57a   : > { %v1296_v27 = vpack.c.bf16 %v3222_v17, %v3219_v48  ;;  %2559 = vmatmul.mubr.msk.bf16.gmra.mrb[40].mxu1 %vm449_vm0, %v3004_v28 }
 0x57b   : > { %2562 = vmatprep.mubr.msk.bf16.mxu1 %vm2769_vm1, %v2768_v39 }
 0x57d   : > { %v3230_v19 = vpop.f32.mrb[44].mxu0 }
 0x57e   : > { %v2544_v31 = vpop.f32.mrb[45].mxu0 }
 0x57f   : > { %v1146_v59 = vpop.f32.mrb[46].mxu0 }
 0x580   : > { %v2545_v61 = vpop.f32.mrb[47].mxu0 }
 0x582   : > { %2563 = vmatmul.mubr.msk.bf16.gmra.mrb[44].mxu1 %vm449_vm0, %v3033_v46 }
 0x583   : > { %2592 = vmatprep.mubr.msk.bf16.mxu1 %vm2769_vm1, %v2768_v39 }
 0x585   : > { %v3236_v62 = vpop.f32.mrb[48].mxu0 }
 0x586   : > { %v2576_v60 = vpop.f32.mrb[49].mxu0 }
 0x587   : > { %v3238_v63 = vpop.f32.mrb[50].mxu0 }
 0x588   : > { %v2577_v28 = vpop.f32.mrb[51].mxu0 }
 0x58d   : > { %v3240_v0 = vpop.f32.mrb[52].mxu0 }
 0x58e   : > { %v2580_v1 = vpop.f32.mrb[53].mxu0 }
 0x58f   : > { %v3242_v2 = vpop.f32.mrb[54].mxu0 }
 0x590   : > { %v2581_v3 = vpop.f32.mrb[55].mxu0 }
 0x595   : > { %v3244_v4 = vpop.f32.mrb[56].mxu0 }
 0x596   : > { %v2584_v5 = vpop.f32.mrb[57].mxu0 }
 0x597   : > { %v1292_v6 = vpop.f32.mrb[58].mxu0 }
 0x598   : > { %v2585_v46 = vpop.f32.mrb[59].mxu0 }
 0x62b   : > { %v3246_v7 = vpop.f32.mrb[24].mxu1 }
 0x62c   : > { %v2516_v8 = vpop.f32.mrb[25].mxu1 }
 0x62d   : > { %v3248_v9 = vpop.f32.mrb[26].mxu1 }
 0x62e   : > { %v2517_v10 = vpop.f32.mrb[27].mxu1 }
 0x635   : > { %v3250_v11 = vpop.f32.mrb[28].mxu1 }
 0x636   : > { %v2520_v12 = vpop.f32.mrb[29].mxu1 }
 0x637   : > { %v3252_v13 = vpop.f32.mrb[30].mxu1 }
 0x638   : > { %v2521_v14 = vpop.f32.mrb[31].mxu1 }
 0x63d   : > { %v3254_v20 = vpop.f32.mrb[32].mxu1 }
 0x63e   : > { %v2524_v21 = vpop.f32.mrb[33].mxu1 }
 0x63f   : > { %v1064_v22 = vpop.f32.mrb[34].mxu1 }
 0x640   : > { %v2525_v23 = vpop.f32.mrb[35].mxu1 }
 0x645   : > { %v1198_v24 = vpop.f32.mrb[36].mxu1 }
 0x646   : > { %v2556_v25 = vpop.f32.mrb[37].mxu1  ;;  %v1199_v29 = vadd.f32 %v1198_v24, %v3146_v16 }
 0x647   : > { %v1201_v26 = vpop.f32.mrb[38].mxu1 }
 0x648   : > { %v1202_v33 = vadd.f32 %v1201_v26, %v3146_v16  ;;  %v2557_v34 = vpop.f32.mrb[39].mxu1 }
 0x64a   : > { %v1298_v36 = vpack.c.bf16 %v1202_v33, %v1199_v29 }
 0x64c   : > { %v1311_v37 = vsel %vm782_vm2, %v1298_v36, 0 }
 0x64d   : > { %v1206_v40 = vpop.f32.mrb[40].mxu1  ;;  %2587 = vmatpush3.bf16.xpose.msra.mxu1 %v1311_v37 }
 0x64e   : > { %v2560_v41 = vpop.f32.mrb[41].mxu1  ;;  %2588 = vmatprep.subr.bf16.mxu1 %v2768_v39  ;;  %v1207_v44 = vadd.f32 %v1206_v40, %v3146_v16 }
 0x64f   : > { %v1209_v43 = vpop.f32.mrb[42].mxu1 }
 0x650   : > { %v1210_v45 = vadd.f32 %v1209_v43, %v3146_v16  ;;  %v2561_v47 = vpop.f32.mrb[43].mxu1 }
 0x652   : > { %v1299_v49 = vpack.c.bf16 %v1210_v45, %v1207_v44 }
 0x654   : > { %v1314_v50 = vsel %vm782_vm2, %v1299_v49, 0 }
 0x655   : > { %v1214_v51 = vpop.f32.mrb[44].mxu1  ;;  %2589 = vmatpush3.bf16.xpose.msra.mxu1 %v1314_v50 }
 0x656   : > { %v1215_v52 = vadd.f32 %v1214_v51, %v3146_v16  ;;  %v2564_v54 = vpop.f32.mrb[45].mxu1  ;;  %2590 = vmatprep.subr.bf16.mxu1 %v2768_v39  ;;  %v1144_v16 = vadd.f32 %v3230_v19, %v3151_v18 }
 0x657   : > { %v1217_v53 = vpop.f32.mrb[46].mxu1 }
 0x658   : > { %v1300_v55 = vpack.c.bf16 %v1215_v52, %v1215_v52  ;;  %v2565_v58 = vpop.f32.mrb[47].mxu1  ;;  %v1297_v38 = vpack.c.bf16 %v1144_v16, %v1144_v16 }
 0x659   : > { %v1510_v58 = vld [vmem:[%s3759_s5 + $0x28] sm:$0xff] }
 0x65a   : > { %v1317_v35 = vsel %vm782_vm2, %v1300_v55, 0  ;;  %v1509_v55 = vld [vmem:[%s3759_s5 + $0x20] sm:$0xff] }
 0x65d   : > { %2591 = vmatpush3.bf16.xpose.msra.mxu1 %v1317_v35  ;;  %v1516_v35 = vpack.c.bf16 %v1510_v58, %v1509_v55  ;;  %v2755_v58 = vld [vmem:[%s2860_s30 + $0x8] sm:$0xff] }
 0x65e   : > { %2622 = vmatprep.subr.bf16.mxu1 %v2768_v39 }
 0x664   : > { %2593 = vmatmul.mubr.msk.bf16.vlgmr.msra.gmra.mrb[48].mxu1 %vm782_vm2, %v1295_v32 }
 0x665   : > { %2596 = vmatprep.mubr.msk.bf16.mxu1 %vm2769_vm1, %v2768_v39  ;;  %2623 = vmatpush3.bf16.msra.mxu1 %v1516_v35 }
 0x666   : > { %2624 = vmatprep.subr.bf16.mxu1 %v2768_v39 }
 0x66c   : > { %2597 = vmatmul.mubr.msk.bf16.gmra.mrb[52].mxu1 %vm782_vm2, %v1296_v27 }
 0x66d   : > { %2600 = vmatprep.mubr.msk.bf16.mxu1 %vm2769_vm1, %v2768_v39 }
 0x674   : > { %2601 = vmatmul.mubr.msk.bf16.gmra.mrb[56].mxu1 %vm782_vm2, %v1297_v38 }
 0x675   : > { %2626 = vmatprep.mubr.msk.bf16.mxu1 %vm2769_vm1, %v2768_v39 }
 0x737   : > { %v1353_v56 = vpop.f32.mrb[48].mxu1 }
 0x738   : > { %v1375_v57 = vmul.f32 0.17677669, %v1353_v56  ;;  %v2594_v32 = vpop.f32.mrb[49].mxu1 }
 0x739   : > { %v1356_v42 = vpop.f32.mrb[50].mxu1 }
 0x73a   : > { %v1376_v15 = vmul.f32 0.17677669, %v1356_v42  ;;  %v2595_v48 = vpop.f32.mrb[51].mxu1  ;;  %v1380_v17 = vsel %vm862_vm4, %v1375_v57, -inf }
 0x73b   : > { %1381 = vmax.xlane.f32.xlu1 %v1380_v17 }
 0x73c   : > { %v1383_v27 = vsel %vm862_vm4, %v1376_v15, -inf }
 0x73d   : > { %1384 = vmax.xlane.f32.xlu0 %v1383_v27 }
 0x73f   : > { %v1361_v31 = vpop.f32.mrb[52].mxu1 }
 0x740   : > { %v1377_v18 = vmul.f32 0.17677669, %v1361_v31  ;;  %v2598_v19 = vpop.f32.mrb[53].mxu1 }
 0x741   : > { %v1364_v59 = vpop.f32.mrb[54].mxu1 }
 0x742   : > { %v1378_v61 = vmul.f32 0.17677669, %v1364_v59  ;;  %v2599_v60 = vpop.f32.mrb[55].mxu1  ;;  %v1386_v28 = vsel %vm862_vm4, %v1377_v18, -inf }
 0x743   : > { %1387 = vmax.xlane.f32.xlu0 %v1386_v28 }
 0x744   : > { %v1389_v1 = vsel %vm862_vm4, %v1378_v61, -inf }
 0x747   : > { %1390 = vmax.xlane.f32.xlu0 %v1389_v1  ;;  %v1369_v3 = vpop.f32.mrb[56].mxu1 }
 0x748   : > { %v1379_v5 = vmul.f32 0.17677669, %v1369_v3  ;;  %v2602_v6 = vpop.f32.mrb[57].mxu1 }
 0x749   : > { %v1372_v46 = vpop.f32.mrb[58].mxu1 }
 0x74a   : > { %v2603_v8 = vpop.f32.mrb[59].mxu1  ;;  %v1392_v10 = vsel %vm862_vm4, %v1379_v5, -inf }
 0x74b   : > { %1393 = vmax.xlane.f32.xlu1 %v1392_v10  ;;  %v1511_v8 = vld [vmem:[%s3759_s5 + $0x30] sm:$0xff]  ;;  %v1512_v10 = vld [vmem:[%s3759_s5 + $0x38] sm:$0xff] }
 0x7c8   : > { %v1382_v12 = vpop.xlane.xlu1 %1381 }
 0x7c9   : > { %v1395_v14 = vsub.f32 %v1375_v57, %v1382_v12  ;;  %v1517_v12 = vpack.c.bf16 %v1512_v10, %v1511_v8 }
 0x7ca   : > { %v1385_v21 = vpop.xlane.xlu0 %1384 }
 0x7cb   : > { %v1400_v22 = vmul.f32 1.442695, %v1395_v14  ;;  %v1396_v23 = vsub.f32 %v1376_v15, %v1385_v21  ;;  %2625 = vmatpush3.bf16.msra.mxu1 %v1517_v12 }
 0x7cd   : > { %2684 = vpow2.f32 %v1400_v22  ;;  %v1402_v24 = vmul.f32 1.442695, %v1396_v23 }
 0x7cf   : > { %2686 = vpow2.f32 %v1402_v24 }
 0x7d0   : > { %v1388_v25 = vpop.xlane.xlu0 %1387 }
 0x7d1   : > { %v1397_v26 = vsub.f32 %v1377_v18, %v1388_v25 }
 0x7d3   : > { %v1404_v29 = vmul.f32 1.442695, %v1397_v26 }
 0x7d4   : > { %v1391_v33 = vpop.xlane.xlu0 %1390 }
 0x7d5   : > { %2688 = vpow2.f32 %v1404_v29  ;;  %v1398_v34 = vsub.f32 %v1378_v61, %v1391_v33 }
 0x7d7   : > { %v2685_v36 = vpop.eup %2684  ;;  %v1406_v37 = vmul.f32 1.442695, %v1398_v34 }
 0x7d8   : > { %v1394_v40 = vpop.xlane.xlu1 %1393  ;;  %v1410_v41 = vsel %vm862_vm4, %v2685_v36, 0.0 }
 0x7d9   : > { %v2687_v43 = vpop.eup %2686  ;;  %2690 = vpow2.f32 %v1406_v37  ;;  %v1399_v44 = vsub.f32 %v1379_v5, %v1394_v40  ;;  %1411 = vadd.xlane.f32.xlu0 %v1410_v41 }
 0x7da   : > { %v1413_v45 = vsel %vm862_vm4, %v2687_v43, 0.0 }
 0x7db   : > { %v1408_v47 = vmul.f32 1.442695, %v1399_v44  ;;  %1414 = vadd.xlane.f32.xlu1 %v1413_v45  ;;  %v2277_v44 = vld [vmem:[%s3760_s6] ss:$0 sm:$0xff] }
 0x7dc   : > { %v1073_v45 = vadd.f32 %v2277_v44, %v3246_v7  ;;  %v1075_v7 = vadd.f32 %v2277_v44, %v3250_v11 }
 0x7dd   : > { %2692 = vpow2.f32 %v1408_v47 }
 0x7df   : > { %v2689_v49 = vpop.eup %2688 }
 0x7e0   : > { %v1416_v50 = vsel %vm862_vm4, %v2689_v49, 0.0 }
 0x7e1   : > { %1417 = vadd.xlane.f32.xlu0 %v1416_v50 }
 0x7e3   : > { %v2691_v51 = vpop.eup %2690 }
 0x7e4   : > { %v1419_v52 = vsel %vm862_vm4, %v2691_v51, 0.0 }
 0x7e5   : > { %1420 = vadd.xlane.f32.xlu1 %v1419_v52  ;;  %v2754_v52 = vld [vmem:[%s2860_s30] sm:$0xff] }
 0x7e7   : > { %v2693_v54 = vpop.eup %2692 }
 0x7e8   : > { %v1422_v53 = vsel %vm862_vm4, %v2693_v54, 0.0 }
 0x7e9   : > { %1423 = vadd.xlane.f32.xlu1 %v1422_v53 }
 0x7f7   : > { %1236 = vrot.lane.b32.xlu0 %v3067_v30, %s2771_s17  ;;  %s440_s17 = scalar_lea.vmem %s3767_s13, %s2638_s27 }
 0x866   : > { %v1412_v16 = vpop.xlane.xlu0 %1411 }
 0x868   : > { %v1415_v38 = vpop.xlane.xlu1 %1414 }
 0x869   : > { %2694 = vrcp.f32 %v1415_v38  ;;  %v1076_v38 = vadd.f32 %v2277_v44, %v3252_v13  ;;  %v1077_v13 = vadd.f32 %v2277_v44, %v3254_v20 }
 0x86a   : > { %2696 = vrcp.f32 %v1412_v16 }
 0x86e   : > { %v1418_v56 = vpop.xlane.xlu0 %1417 }
 0x872   : > { %v1237_v57 = vpop.permute.xlu0 %1236  ;;  %v1421_v48 = vpop.xlane.xlu1 %1420 }
 0x873   : > { %v1274_v30 = vadd.f32 %v3236_v62, %v1237_v57  ;;  %v1277_v32 = vadd.f32 %v3238_v63, %v1237_v57  ;;  %v1282_v42 = vadd.f32 %v3240_v0, %v1237_v57  ;;  %v1285_v15 = vadd.f32 %v3242_v2, %v1237_v57  ;;  %v2695_v18 = vpop.eup %2694 }
 0x874   : > { %v1290_v31 = vadd.f32 %v3244_v4, %v1237_v57  ;;  %2698 = vrcp.f32 %v1421_v48  ;;  %v2697_v59 = vpop.eup %2696  ;;  %v1431_v62 = vmul.f32 %v2695_v18, %v2687_v43 }
 0x875   : > { %v1438_v17 = vpack.c.bf16 %v1277_v32, %v1274_v30  ;;  %v1439_v27 = vpack.c.bf16 %v1285_v15, %v1282_v42  ;;  %2700 = vrcp.f32 %v1418_v56  ;;  %v1430_v0 = vmul.f32 %v2697_v59, %v2685_v36  ;;  %v2756_v42 = vld [vmem:[%s2860_s30 + $0x10] sm:$0xff] }
 0x876   : > { %v1440_v19 = vpack.c.bf16 %v1290_v31, %v1290_v31  ;;  %v1424_v63 = vpop.xlane.xlu1 %1423 }
 0x877   : > { %2605 = vmatpush3.bf16.msra.mxu0 %v1438_v17  ;;  %2702 = vrcp.f32 %v1424_v63  ;;  %v1435_v61 = vpack.c.bf16 %v1431_v62, %v1430_v0  ;;  %v2758_v0 = vld [vmem:[%s2860_s30 + $0x20] sm:$0xff] }
 0x878   : > { %2606 = vmatprep.subr.bf16.mxu0 %v2768_v39  ;;  %v1451_v2 = vsel %vm933_vm3, %v1440_v19, 0 }
 0x87b   : > { %2607 = vmatpush3.bf16.msra.mxu0 %v1439_v27  ;;  %v2757_v27 = vld [vmem:[%s2860_s30 + $0x18] sm:$0xff] }
 0x87c   : > { %2608 = vmatprep.subr.bf16.mxu0 %v2768_v39 }
 0x87e   : > { %v2699_v4 = vpop.eup %2698 }
 0x87f   : > { %2609 = vmatpush3.bf16.msra.mxu0 %v1451_v2  ;;  %v2701_v60 = vpop.eup %2700  ;;  %v1433_v28 = vmul.f32 %v2699_v4, %v2691_v51 }
 0x880   : > { %v1432_v1 = vmul.f32 %v2701_v60, %v2689_v49  ;;  %v1074_v49 = vadd.f32 %v2277_v44, %v3248_v9  ;;  %v1685_v44 = vld [vmem:[%s3763_s9 + $0x18] sm:$0xff] }
 0x881   : > { %v2703_v5 = vpop.eup %2702 }
 0x882   : > { %2611 = vmatmul.mubr.msk.bf16.vlgmr.msra.gmra.mrb[60].mxu0 %vm862_vm4, %v1435_v61  ;;  %v1436_v3 = vpack.c.bf16 %v1433_v28, %v1432_v1  ;;  %v1434_v6 = vmul.f32 %v2703_v5, %v2693_v54 }
 0x883   : > { %2614 = vmatprep.mubr.msk.bf16.mxu0 %vm2769_vm1, %v2768_v39 }
 0x884   : > { %v1437_v46 = vpack.c.bf16 %v1434_v6, %v1434_v6 }
 0x88a   : > { %2615 = vmatmul.mubr.msk.bf16.gmra.mrb[64].mxu0 %vm862_vm4, %v1436_v3 }
 0x88b   : > { %2618 = vmatprep.mubr.msk.bf16.mxu0 %vm2769_vm1, %v2768_v39 }
 0x892   : > { %2619 = vmatmul.mubr.msk.bf16.gmra.mrb[68].mxu0 %vm862_vm4, %v1437_v46 }
 0x955   : > { %v1487_v14 = vpop.f32.mrb[60].mxu0 }
 0x956   : > { %v2612_v21 = vpop.f32.mrb[61].mxu0 }
 0x957   : > { %v1490_v22 = vpop.f32.mrb[62].mxu0 }
 0x958   : > { %v1513_v23 = vpack.c.bf16 %v1490_v22, %v1487_v14  ;;  %v2613_v24 = vpop.f32.mrb[63].mxu0 }
 0x95a   : > { %2627 = vmatmul.mubr.msk.bf16.vlgmr.msra.gmra.mrb[60].mxu1 %vm782_vm2, %v1513_v23 }
 0x95b   : > { %2630 = vmatprep.mubr.msk.bf16.mxu1 %vm2769_vm1, %v2768_v39 }
 0x95d   : > { %v1495_v25 = vpop.f32.mrb[64].mxu0 }
 0x95e   : > { %v2616_v26 = vpop.f32.mrb[65].mxu0 }
 0x95f   : > { %v1498_v29 = vpop.f32.mrb[66].mxu0 }
 0x960   : > { %v1514_v33 = vpack.c.bf16 %v1498_v29, %v1495_v25  ;;  %v2617_v34 = vpop.f32.mrb[67].mxu0 }
 0x962   : > { %2631 = vmatmul.mubr.msk.bf16.gmra.mrb[64].mxu1 %vm782_vm2, %v1514_v33 }
 0x963   : > { %2634 = vmatprep.mubr.msk.bf16.mxu1 %vm2769_vm1, %v2768_v39 }
 0x965   : > { %v1503_v36 = vpop.f32.mrb[68].mxu0 }
 0x966   : > { %v2620_v37 = vpop.f32.mrb[69].mxu0  ;;  %v1515_v41 = vpack.c.bf16 %v1503_v36, %v1503_v36 }
 0x967   : > { %v1506_v40 = vpop.f32.mrb[70].mxu0 }
 0x968   : > { %v2621_v43 = vpop.f32.mrb[71].mxu0 }
 0x969   : > { %v1683_v43 = vld [vmem:[%s3763_s9 + $0x8] sm:$0xff] }
 0x96a   : > { %2635 = vmatmul.mubr.msk.bf16.gmra.mrb[68].mxu1 %vm782_vm2, %v1515_v41 }
 0xa2d   : > { %v1561_v47 = vpop.f32.mrb[60].mxu1 }
 0xa2e   : > { %v1583_v50 = vadd.f32 %v1561_v47, %v1073_v45  ;;  %v2628_v51 = vpop.f32.mrb[61].mxu1  ;;  %v1702_v45 = vpack.c.bf16 %v1685_v44, %v1683_v43  ;;  %v1682_v47 = vld [vmem:[%s3763_s9] sm:$0xff] }
 0xa2f   : > { %v1564_v39 = vpop.f32.mrb[62].mxu1  ;;  %v1687_v51 = vld [vmem:[%s3763_s9 + $0x28] sm:$0xff] }
 0xa30   : > { %v3337_v54 = vadd.f32 %v2754_v52, %v1583_v50  ;;  %v1584_v53 = vadd.f32 %v1564_v39, %v1074_v49  ;;  %v2629_v55 = vpop.f32.mrb[63].mxu1  ;;  %v1684_v49 = vld [vmem:[%s3763_s9 + $0x10] sm:$0xff]  ;;  %1730 = vmatprep.subr.bf16.mxu0 %v1702_v45  ;;  %v1689_v39 = vld [vmem:[%s3763_s9 + $0x38] sm:$0xff] }
 0xa31   : > { %v1701_v50 = vpack.c.bf16 %v1684_v49, %v1682_v47  ;;  %v1704_v52 = vpack.c.bf16 %v1689_v39, %v1687_v51  ;;  %v1688_v55 = vld [vmem:[%s3763_s9 + $0x30] sm:$0xff] }
 0xa32   : > { %v3340_v35 = vadd.f32 %v2755_v58, %v1584_v53  ;;  %v1595_v16 = vsel %vm449_vm0, %v3337_v54, 0.0  ;;  %v1686_v53 = vld [vmem:[%s3763_s9 + $0x20] sm:$0xff] }
 0xa33   : > { %1596 = vadd.xlane.f32.xlu1 %v1595_v16  ;;  %1731 = vmatpush1.bf16.msra.mxu0 %v1701_v50  ;;  %v1703_v58 = vpack.c.bf16 %v1688_v55, %v1686_v53  ;;  %v1691_v16 = vld [vmem:[%s3763_s9 + $0x48] sm:$0xff]  ;;  %v2061_v53 = vld [vmem:[%s3765_s11] sm:$0xff] }
 0xa34   : > { %v1598_v30 = vsel %vm449_vm0, %v3340_v35, 0.0  ;;  %1732 = vmatprep.subr.bf16.mxu0 %v1704_v52  ;;  %v2078_v52 = vld [vmem:[%s3765_s11 + $0x88] sm:$0xff] }
 0xa35   : > { %v1569_v9 = vpop.f32.mrb[64].mxu1  ;;  %v2062_v55 = vld [vmem:[%s3765_s11 + $0x8] sm:$0xff] }
 0xa36   : > { %v1585_v56 = vadd.f32 %v1569_v9, %v1075_v7  ;;  %v2632_v57 = vpop.f32.mrb[65].mxu1  ;;  %v1693_v7 = vld [vmem:[%s3763_s9 + $0x58] sm:$0xff] }
 0xa37   : > { %1599 = vadd.xlane.f32.xlu1 %v1598_v30  ;;  %v1572_v32 = vpop.f32.mrb[66].mxu1  ;;  %1733 = vmatpush1.bf16.msra.mxu0 %v1703_v58  ;;  %v1706_v9 = vpack.c.bf16 %v1693_v7, %v1691_v16  ;;  %v1695_v30 = vld [vmem:[%s3763_s9 + $0x68] sm:$0xff]  ;;  %v2099_v58 = vpack.c.bf16 %v2062_v55, %v2061_v53  ;;  %v2079_v16 = vld [vmem:[%s3765_s11 + $0x90] sm:$0xff]  ;;  %v2080_v7 = vld [vmem:[%s3765_s11 + $0x98] sm:$0xff] }
 0xa38   : > { %v3349_v15 = vadd.f32 %v2756_v42, %v1585_v56  ;;  %v1586_v48 = vadd.f32 %v1572_v32, %v1076_v38  ;;  %v2633_v17 = vpop.f32.mrb[67].mxu1  ;;  %v1690_v38 = vld [vmem:[%s3763_s9 + $0x40] sm:$0xff]  ;;  %v1692_v56 = vld [vmem:[%s3763_s9 + $0x50] sm:$0xff]  ;;  %v1697_v32 = vld [vmem:[%s3763_s9 + $0x78] sm:$0xff] }
 0xa39   : > { %v1705_v57 = vpack.c.bf16 %v1692_v56, %v1690_v38  ;;  %1734 = vmatprep.subr.bf16.mxu0 %v1706_v9  ;;  %v1708_v42 = vpack.c.bf16 %v1697_v32, %v1695_v30  ;;  %v1696_v17 = vld [vmem:[%s3763_s9 + $0x70] sm:$0xff]  ;;  %v2108_v9 = vpack.c.bf16 %v2080_v7, %v2079_v16  ;;  %v2064_v56 = vld [vmem:[%s3765_s11 + $0x18] sm:$0xff]  ;;  %v2081_v30 = vld [vmem:[%s3765_s11 + $0xa0] sm:$0xff] }
 0xa3a   : > { %v3352_v31 = vadd.f32 %v2757_v27, %v1586_v48  ;;  %v1601_v11 = vsel %vm449_vm0, %v3349_v15, 0.0  ;;  %v1694_v48 = vld [vmem:[%s3763_s9 + $0x60] sm:$0xff]  ;;  %v2063_v38 = vld [vmem:[%s3765_s11 + $0x10] sm:$0xff]  ;;  %v2082_v32 = vld [vmem:[%s3765_s11 + $0xa8] sm:$0xff] }
 0xa3b   : > { %1602 = vadd.xlane.f32.xlu1 %v1601_v11  ;;  %1735 = vmatpush1.bf16.msra.mxu0 %v1705_v57  ;;  %v1707_v27 = vpack.c.bf16 %v1696_v17, %v1694_v48  ;;  %v2772_v11 = vmov 0   ;;  %v2100_v57 = vpack.c.bf16 %v2064_v56, %v2063_v38  ;;  %v2065_v48 = vld [vmem:[%s3765_s11 + $0x20] sm:$0xff]  ;;  %v2066_v17 = vld [vmem:[%s3765_s11 + $0x28] sm:$0xff] }
 0xa3c   : > { %v1604_v62 = vsel %vm449_vm0, %v3352_v31, 0.0  ;;  %1736 = vmatprep.subr.bf16.mxu0 %v1708_v42  ;;  %1762 = vmatprep.mubr.bf16.mxu0 %v2772_v11  ;;  %v2109_v42 = vpack.c.bf16 %v2082_v32, %v2081_v30 }
 0xa3d   : > { %v1577_v18 = vpop.f32.mrb[68].mxu1 }
 0xa3e   : > { %v1587_v19 = vadd.f32 %v1577_v18, %v1077_v13  ;;  %v2636_v59 = vpop.f32.mrb[69].mxu1 }
 0xa3f   : > { %1605 = vadd.xlane.f32.xlu1 %v1604_v62  ;;  %v1580_v63 = vpop.f32.mrb[70].mxu1  ;;  %1737 = vmatpush1.bf16.msra.mxu0 %v1707_v27  ;;  %v2101_v27 = vpack.c.bf16 %v2066_v17, %v2065_v48 }
 0xa40   : > { %v3360_v2 = vadd.f32 %v2758_v0, %v1587_v19  ;;  %v2637_v61 = vpop.f32.mrb[71].mxu1 }
 0xa42   : > { %v1607_v4 = vsel %vm449_vm0, %v3360_v2, 0.0 }
 0xa43   : > { %1608 = vadd.xlane.f32.xlu1 %v1607_v4 }
 0xac0   : > { %v1597_v60 = vpop.xlane.xlu1 %1596 }
 0xac1   : > { %v1610_v28 = vmul.f32 0.015625, %v1597_v60 }
 0xac3   : > { %v3365_v20 = vsub.f32 %v3337_v54, %v1610_v28 }
 0xac4   : > { %v1600_v1 = vpop.xlane.xlu1 %1599 }
 0xac5   : > { %v1611_v3 = vmul.f32 0.015625, %v1600_v1  ;;  %v1620_v5 = vmul.f32 %v3365_v20, %v3365_v20 }
 0xac7   : > { %v3370_v6 = vsub.f32 %v3340_v35, %v1611_v3  ;;  %v1625_v46 = vsel %vm449_vm0, %v1620_v5, 0.0 }
 0xac8   : > { %1626 = vadd.xlane.f32.xlu0 %v1625_v46  ;;  %v1603_v8 = vpop.xlane.xlu1 %1602 }
 0xac9   : > { %v1612_v10 = vmul.f32 0.015625, %v1603_v8  ;;  %v1621_v12 = vmul.f32 %v3370_v6, %v3370_v6  ;;  %v2296_v8 = vld [vmem:[%s3761_s7] ss:$0 sm:$0xff] }
 0xacb   : > { %v3376_v14 = vsub.f32 %v3349_v15, %v1612_v10  ;;  %v1628_v21 = vsel %vm449_vm0, %v1621_v12, 0.0 }
 0xacc   : > { %v1606_v22 = vpop.xlane.xlu1 %1605  ;;  %1629 = vadd.xlane.f32.xlu1 %v1628_v21 }
 0xacd   : > { %v1613_v23 = vmul.f32 0.015625, %v1606_v22  ;;  %v1622_v24 = vmul.f32 %v3376_v14, %v3376_v14 }
 0xacf   : > { %v3382_v25 = vsub.f32 %v3352_v31, %v1613_v23  ;;  %v1631_v26 = vsel %vm449_vm0, %v1622_v24, 0.0  ;;  %v2297_v24 = vld [vmem:[%s3762_s8] ss:$0 sm:$0xff] }
 0xad0   : > { %1632 = vadd.xlane.f32.xlu1 %v1631_v26  ;;  %v1609_v29 = vpop.xlane.xlu1 %1608 }
 0xad1   : > { %v1614_v33 = vmul.f32 0.015625, %v1609_v29  ;;  %v1623_v34 = vmul.f32 %v3382_v25, %v3382_v25 }
 0xad3   : > { %v3388_v36 = vsub.f32 %v3360_v2, %v1614_v33  ;;  %v1634_v37 = vsel %vm449_vm0, %v1623_v34, 0.0 }
 0xad4   : > { %1635 = vadd.xlane.f32.xlu1 %v1634_v37 }
 0xad5   : > { %v1624_v40 = vmul.f32 %v3388_v36, %v3388_v36 }
 0xad7   : > { %v1637_v41 = vsel %vm449_vm0, %v1624_v40, 0.0 }
 0xad8   : > { %1638 = vadd.xlane.f32.xlu1 %v1637_v41 }
 0xb55   : > { %v1627_v13 = vpop.xlane.xlu0 %1626 }
 0xb56   : > { %v1640_v18 = vmul.f32 0.015625, %v1627_v13  ;;  %v2084_v13 = vld [vmem:[%s3765_s11 + $0xb8] sm:$0xff] }
 0xb58   : > { %v1645_v19 = vadd.f32 1e-05, %v1640_v18 }
 0xb59   : > { %v1630_v59 = vpop.xlane.xlu1 %1629 }
 0xb5a   : > { %2704 = vrsqrt.f32 %v1645_v19  ;;  %v1641_v62 = vmul.f32 0.015625, %v1630_v59  ;;  %v2067_v19 = vld [vmem:[%s3765_s11 + $0x30] sm:$0xff]  ;;  %v2068_v59 = vld [vmem:[%s3765_s11 + $0x38] sm:$0xff] }
 0xb5c   : > { %v1646_v63 = vadd.f32 1e-05, %v1641_v62  ;;  %v2102_v62 = vpack.c.bf16 %v2068_v59, %v2067_v19 }
 0xb5d   : > { %v1633_v0 = vpop.xlane.xlu1 %1632 }
 0xb5e   : > { %2706 = vrsqrt.f32 %v1646_v63  ;;  %v1642_v61 = vmul.f32 0.015625, %v1633_v0  ;;  %v2085_v63 = vld [vmem:[%s3765_s11 + $0xc0] sm:$0xff]  ;;  %v2086_v0 = vld [vmem:[%s3765_s11 + $0xc8] sm:$0xff] }
 0xb60   : > { %v1647_v4 = vadd.f32 1e-05, %v1642_v61  ;;  %v2111_v61 = vpack.c.bf16 %v2086_v0, %v2085_v63 }
 0xb61   : > { %v1636_v60 = vpop.xlane.xlu1 %1635 }
 0xb62   : > { %2708 = vrsqrt.f32 %v1647_v4  ;;  %v1643_v28 = vmul.f32 0.015625, %v1636_v60  ;;  %v2069_v4 = vld [vmem:[%s3765_s11 + $0x40] sm:$0xff]  ;;  %v2070_v60 = vld [vmem:[%s3765_s11 + $0x48] sm:$0xff] }
 0xb64   : > { %v2705_v1 = vpop.eup %2704  ;;  %v1648_v3 = vadd.f32 1e-05, %v1643_v28  ;;  %v2103_v28 = vpack.c.bf16 %v2070_v60, %v2069_v4 }
 0xb65   : > { %v1655_v5 = vmul.f32 %v2705_v1, %v3365_v20  ;;  %v1639_v46 = vpop.xlane.xlu1 %1638  ;;  %v2087_v1 = vld [vmem:[%s3765_s11 + $0xd0] sm:$0xff] }
 0xb66   : > { %2710 = vrsqrt.f32 %v1648_v3  ;;  %v1644_v10 = vmul.f32 0.015625, %v1639_v46  ;;  %v2088_v3 = vld [vmem:[%s3765_s11 + $0xd8] sm:$0xff]  ;;  %v2071_v46 = vld [vmem:[%s3765_s11 + $0x50] sm:$0xff] }
 0xb67   : > { %v1666_v22 = vmul.f32 %v2296_v8, %v1655_v5  ;;  %v2112_v5 = vpack.c.bf16 %v2088_v3, %v2087_v1 }
 0xb68   : > { %v2707_v12 = vpop.eup %2706  ;;  %v1649_v21 = vadd.f32 1e-05, %v1644_v10 }
 0xb69   : > { %v1656_v23 = vmul.f32 %v2707_v12, %v3370_v6  ;;  %v1677_v20 = vadd.f32 %v2297_v24, %v1666_v22  ;;  %v2089_v12 = vld [vmem:[%s3765_s11 + $0xe0] sm:$0xff] }
 0xb6a   : > { %2712 = vrsqrt.f32 %v1649_v21  ;;  %v2090_v21 = vld [vmem:[%s3765_s11 + $0xe8] sm:$0xff] }
 0xb6b   : > { %v1667_v26 = vmul.f32 %v2296_v8, %v1656_v23  ;;  %v2113_v22 = vpack.c.bf16 %v2090_v21, %v2089_v12  ;;  %v2073_v23 = vld [vmem:[%s3765_s11 + $0x60] sm:$0xff] }
 0xb6c   : > { %v2709_v29 = vpop.eup %2708 }
 0xb6d   : > { %v1678_v33 = vadd.f32 %v2297_v24, %v1667_v26  ;;  %v1657_v34 = vmul.f32 %v2709_v29, %v3376_v14  ;;  %v2091_v29 = vld [vmem:[%s3765_s11 + $0xf0] sm:$0xff] }
 0xb6f   : > { %v1698_v37 = vpack.c.bf16 %v1678_v33, %v1677_v20  ;;  %v1668_v43 = vmul.f32 %v2296_v8, %v1657_v34  ;;  %v2092_v20 = vld [vmem:[%s3765_s11 + $0xf8] sm:$0xff]  ;;  %v2075_v34 = vld [vmem:[%s3765_s11 + $0x70] sm:$0xff] }
 0xb70   : > { %v2711_v40 = vpop.eup %2710  ;;  %v2114_v33 = vpack.c.bf16 %v2092_v20, %v2091_v29  ;;  %v2773_v20 = vmov -1.0  }
 0xb71   : > { %v1658_v41 = vmul.f32 %v2711_v40, %v3382_v25  ;;  %2298 = vmatmul.mubr.msk.bf16.vlgmr.msra.gmra.mrb[72].mxu0 %vm449_vm0, %v1698_v37  ;;  %v1679_v47 = vadd.f32 %v2297_v24, %v1668_v43  ;;  %v2077_v25 = vld [vmem:[%s3765_s11 + $0x80] sm:$0xff]  ;;  %v2076_v37 = vld [vmem:[%s3765_s11 + $0x78] sm:$0xff] }
 0xb72   : > { %1772 = vmatprep.mubr.bf16.mxu0 %v2772_v11  ;;  %v2106_v40 = vpack.c.bf16 %v2076_v37, %v2075_v34 }
 0xb73   : > { %v1669_v6 = vmul.f32 %v2296_v8, %v1658_v41  ;;  %v1711_v41 = vlaneseq }
 0xb74   : > { %v2713_v44 = vpop.eup %2712 }
 0xb75   : > { %v1659_v45 = vmul.f32 %v2713_v44, %v3388_v36  ;;  %v1680_v49 = vadd.f32 %v2297_v24, %v1669_v6  ;;  %v2107_v36 = vpack.c.bf16 %v2078_v52, %v2077_v25  ;;  %v1712_v43 = vshrl.u32 %v1711_v41, 7  ;;  %v1709_v44 = vld [vmem:[%s3764_s10] sm:$0x3] }
 0xb77   : > { %v1699_v50 = vpack.c.bf16 %v1680_v49, %v1679_v47  ;;  %v1670_v51 = vmul.f32 %v2296_v8, %v1659_v45  ;;  %2380 = vmatprep.subr.bf16.mxu1 %v2107_v36  ;;  %v2072_v8 = vld [vmem:[%s3765_s11 + $0x58] sm:$0xff]  ;;  %v1713_v6 = vsub.s32 0, %v1712_v43  ;;  %v1717_v45 = vsub.s32 1, %v1712_v43 }
 0xb78   : > { %2381 = vmatpush3.bf16.msra.mxu1 %v2099_v58  ;;  %v2104_v10 = vpack.c.bf16 %v2072_v8, %v2071_v46 }
 0xb79   : > { %2299 = vmatmul.mubr.msk.bf16.gmra.mrb[76].mxu0 %vm449_vm0, %v1699_v50  ;;  %v1681_v14 = vadd.f32 %v2297_v24, %v1670_v51  ;;  %2382 = vmatprep.subr.bf16.mxu1 %v2108_v9  ;;  %v2074_v24 = vld [vmem:[%s3765_s11 + $0x68] sm:$0xff]  ;;  %v3555_v47 = vrot.slane %v1709_v44, %v1713_v6  ;;  %v3557_v49 = vrot.slane %v1709_v44, %v1717_v45 }
 0xb7a   : > { %1782 = vmatprep.mubr.bf16.mxu0 %v2772_v11  ;;  %v2083_v11 = vld [vmem:[%s3765_s11 + $0xb0] sm:$0xff]  ;;  %v2105_v26 = vpack.c.bf16 %v2074_v24, %v2073_v23 }
 0xb7b   : > { %v1700_v39 = vpack.c.bf16 %v1681_v14, %v1681_v14  ;;  %v2110_v18 = vpack.c.bf16 %v2084_v13, %v2083_v11 }
 0xb7c   : > { %2383 = vmatpush3.bf16.msra.mxu1 %v2100_v57 }
 0xb7d   : > { %2384 = vmatprep.subr.bf16.mxu1 %v2109_v42 }
 0xb80   : > { %2385 = vmatpush3.bf16.msra.mxu1 %v2101_v27 }
 0xb81   : > { %2300 = vmatmul.mubr.msk.bf16.gmra.mrb[80].mxu0 %vm449_vm0, %v1700_v39  ;;  %2386 = vmatprep.subr.bf16.mxu1 %v2110_v18 }
 0xb84   : > { %2387 = vmatpush3.bf16.msra.mxu1 %v2102_v62 }
 0xb85   : > { %2388 = vmatprep.subr.bf16.mxu1 %v2111_v61 }
 0xb88   : > { %2389 = vmatpush3.bf16.msra.mxu1 %v2103_v28 }
 0xb89   : > { %2390 = vmatprep.subr.bf16.mxu1 %v2112_v5 }
 0xb8c   : > { %2391 = vmatpush3.bf16.msra.mxu1 %v2104_v10 }
 0xb8d   : > { %2392 = vmatprep.subr.bf16.mxu1 %v2113_v22 }
 0xb90   : > { %2393 = vmatpush3.bf16.msra.mxu1 %v2105_v26 }
 0xb91   : > { %2394 = vmatprep.subr.bf16.mxu1 %v2114_v33 }
 0xb94   : > { %2395 = vmatpush3.bf16.msra.mxu1 %v2106_v40 }
 0xc44   : > { %v1764_v50 = vpop.f32.mrb[72].mxu0 }
 0xc45   : > { %v1765_v51 = vadd.f32 %v1764_v50, %v3555_v47  ;;  %v1766_v14 = vpop.f32.mrb[73].mxu0 }
 0xc46   : > { %v1767_v39 = vadd.f32 %v1766_v14, %v3557_v49  ;;  %v1768_v25 = vpop.f32.mrb[74].mxu0 }
 0xc47   : > { %v1801_v52 = vmul.f32 0.70710677, %v1765_v51  ;;  %v1769_v36 = vadd.f32 %v1768_v25, %v3555_v47  ;;  %v1770_v53 = vpop.f32.mrb[75].mxu0  ;;  %v3566_v62 = vmul.f32 0.5, %v1765_v51 }
 0xc48   : > { %v1802_v55 = vmul.f32 0.70710677, %v1767_v39  ;;  %v1771_v7 = vadd.f32 %v1770_v53, %v3557_v49  ;;  %v3568_v61 = vmul.f32 0.5, %v1767_v39 }
 0xc49   : > { %v1831_v58 = vand.u32 2147483647, %v1801_v52  ;;  %v1803_v16 = vmul.f32 0.70710677, %v1769_v36  ;;  %vm1811_vm5 = vcmp.ge.f32.partialorder %v1801_v52, 0.0  ;;  %v3576_v28 = vmul.f32 0.5, %v1769_v36 }
 0xc4a   : > { %v1832_v9 = vand.u32 2147483647, %v1802_v55  ;;  %v3563_v42 = vmul.f32 0.70710677, %v1771_v7  ;;  %vm1812_vm6 = vcmp.ge.f32.partialorder %v1802_v55, 0.0  ;;  %v3597_v33 = vsel %vm1811_vm5, 1.0, %v2773_v20 }
 0xc4b   : > { %v1841_v38 = vmul.f32 0.3275911, %v1831_v58  ;;  %v1833_v57 = vand.u32 2147483647, %v1803_v16  ;;  %v1971_v32 = vsub.f32 0.0, %v1831_v58  ;;  %vm1813_vm7 = vcmp.ge.f32.partialorder %v1803_v16, 0.0 }
 0xc4c   : > { %v1842_v56 = vmul.f32 0.3275911, %v1832_v9  ;;  %v1774_v48 = vpop.f32.mrb[76].mxu0  ;;  %v1834_v13 = vand.u32 2147483647, %v3563_v42  ;;  %v1972_v5 = vsub.f32 0.0, %v1832_v9 }
 0xc4d   : > { %v1851_v30 = vadd.f32 1.0, %v1841_v38  ;;  %v1843_v27 = vmul.f32 0.3275911, %v1833_v57  ;;  %v1776_v11 = vpop.f32.mrb[77].mxu0  ;;  %v1981_v63 = vmul.f32 %v1971_v32, %v1831_v58  ;;  %v3571_v4 = vadd.f32 %v1774_v48, %v3555_v47 }
 0xc4e   : > { %v1852_v17 = vadd.f32 1.0, %v1842_v56  ;;  %v1778_v18 = vpop.f32.mrb[78].mxu0  ;;  %v1844_v0 = vmul.f32 0.3275911, %v1834_v13  ;;  %v3574_v60 = vadd.f32 %v1776_v11, %v3557_v49  ;;  %v1973_v46 = vsub.f32 0.0, %v1833_v57 }
 0xc4f   : > { %2714 = vrcp.f32 %v1851_v30  ;;  %v1853_v19 = vadd.f32 1.0, %v1843_v27  ;;  %v1780_v59 = vpop.f32.mrb[79].mxu0  ;;  %v3579_v3 = vadd.f32 %v1778_v18, %v3555_v47  ;;  %v3582_v8 = vmul.f32 0.70710677, %v3571_v4 }
 0xc50   : > { %2716 = vrcp.f32 %v1852_v17  ;;  %v1854_v1 = vadd.f32 1.0, %v1844_v0  ;;  %v1991_v12 = vmul.f32 1.442695, %v1981_v63  ;;  %v3587_v21 = vmul.f32 0.70710677, %v3574_v60 }
 0xc51   : > { %2718 = vrcp.f32 %v1853_v19  ;;  %v1974_v23 = vsub.f32 0.0, %v1834_v13  ;;  %v1835_v24 = vand.u32 2147483647, %v3582_v8  ;;  %v3593_v26 = vmul.f32 0.70710677, %v3579_v3 }
 0xc52   : > { %2720 = vrcp.f32 %v1854_v1  ;;  %v3601_v34 = vsel %vm1812_vm6, 1.0, %v2773_v20  ;;  %v3603_v37 = vmul.f32 0.5, %v1771_v7  ;;  %v1836_v40 = vand.u32 2147483647, %v3587_v21 }
 0xc53   : > { %v1982_v43 = vmul.f32 %v1972_v5, %v1832_v9  ;;  %v3607_v6 = vsel %vm1813_vm7, 1.0, %v2773_v20  ;;  %v1983_v44 = vmul.f32 %v1973_v46, %v1833_v57  ;;  %v1845_v45 = vmul.f32 0.3275911, %v1835_v24 }
 0xc54   : > { %v3584_v10 = vpop.f32.mrb[80].mxu0  ;;  %2722 = vpow2.f32 %v1991_v12  ;;  %v1975_v51 = vsub.f32 0.0, %v1835_v24  ;;  %v1846_v14 = vmul.f32 0.3275911, %v1836_v40  ;;  %v1837_v39 = vand.u32 2147483647, %v3593_v26 }
 0xc55   : > { %v3589_v22 = vpop.f32.mrb[81].mxu0  ;;  %v1984_v36 = vmul.f32 %v1974_v23, %v1834_v13  ;;  %v1855_v53 = vadd.f32 1.0, %v1845_v45  ;;  %v1976_v55 = vsub.f32 0.0, %v1836_v40  ;;  %v3617_v9 = vadd.f32 %v1780_v59, %v3557_v49 }
 0xc56   : > { %v1788_v29 = vpop.f32.mrb[82].mxu0  ;;  %v1856_v16 = vadd.f32 1.0, %v1846_v14  ;;  %v1847_v7 = vmul.f32 0.3275911, %v1837_v39  ;;  %v1993_v56 = vmul.f32 1.442695, %v1982_v43  ;;  %v1985_v32 = vmul.f32 %v1975_v51, %v1835_v24 }
 0xc57   : > { %v1789_v41 = vpop.f32.mrb[83].mxu0  ;;  %vm1814_vm8 = vcmp.ge.f32.partialorder %v3563_v42, 0.0  ;;  %2724 = vrcp.f32 %v1855_v53  ;;  %v1995_v11 = vmul.f32 1.442695, %v1983_v44  ;;  %v1986_v13 = vmul.f32 %v1976_v55, %v1836_v40 }
 0xc58   : > { %2726 = vrcp.f32 %v1856_v16  ;;  %v1857_v48 = vadd.f32 1.0, %v1847_v7  ;;  %v1997_v59 = vmul.f32 1.442695, %v1984_v36  ;;  %v1977_v63 = vsub.f32 0.0, %v1837_v39 }
 0xc59   : > { %v3609_v50 = vpop.eup %2714  ;;  %v3628_v0 = vmul.f32 0.70710677, %v3617_v9  ;;  %v3634_v23 = vsel %vm1814_vm8, 1.0, %v2773_v20  ;;  %v1999_v24 = vmul.f32 1.442695, %v1985_v32  ;;  %vm1815_vm9 = vcmp.ge.f32.partialorder %v3582_v8, 0.0 }
 0xc5a   : > { %v3612_v25 = vpop.eup %2716  ;;  %v1881_v52 = vmul.f32 1.0614054, %v3609_v50  ;;  %2728 = vrcp.f32 %v1857_v48  ;;  %v2001_v43 = vmul.f32 1.442695, %v1986_v13  ;;  %v1987_v51 = vmul.f32 %v1977_v63, %v1837_v39 }
 0xc5b   : > { %v1882_v58 = vmul.f32 1.0614054, %v3612_v25  ;;  %v3620_v57 = vpop.eup %2718  ;;  %2730 = vpow2.f32 %v1993_v56  ;;  %v3640_v14 = vand.u32 2147483647, %v3628_v0  ;;  %vm1817_vm10 = vcmp.ge.f32.partialorder %v3593_v26, 0.0 }
 0xc5c   : > { %v1891_v38 = vadd.f32 -1.4531521, %v1881_v52  ;;  %v1883_v27 = vmul.f32 1.0614054, %v3620_v57  ;;  %v3624_v18 = vpop.eup %2720  ;;  %2732 = vpow2.f32 %v1995_v11  ;;  %v2003_v48 = vmul.f32 1.442695, %v1987_v51 }
 0xc5d   : > { %v1892_v30 = vadd.f32 -1.4531521, %v1882_v58  ;;  %v1884_v46 = vmul.f32 1.0614054, %v3624_v18  ;;  %2734 = vpow2.f32 %v1997_v59  ;;  %v1848_v55 = vmul.f32 0.3275911, %v3640_v14 }
 0xc5e   : > { %v1901_v17 = vmul.f32 %v3609_v50, %v1891_v38  ;;  %v1893_v5 = vadd.f32 -1.4531521, %v1883_v27  ;;  %v2723_v44 = vpop.eup %2722  ;;  %2736 = vpow2.f32 %v1999_v24  ;;  %v3646_v58 = vadd.f32 %v3584_v10, %v3555_v47 }
 0xc5f   : > { %v1902_v19 = vmul.f32 %v3612_v25, %v1892_v30  ;;  %v1894_v41 = vadd.f32 -1.4531521, %v1884_v46  ;;  %2738 = vpow2.f32 %v2001_v43  ;;  %v1978_v43 = vsub.f32 0.0, %v3640_v14 }
 0xc60   : > { %v1911_v1 = vadd.f32 1.4214138, %v1901_v17  ;;  %v1903_v40 = vmul.f32 %v3620_v57, %v1893_v5  ;;  %v1858_v17 = vadd.f32 1.0, %v1848_v55  ;;  %v3659_v59 = vmul.f32 0.70710677, %v3646_v58 }
 0xc61   : > { %v1912_v12 = vadd.f32 1.4214138, %v1902_v19  ;;  %v1904_v42 = vmul.f32 %v3624_v18, %v1894_v41  ;;  %v3648_v16 = vpop.eup %2724  ;;  %v1827_v8 = vsel %vm1817_vm10, 1.0, %v2773_v20  ;;  %vm1816_vm11 = vcmp.ge.f32.partialorder %v3587_v21, 0.0 }
 0xc62   : > { %v1921_v29 = vmul.f32 %v3609_v50, %v1911_v1  ;;  %v1913_v36 = vadd.f32 1.4214138, %v1903_v40  ;;  %v3652_v56 = vpop.eup %2726  ;;  %v1885_v32 = vmul.f32 1.0614054, %v3648_v16  ;;  %2740 = vrcp.f32 %v1858_v17 }
 0xc63   : > { %v1922_v45 = vmul.f32 %v3612_v25, %v1912_v12  ;;  %v1914_v38 = vadd.f32 1.4214138, %v1904_v42  ;;  %v1886_v10 = vmul.f32 1.0614054, %v3652_v56  ;;  %2742 = vpow2.f32 %v2003_v48 }
 0xc64   : > { %v1931_v52 = vadd.f32 -0.28449672, %v1921_v29  ;;  %v1923_v7 = vmul.f32 %v3620_v57, %v1913_v36  ;;  %v1895_v19 = vadd.f32 -1.4531521, %v1885_v32  ;;  %v3661_v63 = vpop.eup %2728  ;;  %vm1818_vm12 = vcmp.ge.f32.partialorder %v3628_v0, 0.0 }
 0xc65   : > { %v1932_v53 = vadd.f32 -0.28449672, %v1922_v45  ;;  %v1924_v47 = vmul.f32 %v3624_v18, %v1914_v38  ;;  %v1896_v12 = vadd.f32 -1.4531521, %v1886_v10  ;;  %v2731_v24 = vpop.eup %2730  ;;  %v1887_v41 = vmul.f32 1.0614054, %v3661_v63 }
 0xc66   : > { %v1941_v39 = vmul.f32 %v3609_v50, %v1931_v52  ;;  %v1933_v11 = vadd.f32 -0.28449672, %v1923_v7  ;;  %v1905_v40 = vmul.f32 %v3648_v16, %v1895_v19  ;;  %v1798_v0 = vmul.f32 0.5, %v3617_v9 }
 0xc67   : > { %v1942_v30 = vmul.f32 %v3612_v25, %v1932_v53  ;;  %v1934_v46 = vadd.f32 -0.28449672, %v1924_v47  ;;  %v1906_v36 = vmul.f32 %v3652_v56, %v1896_v12  ;;  %v1897_v55 = vadd.f32 -1.4531521, %v1887_v41 }
 0xc68   : > { %v1951_v27 = vadd.f32 0.2548296, %v1941_v39  ;;  %v1943_v5 = vmul.f32 %v3620_v57, %v1933_v11  ;;  %v1915_v53 = vadd.f32 1.4214138, %v1905_v40  ;;  %v3672_v39 = vand.u32 2147483647, %v3659_v59 }
 0xc69   : > { %v1952_v13 = vadd.f32 0.2548296, %v1942_v30  ;;  %v1944_v52 = vmul.f32 %v3624_v18, %v1934_v46  ;;  %v1916_v32 = vadd.f32 1.4214138, %v1906_v36  ;;  %v1907_v11 = vmul.f32 %v3661_v63, %v1897_v55 }
 0xc6a   : > { %v1961_v1 = vmul.f32 %v3609_v50, %v1951_v27  ;;  %v1953_v51 = vadd.f32 0.2548296, %v1943_v5  ;;  %v2733_v50 = vpop.eup %2732  ;;  %v1925_v27 = vmul.f32 %v3648_v16, %v1915_v53  ;;  %v1849_v47 = vmul.f32 0.3275911, %v3672_v39 }
 0xc6b   : > { %v1962_v29 = vmul.f32 %v3612_v25, %v1952_v13  ;;  %v2735_v25 = vpop.eup %2734  ;;  %v1954_v30 = vadd.f32 0.2548296, %v1944_v52  ;;  %v1926_v5 = vmul.f32 %v3652_v56, %v1916_v32  ;;  %v1988_v52 = vmul.f32 %v1978_v43, %v3640_v14 }
 0xc6c   : > { %v2011_v45 = vmul.f32 %v2723_v44, %v1961_v1  ;;  %v1963_v38 = vmul.f32 %v3620_v57, %v1953_v51  ;;  %v2737_v17 = vpop.eup %2736  ;;  %v1935_v46 = vadd.f32 -0.28449672, %v1925_v27  ;;  %v1917_v57 = vadd.f32 1.4214138, %v1907_v11 }
 0xc6d   : > { %v2012_v42 = vmul.f32 %v2731_v24, %v1962_v29  ;;  %v2739_v10 = vpop.eup %2738  ;;  %v1964_v1 = vmul.f32 %v3624_v18, %v1954_v30  ;;  %v1859_v12 = vadd.f32 1.0, %v1849_v47  ;;  %v1936_v41 = vadd.f32 -0.28449672, %v1926_v5 }
 0xc6e   : > { %v2021_v7 = vsub.f32 1.0, %v2011_v45  ;;  %v2013_v19 = vmul.f32 %v2733_v50, %v1963_v38  ;;  %v3682_v45 = vpop.eup %2740  ;;  %v1945_v51 = vmul.f32 %v3648_v16, %v1935_v46  ;;  %v3692_v55 = vadd.f32 %v3589_v22, %v3557_v49 }
 0xc6f   : > { %v2022_v44 = vsub.f32 1.0, %v2012_v42  ;;  %v2014_v40 = vmul.f32 %v2735_v25, %v1964_v1  ;;  %2744 = vrcp.f32 %v1859_v12  ;;  %v1946_v48 = vmul.f32 %v3652_v56, %v1936_v41  ;;  %v2743_v1 = vpop.eup %2742 }
 0xc70   : > { %v2031_v13 = vmul.f32 %v2021_v7, %v3597_v33  ;;  %v2023_v29 = vsub.f32 1.0, %v2013_v19  ;;  %v1927_v33 = vmul.f32 %v3661_v63, %v1917_v57  ;;  %v1955_v42 = vadd.f32 0.2548296, %v1945_v51 }
 0xc71   : > { %v2032_v24 = vmul.f32 %v2022_v44, %v3601_v34  ;;  %v2024_v50 = vsub.f32 1.0, %v2014_v40  ;;  %v1888_v53 = vmul.f32 1.0614054, %v3682_v45  ;;  %v2005_v11 = vmul.f32 1.442695, %v1988_v52 }
 0xc72   : > { %v2041_v18 = vadd.f32 1.0, %v2031_v13  ;;  %v2033_v36 = vmul.f32 %v2023_v29, %v3607_v6  ;;  %v1937_v34 = vadd.f32 -0.28449672, %v1927_v33  ;;  %v1965_v14 = vmul.f32 %v3648_v16, %v1955_v42 }
 0xc73   : > { %v2042_v25 = vadd.f32 1.0, %v2032_v24  ;;  %v2034_v38 = vmul.f32 %v2024_v50, %v3634_v23  ;;  %v1956_v6 = vadd.f32 0.2548296, %v1946_v48  ;;  %v1898_v30 = vadd.f32 -1.4531521, %v1888_v53 }
 0xc74   : > { %v2043_v7 = vadd.f32 1.0, %v2033_v36  ;;  %v1947_v43 = vmul.f32 %v3661_v63, %v1937_v34  ;;  %v2051_v32 = vmul.f32 %v2041_v18, %v3566_v62  ;;  %v2015_v49 = vmul.f32 %v2737_v17, %v1965_v14 }
 0xc75   : > { %v2044_v27 = vadd.f32 1.0, %v2034_v38  ;;  %v1908_v47 = vmul.f32 %v3682_v45, %v1898_v30  ;;  %v3702_v23 = vmul.f32 0.70710677, %v3692_v55  ;;  %v2052_v13 = vmul.f32 %v2042_v25, %v3568_v61 }
 0xc76   : > { %v2053_v44 = vmul.f32 %v2043_v7, %v3576_v28  ;;  %v1957_v22 = vadd.f32 0.2548296, %v1947_v43  ;;  %v2025_v5 = vsub.f32 1.0, %v2015_v49  ;;  %v1966_v62 = vmul.f32 %v3652_v56, %v1956_v6 }
 0xc77   : > { %v2054_v19 = vmul.f32 %v2044_v27, %v3603_v37  ;;  %v1918_v46 = vadd.f32 1.4214138, %v1908_v47  ;;  %v1825_v17 = vsel %vm1815_vm9, 1.0, %v2773_v20  ;;  %2746 = vpow2.f32 %v2005_v11 }
 0xc78   : > { %v2093_v16 = vpack.c.bf16 %v2053_v44, %v2051_v32  ;;  %v1967_v28 = vmul.f32 %v3661_v63, %v1957_v22  ;;  %v1840_v57 = vand.u32 2147483647, %v3702_v23  ;;  %v2035_v12 = vmul.f32 %v2025_v5, %v1825_v17 }
 0xc79   : > { %v2745_v61 = vpop.eup %2744  ;;  %v1928_v37 = vmul.f32 %v3682_v45, %v1918_v46  ;;  %v2094_v29 = vpack.c.bf16 %v2054_v19, %v2052_v13  ;;  %v2016_v41 = vmul.f32 %v2739_v10, %v1966_v62  ;;  %v1979_v33 = vsub.f32 0.0, %v3672_v39 }
 0xc7a   : > { %v2017_v24 = vmul.f32 %v2743_v1, %v1967_v28  ;;  %v1889_v40 = vmul.f32 1.0614054, %v2745_v61  ;;  %v1850_v56 = vmul.f32 0.3275911, %v1840_v57  ;;  %v1795_v18 = vmul.f32 0.5, %v3571_v4 }
 0xc7b   : > { %v1938_v51 = vadd.f32 -0.28449672, %v1928_v37  ;;  %2147 = vmatprep.mubr.bf16.mxu1 %v2094_v29  ;;  %v2045_v36 = vadd.f32 1.0, %v2035_v12  ;;  %v1797_v10 = vmul.f32 0.5, %v3579_v3  ;;  %v2026_v34 = vsub.f32 1.0, %v2016_v41 }
 0xc7c   : > { %v2027_v63 = vsub.f32 1.0, %v2017_v24  ;;  %v1899_v26 = vadd.f32 -1.4531521, %v1889_v40  ;;  %v1860_v52 = vadd.f32 1.0, %v1850_v56  ;;  %2148 = vmatmul.mubr.bf16.vlgmr.msra.gmra.mrb[72].mxu1 %v2093_v16  ;;  %v1989_v7 = vmul.f32 %v1979_v33, %v3672_v39 }
 0xc7d   : > { %v1948_v48 = vmul.f32 %v3682_v45, %v1938_v51  ;;  %v2055_v14 = vmul.f32 %v2045_v36, %v1795_v18  ;;  %v1826_v30 = vsel %vm1816_vm11, 1.0, %v2773_v20  ;;  %v1980_v49 = vsub.f32 0.0, %v1840_v57 }
 0xc7e   : > { %v2037_v50 = vmul.f32 %v2027_v63, %v1827_v8  ;;  %v1909_v42 = vmul.f32 %v2745_v61, %v1899_v26  ;;  %2748 = vrcp.f32 %v1860_v52  ;;  %v2036_v32 = vmul.f32 %v2026_v34, %v1826_v30 }
 0xc7f   : > { %v1958_v25 = vadd.f32 0.2548296, %v1948_v48  ;;  %v2007_v44 = vmul.f32 1.442695, %v1989_v7  ;;  %v1828_v39 = vsel %vm1818_vm12, 1.0, %v2773_v20  ;;  %v1990_v19 = vmul.f32 %v1980_v49, %v1840_v57 }
 0xc80   : > { %v2047_v53 = vadd.f32 1.0, %v2037_v50  ;;  %v1919_v38 = vadd.f32 1.4214138, %v1909_v42  ;;  %v2046_v13 = vadd.f32 1.0, %v2036_v32  ;;  %v1796_v1 = vmul.f32 0.5, %v3574_v60 }
 0xc81   : > { %v1968_v4 = vmul.f32 %v3682_v45, %v1958_v25  ;;  %v2747_v43 = vpop.eup %2746  ;;  %2750 = vpow2.f32 %v2007_v44  ;;  %v2009_v24 = vmul.f32 1.442695, %v1990_v19  ;;  %vm1819_vm13 = vcmp.ge.f32.partialorder %v3659_v59, 0.0 }
 0xc82   : > { %v2057_v6 = vmul.f32 %v2047_v53, %v1797_v10  ;;  %v1929_v21 = vmul.f32 %v2745_v61, %v1919_v38  ;;  %v2056_v46 = vmul.f32 %v2046_v13, %v1796_v1  ;;  %v1829_v8 = vsel %vm1819_vm13, 1.0, %v2773_v20 }
 0xc83   : > { %v2018_v3 = vmul.f32 %v2747_v43, %v1968_v4  ;;  %2752 = vpow2.f32 %v2009_v24  ;;  %vm1820_vm14 = vcmp.ge.f32.partialorder %v3702_v23, 0.0  ;;  %v1799_v42 = vmul.f32 0.5, %v3646_v58 }
 0xc84   : > { %v2095_v27 = vpack.c.bf16 %v2057_v6, %v2055_v14  ;;  %v1939_v11 = vadd.f32 -0.28449672, %v1929_v21  ;;  %v1830_v50 = vsel %vm1820_vm14, 1.0, %v2773_v20  ;;  %v1800_v34 = vmul.f32 0.5, %v3692_v55  ;;  %v2301_v20 = vld [vmem:[%s3766_s12] ss:$0 sm:$0xff] }
 0xc85   : > { %v2028_v22 = vsub.f32 1.0, %v2018_v3 }
 0xc86   : > { %v1949_v47 = vmul.f32 %v2745_v61, %v1939_v11 }
 0xc87   : > { %v2038_v16 = vmul.f32 %v2028_v22, %v1828_v39 }
 0xc88   : > { %v2749_v45 = vpop.eup %2748  ;;  %v1959_v28 = vadd.f32 0.2548296, %v1949_v47 }
 0xc89   : > { %v2048_v5 = vadd.f32 1.0, %v2038_v16  ;;  %v1890_v62 = vmul.f32 1.0614054, %v2749_v45 }
 0xc8a   : > { %v1969_v40 = vmul.f32 %v2745_v61, %v1959_v28 }
 0xc8b   : > { %v2058_v17 = vmul.f32 %v2048_v5, %v1798_v0  ;;  %v1900_v12 = vadd.f32 -1.4531521, %v1890_v62  ;;  %v2751_v41 = vpop.eup %2750 }
 0xc8c   : > { %v2019_v63 = vmul.f32 %v2751_v41, %v1969_v40 }
 0xc8d   : > { %v1910_v37 = vmul.f32 %v2749_v45, %v1900_v12  ;;  %v2096_v29 = vpack.c.bf16 %v2058_v17, %v2056_v46  ;;  %v2753_v52 = vpop.eup %2752 }
 0xc8e   : > { %v2029_v9 = vsub.f32 1.0, %v2019_v63 }
 0xc8f   : > { %v1920_v56 = vadd.f32 1.4214138, %v1910_v37  ;;  %2155 = vmatprep.mubr.bf16.mxu1 %v2096_v29 }
 0xc90   : > { %2156 = vmatmul.mubr.bf16.gmra.mrb[76].mxu1 %v2095_v27  ;;  %v2039_v18 = vmul.f32 %v2029_v9, %v1829_v8 }
 0xc91   : > { %v1930_v57 = vmul.f32 %v2749_v45, %v1920_v56 }
 0xc92   : > { %v2049_v48 = vadd.f32 1.0, %v2039_v18 }
 0xc93   : > { %v1940_v60 = vadd.f32 -0.28449672, %v1930_v57 }
 0xc94   : > { %v2059_v53 = vmul.f32 %v2049_v48, %v1799_v42 }
 0xc95   : > { %v1950_v51 = vmul.f32 %v2749_v45, %v1940_v60 }
 0xc96   : > { %v2097_v38 = vpack.c.bf16 %v2059_v53, %v2059_v53 }
 0xc97   : > { %v1960_v33 = vadd.f32 0.2548296, %v1950_v51 }
 0xc99   : > { %v1970_v26 = vmul.f32 %v2749_v45, %v1960_v33 }
 0xc9b   : > { %v2020_v61 = vmul.f32 %v2753_v52, %v1970_v26 }
 0xc9d   : > { %v2030_v36 = vsub.f32 1.0, %v2020_v61 }
 0xc9f   : > { %v2040_v10 = vmul.f32 %v2030_v36, %v1830_v50 }
 0xca1   : > { %v2050_v59 = vadd.f32 1.0, %v2040_v10 }
 0xca3   : > { %v2060_v25 = vmul.f32 %v2050_v59, %v1800_v34 }
 0xca5   : > { %v2098_v7 = vpack.c.bf16 %v2060_v25, %v2060_v25 }
 0xca7   : > { %2163 = vmatprep.mubr.bf16.mxu1 %v2098_v7 }
 0xca8   : > { %2164 = vmatmul.mubr.bf16.gmra.mrb[80].mxu1 %v2097_v38 }
 0xd4f   : > { %v2396_v14 = vpop.f32.mrb[72].mxu1 }
 0xd50   : > { %v2397_v23 = vpop.f32.mrb[73].mxu1 }
 0xd51   : > { %v2398_v6 = vadd.f32 %v2397_v23, %v2396_v14  ;;  %v2399_v4 = vpop.f32.mrb[74].mxu1 }
 0xd52   : > { %v2400_v43 = vpop.f32.mrb[75].mxu1 }
 0xd53   : > { %v2171_v58 = vadd.f32 %v2398_v6, %v3337_v54  ;;  %v2401_v55 = vadd.f32 %v2400_v43, %v2399_v4 }
 0xd55   : > { %v2183_v30 = vadd.f32 %v2301_v20, %v2171_v58  ;;  %v2172_v21 = vadd.f32 %v2401_v55, %v3340_v35 }
 0xd57   : > { %2188 = vst.msk [vmem:[%s440_s17] sm:$0xff] %vm449_vm0, %v2183_v30  ;;  %v2184_v32 = vadd.f32 %v2301_v20, %v2172_v21 }
 0xd59   : > { %2189 = vst.msk [vmem:[%s440_s17 + $0x8] sm:$0xff] %vm449_vm0, %v2184_v32 }
 0xd63   : > { %v2402_v3 = vpop.f32.mrb[76].mxu1 }
 0xd64   : > { %v2403_v44 = vpop.f32.mrb[77].mxu1 }
 0xd65   : > { %v2404_v27 = vadd.f32 %v2403_v44, %v2402_v3  ;;  %v2405_v11 = vpop.f32.mrb[78].mxu1 }
 0xd66   : > { %v2406_v49 = vpop.f32.mrb[79].mxu1 }
 0xd67   : > { %v2173_v54 = vadd.f32 %v2404_v27, %v3349_v15  ;;  %v2407_v22 = vadd.f32 %v2406_v49, %v2405_v11 }
 0xd69   : > { %v2185_v39 = vadd.f32 %v2301_v20, %v2173_v54  ;;  %v2174_v47 = vadd.f32 %v2407_v22, %v3352_v31 }
 0xd6b   : > { %2190 = vst.msk [vmem:[%s440_s17 + $0x10] sm:$0xff] %vm449_vm0, %v2185_v39  ;;  %v2186_v13 = vadd.f32 %v2301_v20, %v2174_v47 }
 0xd6d   : > { %2191 = vst.msk [vmem:[%s440_s17 + $0x18] sm:$0xff] %vm449_vm0, %v2186_v13 }
 0xd7b   : > { %v2408_v35 = vpop.f32.mrb[80].mxu1 }
 0xd7c   : > { %v2409_v16 = vpop.f32.mrb[81].mxu1 }
 0xd7d   : > { %v2410_v45 = vadd.f32 %v2409_v16, %v2408_v35  ;;  %v2411_v19 = vpop.f32.mrb[82].mxu1 }
 0xd7e   : > { %v2412_v1 = vpop.f32.mrb[83].mxu1 }
 0xd7f   : > { %v2175_v0 = vadd.f32 %v2410_v45, %v3360_v2 }
 0xd81   : > { %v2187_v5 = vadd.f32 %v2301_v20, %v2175_v0 }
 0xd83   : > { %2192 = vst.msk [vmem:[%s440_s17 + $0x20] sm:$0xff] %vm449_vm0, %v2187_v5 }
 0xd84 PF: > { %s23_s25 = sadd.s32 1, %s2765_s25  }
 0xd85   : > { %p20_p4 = scmp.ge.s32.totalorder %s23_s25, 4  }
 0xd87   :  { %22 = sbr.rel (!%p20_p4) target bundleno = 1 (0x1), region = 102 }

// kernel: mul.37
= control target key start
LH: loop header
LB: loop body
LE: loop exit
PB: predicated region body
PF: predicated region fallthrough
CT: control target
= control target key end

     0   :  { %vm9_vm0 = vcmask 7168   ;;  %vm23_vm1 = vcmask 23552   ;;  %s569_s14 = smov 127   ;;  %s570_s15 = smov 122   ;;  %vm3_vm2 = vcmask 39936   ;;  %vm13_vm3 = vcmask 31744   ;;  %s843_s0 = inlined_call_operand.vmem [shape: f32[1,64,5], index: 0, kind: input, shape index: {}]   ;;  %s844_s1 = inlined_call_operand.vmem [shape: f32[320], index: 1, kind: output, shape index: {}]  }
   0x1   :  { %v441_v0 = vld [vmem:[%s843_s0 + $0x33] sm:$0x1]   ;;  %v445_v3 = vld [vmem:[%s843_s0 + $0x32] sm:$0x1]   ;;  %v443_v4 = vld [vmem:[%s843_s0 + $0x19] sm:$0x1]  }
   0x2   :  { %v442_v1 = vld [vmem:[%s843_s0 + $0x33] sm:$0x1]   ;;  %34 = vrot.lane.b32.xlu1 %v445_v3, %s570_s15  ;;  %v444_v5 = vld [vmem:[%s843_s0 + $0x19] sm:$0x1]   ;;  %v446_v7 = vld [vmem:[%s843_s0 + $0x18] sm:$0x1]  }
   0x3   :  { %v10_v2 = vsel %vm9_vm0, %v442_v1, %v441_v0  ;;  %v24_v6 = vsel %vm23_vm1, %v444_v5, %v443_v4  ;;  %s571_s20 = smov 125   ;;  %s572_s21 = smov 120   ;;  %v447_v8 = vld [vmem:[%s843_s0 + $0x31] sm:$0x1]   ;;  %v448_v9 = vld [vmem:[%s843_s0 + $0x17] sm:$0x1]  }
   0x4   :  { %11 = vrot.lane.b32.xlu0 %v10_v2, %s569_s14  ;;  %s573_s26 = smov 117   ;;  %s574_s27 = smov 115   ;;  %v449_v10 = vld [vmem:[%s843_s0 + $0x30] sm:$0x1]   ;;  %v450_v11 = vld [vmem:[%s843_s0 + $0x16] sm:$0x1]  }
   0x5   :  { %s575_s3 = smov 112   ;;  %s576_s4 = smov 110   ;;  %v451_v12 = vld [vmem:[%s843_s0 + $0x2f] sm:$0x1]   ;;  %v452_v13 = vld [vmem:[%s843_s0 + $0x15] sm:$0x1]  }
   0x6   :  { %41 = vrot.lane.b32.xlu1 %v446_v7, %s572_s21  ;;  %s577_s9 = smov 107   ;;  %s578_s10 = smov 105   ;;  %v453_v14 = vld [vmem:[%s843_s0 + $0x2e] sm:$0x1]   ;;  %v454_v15 = vld [vmem:[%s843_s0 + $0x14] sm:$0x1]  }
   0x7   :  { %s579_s15 = smov 102   ;;  %s580_s16 = smov 100   ;;  %v455_v16 = vld [vmem:[%s843_s0 + $0x2d] sm:$0x1]   ;;  %v456_v17 = vld [vmem:[%s843_s0 + $0x13] sm:$0x1]  }
   0x8   :  { %25 = vrot.lane.b32.xlu0 %v24_v6, %s571_s20  ;;  %s581_s21 = smov 97   ;;  %s582_s22 = smov 95   ;;  %v457_v18 = vld [vmem:[%s843_s0 + $0x2c] sm:$0x1]   ;;  %v458_v19 = vld [vmem:[%s843_s0 + $0x12] sm:$0x1]  }
   0x9   :  { %s584_s28 = smov 90   ;;  %v459_v20 = vld [vmem:[%s843_s0 + $0x2b] sm:$0x1]   ;;  %v460_v21 = vld [vmem:[%s843_s0 + $0x11] sm:$0x1]   ;;  %s585_s6 = smov 87  }
   0xa   :  { %54 = vrot.lane.b32.xlu1 %v448_v9, %s574_s27  ;;  %s583_s27 = smov 92   ;;  %v2_v22 = vld [vmem:[%s843_s0] sm:$0x1]   ;;  %s586_s7 = smov 85   ;;  %v461_v23 = vld [vmem:[%s843_s0 + $0x2a] sm:$0x1]  }
   0xb   :  { %4 = vst.msk [vmem:[#allocation0] sm:$0x1] %vm3_vm2, %v2_v22   ;;  %v462_v24 = vld [vmem:[%s843_s0 + $0x10] sm:$0x1]   ;;  %s587_s12 = smov 82   ;;  %s588_s13 = smov 80  }
   0xc   :  { %47 = vrot.lane.b32.xlu0 %v447_v8, %s573_s26  ;;  %v463_v25 = vld [vmem:[%s843_s0 + $0x29] sm:$0x1]   ;;  %v464_v26 = vld [vmem:[%s843_s0 + $0xf] sm:$0x1]   ;;  %s589_s18 = smov 77   ;;  %s590_s19 = smov 75  }
   0xd   :  { %v465_v27 = vld [vmem:[%s843_s0 + $0x28] sm:$0x1]   ;;  %v466_v28 = vld [vmem:[%s843_s0 + $0xe] sm:$0x1]   ;;  %s591_s24 = smov 72   ;;  %s592_s25 = smov 70  }
   0xe   :  { %67 = vrot.lane.b32.xlu1 %v450_v11, %s576_s4  ;;  %v467_v29 = vld [vmem:[%s843_s0 + $0x27] sm:$0x1]   ;;  %v468_v30 = vld [vmem:[%s843_s0 + $0xd] sm:$0x1]   ;;  %s593_s30 = smov 67   ;;  %s594_s2 = smov 65  }
   0xf   :  { %v469_v31 = vld [vmem:[%s843_s0 + $0x26] sm:$0x1]   ;;  %v470_v32 = vld [vmem:[%s843_s0 + $0xc] sm:$0x1]   ;;  %s596_s8 = smov 60   ;;  %s598_s14 = smov 57  }
  0x10   :  { %60 = vrot.lane.b32.xlu0 %v449_v10, %s575_s3  ;;  %v471_v33 = vld [vmem:[%s843_s0 + $0x3f] sm:$0x1]   ;;  %v472_v34 = vld [vmem:[%s843_s0 + $0x25] sm:$0x1]   ;;  %v473_v35 = vld [vmem:[%s843_s0 + $0xb] sm:$0x1]  }
  0x11   :  { %v474_v36 = vld [vmem:[%s843_s0 + $0x3e] sm:$0x1]   ;;  %s600_s20 = smov 54   ;;  %v475_v37 = vld [vmem:[%s843_s0 + $0x24] sm:$0x1]   ;;  %s602_s26 = smov 50  }
  0x12   :  { %80 = vrot.lane.b32.xlu1 %v452_v13, %s578_s10  ;;  %v476_v38 = vld [vmem:[%s843_s0 + $0xa] sm:$0x1]   ;;  %v477_v39 = vld [vmem:[%s843_s0 + $0x3d] sm:$0x1]   ;;  %v478_v40 = vld [vmem:[%s843_s0 + $0x23] sm:$0x1]  }
  0x13   :  { %s604_s3 = smov 47   ;;  %v479_v41 = vld [vmem:[%s843_s0 + $0x9] sm:$0x1]   ;;  %v480_v42 = vld [vmem:[%s843_s0 + $0x3c] sm:$0x1]   ;;  %s614_s4 = smov 30  }
  0x14   :  { %73 = vrot.lane.b32.xlu0 %v451_v12, %s577_s9  ;;  %s606_s9 = smov 44   ;;  %v481_v43 = vld [vmem:[%s843_s0 + $0x22] sm:$0x1]   ;;  %v482_v44 = vld [vmem:[%s843_s0 + $0x8] sm:$0x1]   ;;  %s616_s10 = smov 27  }
  0x15   :  { %v483_v45 = vld [vmem:[%s843_s0 + $0x3b] sm:$0x1]   ;;  %v484_v46 = vld [vmem:[%s843_s0 + $0x21] sm:$0x1]   ;;  %v485_v47 = vld [vmem:[%s843_s0 + $0x7] sm:$0x1]  }
  0x16   :  { %93 = vrot.lane.b32.xlu1 %v454_v15, %s580_s16  ;;  %v486_v48 = vld [vmem:[%s843_s0 + $0x3a] sm:$0x1]   ;;  %v487_v49 = vld [vmem:[%s843_s0 + $0x20] sm:$0x1]   ;;  %v488_v50 = vld [vmem:[%s843_s0 + $0x6] sm:$0x1]  }
  0x17   :  { %v489_v51 = vld [vmem:[%s843_s0 + $0x39] sm:$0x1]   ;;  %v490_v52 = vld [vmem:[%s843_s0 + $0x1f] sm:$0x1]   ;;  %v491_v53 = vld [vmem:[%s843_s0 + $0x5] sm:$0x1]  }
  0x18   :  { %86 = vrot.lane.b32.xlu0 %v453_v14, %s579_s15  ;;  %s608_s15 = smov 40   ;;  %v492_v54 = vld [vmem:[%s843_s0 + $0x38] sm:$0x1]   ;;  %s618_s16 = smov 24   ;;  %v493_v55 = vld [vmem:[%s843_s0 + $0x1e] sm:$0x1]  }
  0x19   :  { %v494_v56 = vld [vmem:[%s843_s0 + $0x4] sm:$0x1]   ;;  %v495_v57 = vld [vmem:[%s843_s0 + $0x37] sm:$0x1]   ;;  %v496_v58 = vld [vmem:[%s843_s0 + $0x1d] sm:$0x1]  }
  0x1a   :  { %106 = vrot.lane.b32.xlu1 %v456_v17, %s582_s22  ;;  %s620_s22 = smov 20   ;;  %v497_v59 = vld [vmem:[%s843_s0 + $0x3] sm:$0x1]   ;;  %v498_v60 = vld [vmem:[%s843_s0 + $0x36] sm:$0x1]   ;;  %s624_s5 = smov 14  }
  0x1b   :  { %v499_v61 = vld [vmem:[%s843_s0 + $0x1c] sm:$0x1]   ;;  %v500_v62 = vld [vmem:[%s843_s0 + $0x2] sm:$0x1]   ;;  %vm16_vm4 = vcmask 1048568   ;;  %s626_s11 = smov 10  }
  0x1c   :  { %99 = vrot.lane.b32.xlu0 %v455_v16, %s581_s21  ;;  %s610_s21 = smov 37   ;;  %v501_v63 = vld [vmem:[%s843_s0 + $0x35] sm:$0x1]   ;;  %v502_v0 = vld [vmem:[%s843_s0 + $0x1b] sm:$0x1]   ;;  %vm27_vm5 = vcmask 15360  }
  0x1d   :  { %vm30_vm6 = vcmask 1048552   ;;  %s628_s17 = smov 7   ;;  %v503_v3 = vld [vmem:[%s843_s0 + $0x1] sm:$0x1]   ;;  %vm36_vm7 = vcmask 1040336   ;;  %vm43_vm8 = vcmask 1023936  }
  0x1e   :  { %119 = vrot.lane.b32.xlu1 %v458_v19, %s584_s28  ;;  %s622_s28 = smov 17   ;;  %v504_v4 = vld [vmem:[%s843_s0 + $0x34] sm:$0x1]   ;;  %vm49_vm9 = vcmask 999336   ;;  %s630_s23 = smov 4   ;;  %vm56_vm10 = vcmask 982936  }
  0x1f   :  { %v505_v7 = vld [vmem:[%s843_s0 + $0x1a] sm:$0x1]   ;;  %s631_s0 = smov 2   ;;  %vm62_vm11 = vcmask 958336   ;;  %vm69_vm12 = vcmask 941936   ;;  %vm75_vm13 = vcmask 917336  }
  0x20   :  { %112 = vrot.lane.b32.xlu0 %v457_v18, %s583_s27  ;;  %s612_s27 = smov 34   ;;  %vm82_vm14 = vcmask 900936   ;;  %vm88_vm15 = vcmask 876336   ;;  %vm95_vm0 = vcmask 859936   ;;  %vm101_vm1 = vcmask 835336  }
  0x21   :  { %vm108_vm2 = vcmask 818936  }
  0x22   :  { %132 = vrot.lane.b32.xlu1 %v460_v21, %s586_s7  ;;  %s595_s7 = smov 62  }
  0x24   :  { %125 = vrot.lane.b32.xlu0 %v459_v20, %s585_s6 }
  0x26   :  { %145 = vrot.lane.b32.xlu1 %v462_v24, %s588_s13  ;;  %s597_s13 = smov 59  }
  0x28   :  { %138 = vrot.lane.b32.xlu0 %v461_v23, %s587_s12 }
  0x2a   :  { %158 = vrot.lane.b32.xlu1 %v464_v26, %s590_s19  ;;  %s599_s19 = smov 55  }
  0x2c   :  { %151 = vrot.lane.b32.xlu0 %v463_v25, %s589_s18 }
  0x2e   :  { %171 = vrot.lane.b32.xlu1 %v466_v28, %s592_s25  ;;  %s601_s25 = smov 52  }
  0x30   :  { %164 = vrot.lane.b32.xlu0 %v465_v27, %s591_s24 }
  0x32   :  { %184 = vrot.lane.b32.xlu1 %v468_v30, %s594_s2  ;;  %s603_s2 = smov 49  }
  0x34   :  { %177 = vrot.lane.b32.xlu0 %v467_v29, %s593_s30 }
  0x36   :  { %197 = vrot.lane.b32.xlu1 %v470_v32, %s596_s8  ;;  %s605_s8 = smov 45  }
  0x38   :  { %190 = vrot.lane.b32.xlu0 %v469_v31, %s595_s7 }
  0x3a   :  { %210 = vrot.lane.b32.xlu1 %v472_v34, %s598_s14  ;;  %s607_s14 = smov 42  }
  0x3c   :  { %203 = vrot.lane.b32.xlu0 %v471_v33, %s597_s13 }
  0x3e   :  { %223 = vrot.lane.b32.xlu1 %v474_v36, %s600_s20  ;;  %s609_s20 = smov 39  }
  0x40   :  { %217 = vrot.lane.b32.xlu0 %v473_v35, %s599_s19 }
  0x42   :  { %237 = vrot.lane.b32.xlu1 %v476_v38, %s602_s26  ;;  %s611_s26 = smov 35  }
  0x44   :  { %230 = vrot.lane.b32.xlu0 %v475_v37, %s601_s25 }
  0x46   :  { %250 = vrot.lane.b32.xlu1 %v478_v40, %s604_s3  ;;  %s613_s3 = smov 32  }
  0x48   :  { %243 = vrot.lane.b32.xlu0 %v477_v39, %s603_s2 }
  0x4a   :  { %263 = vrot.lane.b32.xlu1 %v480_v42, %s606_s9  ;;  %s615_s9 = smov 29  }
  0x4c   :  { %257 = vrot.lane.b32.xlu0 %v479_v41, %s605_s8 }
  0x4e   :  { %277 = vrot.lane.b32.xlu1 %v482_v44, %s608_s15  ;;  %s617_s15 = smov 25  }
  0x50   :  { %270 = vrot.lane.b32.xlu0 %v481_v43, %s607_s14 }
  0x52   :  { %290 = vrot.lane.b32.xlu1 %v484_v46, %s610_s21  ;;  %s619_s21 = smov 22  }
  0x54   :  { %283 = vrot.lane.b32.xlu0 %v483_v45, %s609_s20 }
  0x56   :  { %303 = vrot.lane.b32.xlu1 %v486_v48, %s612_s27  ;;  %s621_s27 = smov 19  }
  0x58   :  { %297 = vrot.lane.b32.xlu0 %v485_v47, %s611_s26 }
  0x5a   :  { %317 = vrot.lane.b32.xlu1 %v488_v50, %s614_s4  ;;  %s623_s4 = smov 15  }
  0x5c   :  { %310 = vrot.lane.b32.xlu0 %v487_v49, %s613_s3 }
  0x5e   :  { %330 = vrot.lane.b32.xlu1 %v490_v52, %s616_s10  ;;  %s625_s10 = smov 12  }
  0x60   :  { %323 = vrot.lane.b32.xlu0 %v489_v51, %s615_s9 }
  0x62   :  { %343 = vrot.lane.b32.xlu1 %v492_v54, %s618_s16  ;;  %s627_s16 = smov 9  }
  0x64   :  { %337 = vrot.lane.b32.xlu0 %v491_v53, %s617_s15 }
  0x66   :  { %357 = vrot.lane.b32.xlu1 %v494_v56, %s620_s22  ;;  %s629_s22 = smov 5  }
  0x68   :  { %350 = vrot.lane.b32.xlu0 %v493_v55, %s619_s21 }
  0x6a   :  { %370 = vrot.lane.b32.xlu1 %v496_v58, %s622_s28 }
  0x6c   :  { %363 = vrot.lane.b32.xlu0 %v495_v57, %s621_s27 }
  0x6e   :  { %383 = vrot.lane.b32.xlu1 %v498_v60, %s624_s5 }
  0x70   :  { %377 = vrot.lane.b32.xlu0 %v497_v59, %s623_s4 }
  0x72   :  { %397 = vrot.lane.b32.xlu1 %v500_v62, %s626_s11 }
  0x74   :  { %390 = vrot.lane.b32.xlu0 %v499_v61, %s625_s10  ;;  %v35_v2 = vpop.permute.xlu1 %34  }
  0x76   :  { %v12_v1 = vpop.permute.xlu0 %11   ;;  %410 = vrot.lane.b32.xlu1 %v502_v0, %s628_s17 }
  0x77   :  { %15 = vst.msk [vmem:[#allocation0 + $0x2] sm:$0x1] %vm13_vm3, %v12_v1   ;;  %vm114_vm3 = vcmask 794336  }
  0x78   :  { %18 = vst.msk [vmem:[#allocation0 + $0x1] sm:$0x1] %vm16_vm4, %v12_v1   ;;  %403 = vrot.lane.b32.xlu0 %v501_v63, %s627_s16  ;;  %v42_v6 = vpop.permute.xlu1 %41   ;;  %vm121_vm4 = vcmask 777936  }
  0x7a   :  { %v26_v5 = vpop.permute.xlu0 %25   ;;  %423 = vrot.lane.b32.xlu1 %v504_v4, %s630_s23 }
  0x7b   :  { %29 = vst.msk [vmem:[#allocation0 + $0x1] sm:$0x1] %vm27_vm5, %v26_v5   ;;  %vm127_vm5 = vcmask 753336  }
  0x7c   :  { %31 = vst.msk [vmem:[#allocation0] sm:$0x1] %vm30_vm6, %v26_v5   ;;  %417 = vrot.lane.b32.xlu0 %v503_v3, %s629_s22  ;;  %v55_v9 = vpop.permute.xlu1 %54   ;;  %vm134_vm6 = vcmask 736936  }
  0x7d   :  { %38 = vst.msk [vmem:[#allocation0 + $0x1] sm:$0x1] %vm36_vm7, %v35_v2   ;;  %vm140_vm7 = vcmask 712336  }
  0x7e   :  { %44 = vst.msk [vmem:[#allocation0] sm:$0x1] %vm43_vm8, %v42_v6   ;;  %v48_v8 = vpop.permute.xlu0 %47   ;;  %vm147_vm8 = vcmask 695936  }
  0x7f   :  { %51 = vst.msk [vmem:[#allocation0 + $0x1] sm:$0x1] %vm49_vm9, %v48_v8   ;;  %vm153_vm9 = vcmask 671336  }
  0x80   :  { %57 = vst.msk [vmem:[#allocation0] sm:$0x1] %vm56_vm10, %v55_v9   ;;  %430 = vrot.lane.b32.xlu0 %v505_v7, %s631_s0  ;;  %v68_v11 = vpop.permute.xlu1 %67   ;;  %vm160_vm10 = vcmask 654936  }
  0x81   :  { %70 = vst.msk [vmem:[#allocation0] sm:$0x1] %vm69_vm12, %v68_v11   ;;  %vm173_vm12 = vcmask 613936  }
  0x82   :  { %v61_v10 = vpop.permute.xlu0 %60  }
  0x83   :  { %64 = vst.msk [vmem:[#allocation0 + $0x1] sm:$0x1] %vm62_vm11, %v61_v10   ;;  %vm166_vm11 = vcmask 630336  }
  0x84   :  { %v81_v13 = vpop.permute.xlu1 %80  }
  0x85   :  { %83 = vst.msk [vmem:[#allocation0] sm:$0x1] %vm82_vm14, %v81_v13   ;;  %vm186_vm14 = vcmask 572936  }
  0x86   :  { %v74_v12 = vpop.permute.xlu0 %73  }
  0x87   :  { %77 = vst.msk [vmem:[#allocation0 + $0x1] sm:$0x1] %vm75_vm13, %v74_v12   ;;  %vm179_vm13 = vcmask 589336  }
  0x88   :  { %v94_v15 = vpop.permute.xlu1 %93  }
  0x89   :  { %96 = vst.msk [vmem:[#allocation0] sm:$0x1] %vm95_vm0, %v94_v15   ;;  %vm199_vm0 = vcmask 531936  }
  0x8a   :  { %v87_v14 = vpop.permute.xlu0 %86  }
  0x8b   :  { %90 = vst.msk [vmem:[#allocation0 + $0x1] sm:$0x1] %vm88_vm15, %v87_v14   ;;  %vm192_vm15 = vcmask 548336  }
  0x8c   :  { %v107_v17 = vpop.permute.xlu1 %106  }
  0x8d   :  { %109 = vst.msk [vmem:[#allocation0] sm:$0x1] %vm108_vm2, %v107_v17   ;;  %vm212_vm2 = vcmask 507336  }
  0x8e   :  { %v100_v16 = vpop.permute.xlu0 %99  }
  0x8f   :  { %103 = vst.msk [vmem:[#allocation0 + $0x1] sm:$0x1] %vm101_vm1, %v100_v16   ;;  %vm205_vm1 = vcmask 523736  }
  0x90   :  { %v120_v19 = vpop.permute.xlu1 %119  }
  0x91   :  { %122 = vst.msk [vmem:[#allocation0] sm:$0x1] %vm121_vm4, %v120_v19   ;;  %vm225_vm4 = vcmask 482736  }
  0x92   :  { %v113_v18 = vpop.permute.xlu0 %112  }
  0x93   :  { %116 = vst.msk [vmem:[#allocation0 + $0x1] sm:$0x1] %vm114_vm3, %v113_v18   ;;  %vm219_vm3 = vcmask 490936  }
  0x94   :  { %v133_v21 = vpop.permute.xlu1 %132  }
  0x95   :  { %135 = vst.msk [vmem:[#allocation0] sm:$0x1] %vm134_vm6, %v133_v21   ;;  %vm239_vm6 = vcmask 449936  }
  0x96   :  { %v126_v20 = vpop.permute.xlu0 %125  }
  0x97   :  { %129 = vst.msk [vmem:[#allocation0 + $0x1] sm:$0x1] %vm127_vm5, %v126_v20   ;;  %vm232_vm5 = vcmask 466336  }
  0x98   :  { %v146_v23 = vpop.permute.xlu1 %145  }
  0x99   :  { %148 = vst.msk [vmem:[#allocation0] sm:$0x1] %vm147_vm8, %v146_v23   ;;  %vm252_vm8 = vcmask 425336  }
  0x9a   :  { %v139_v22 = vpop.permute.xlu0 %138  }
  0x9b   :  { %142 = vst.msk [vmem:[#allocation0 + $0x1] sm:$0x1] %vm140_vm7, %v139_v22   ;;  %vm245_vm7 = vcmask 441736  }
  0x9c   :  { %v159_v25 = vpop.permute.xlu1 %158  }
  0x9d   :  { %161 = vst.msk [vmem:[#allocation0] sm:$0x1] %vm160_vm10, %v159_v25   ;;  %vm265_vm10 = vcmask 400736  }
  0x9e   :  { %v152_v24 = vpop.permute.xlu0 %151  }
  0x9f   :  { %155 = vst.msk [vmem:[#allocation0 + $0x1] sm:$0x1] %vm153_vm9, %v152_v24   ;;  %vm259_vm9 = vcmask 408936  }
  0xa0   :  { %v172_v27 = vpop.permute.xlu1 %171  }
  0xa1   :  { %174 = vst.msk [vmem:[#allocation0] sm:$0x1] %vm173_vm12, %v172_v27   ;;  %vm279_vm12 = vcmask 367936  }
  0xa2   :  { %v165_v26 = vpop.permute.xlu0 %164  }
  0xa3   :  { %168 = vst.msk [vmem:[#allocation0 + $0x1] sm:$0x1] %vm166_vm11, %v165_v26   ;;  %vm272_vm11 = vcmask 384336  }
  0xa4   :  { %v185_v29 = vpop.permute.xlu1 %184  }
  0xa5   :  { %187 = vst.msk [vmem:[#allocation0] sm:$0x1] %vm186_vm14, %v185_v29   ;;  %vm292_vm14 = vcmask 343336  }
  0xa6   :  { %v178_v28 = vpop.permute.xlu0 %177  }
  0xa7   :  { %181 = vst.msk [vmem:[#allocation0 + $0x1] sm:$0x1] %vm179_vm13, %v178_v28   ;;  %vm285_vm13 = vcmask 359736  }
  0xa8   :  { %v198_v31 = vpop.permute.xlu1 %197  }
  0xa9   :  { %200 = vst.msk [vmem:[#allocation0] sm:$0x1] %vm199_vm0, %v198_v31   ;;  %vm305_vm0 = vcmask 318736  }
  0xaa   :  { %v191_v30 = vpop.permute.xlu0 %190  }
  0xab   :  { %194 = vst.msk [vmem:[#allocation0 + $0x1] sm:$0x1] %vm192_vm15, %v191_v30   ;;  %vm299_vm15 = vcmask 326936  }
  0xac   :  { %v211_v33 = vpop.permute.xlu1 %210  }
  0xad   :  { %214 = vst.msk [vmem:[#allocation0 + $0x1] sm:$0x1] %vm212_vm2, %v211_v33   ;;  %vm319_vm2 = vcmask 285936  }
  0xae   :  { %v204_v32 = vpop.permute.xlu0 %203  }
  0xaf   :  { %207 = vst.msk [vmem:[#allocation0 + $0x2] sm:$0x1] %vm205_vm1, %v204_v32   ;;  %vm312_vm1 = vcmask 302336  }
  0xb0   :  { %v224_v35 = vpop.permute.xlu1 %223  }
  0xb1   :  { %227 = vst.msk [vmem:[#allocation0 + $0x2] sm:$0x1] %vm225_vm4, %v224_v35   ;;  %vm332_vm4 = vcmask 261336  }
  0xb2   :  { %v218_v34 = vpop.permute.xlu0 %217  }
  0xb3   :  { %220 = vst.msk [vmem:[#allocation0] sm:$0x1] %vm219_vm3, %v218_v34   ;;  %vm325_vm3 = vcmask 277736  }
  0xb4   :  { %v238_v37 = vpop.permute.xlu1 %237  }
  0xb5   :  { %240 = vst.msk [vmem:[#allocation0] sm:$0x1] %vm239_vm6, %v238_v37   ;;  %vm345_vm6 = vcmask 236736  }
  0xb6   :  { %v231_v36 = vpop.permute.xlu0 %230  }
  0xb7   :  { %234 = vst.msk [vmem:[#allocation0 + $0x1] sm:$0x1] %vm232_vm5, %v231_v36   ;;  %vm339_vm5 = vcmask 244936  }
  0xb8   :  { %v251_v39 = vpop.permute.xlu1 %250  }
  0xb9   :  { %254 = vst.msk [vmem:[#allocation0 + $0x1] sm:$0x1] %vm252_vm8, %v251_v39   ;;  %vm359_vm8 = vcmask 203936  }
  0xba   :  { %v244_v38 = vpop.permute.xlu0 %243  }
  0xbb   :  { %247 = vst.msk [vmem:[#allocation0 + $0x2] sm:$0x1] %vm245_vm7, %v244_v38   ;;  %vm352_vm7 = vcmask 220336  }
  0xbc   :  { %v264_v41 = vpop.permute.xlu1 %263  }
  0xbd   :  { %267 = vst.msk [vmem:[#allocation0 + $0x2] sm:$0x1] %vm265_vm10, %v264_v41   ;;  %vm372_vm10 = vcmask 179336  }
  0xbe   :  { %v258_v40 = vpop.permute.xlu0 %257  }
  0xbf   :  { %260 = vst.msk [vmem:[#allocation0] sm:$0x1] %vm259_vm9, %v258_v40   ;;  %vm365_vm9 = vcmask 195736  }
  0xc0   :  { %v278_v43 = vpop.permute.xlu1 %277  }
  0xc1   :  { %280 = vst.msk [vmem:[#allocation0] sm:$0x1] %vm279_vm12, %v278_v43   ;;  %vm385_vm12 = vcmask 154736  }
  0xc2   :  { %v271_v42 = vpop.permute.xlu0 %270  }
  0xc3   :  { %274 = vst.msk [vmem:[#allocation0 + $0x1] sm:$0x1] %vm272_vm11, %v271_v42   ;;  %vm379_vm11 = vcmask 162936  }
  0xc4   :  { %v291_v45 = vpop.permute.xlu1 %290  }
  0xc5   :  { %294 = vst.msk [vmem:[#allocation0 + $0x1] sm:$0x1] %vm292_vm14, %v291_v45   ;;  %vm399_vm14 = vcmask 121936  }
  0xc6   :  { %v284_v44 = vpop.permute.xlu0 %283  }
  0xc7   :  { %287 = vst.msk [vmem:[#allocation0 + $0x2] sm:$0x1] %vm285_vm13, %v284_v44   ;;  %vm392_vm13 = vcmask 138336  }
  0xc8   :  { %v304_v47 = vpop.permute.xlu1 %303  }
  0xc9   :  { %307 = vst.msk [vmem:[#allocation0 + $0x2] sm:$0x1] %vm305_vm0, %v304_v47   ;;  %vm412_vm0 = vcmask 97336  }
  0xca   :  { %v298_v46 = vpop.permute.xlu0 %297  }
  0xcb   :  { %300 = vst.msk [vmem:[#allocation0] sm:$0x1] %vm299_vm15, %v298_v46   ;;  %vm405_vm15 = vcmask 113736  }
  0xcc   :  { %v318_v49 = vpop.permute.xlu1 %317  }
  0xcd   :  { %320 = vst.msk [vmem:[#allocation0] sm:$0x1] %vm319_vm2, %v318_v49   ;;  %vm425_vm2 = vcmask 72736  }
  0xce   :  { %v311_v48 = vpop.permute.xlu0 %310  }
  0xcf   :  { %314 = vst.msk [vmem:[#allocation0 + $0x1] sm:$0x1] %vm312_vm1, %v311_v48   ;;  %vm419_vm1 = vcmask 80936  }
  0xd0   :  { %v331_v51 = vpop.permute.xlu1 %330  }
  0xd1   :  { %334 = vst.msk [vmem:[#allocation0 + $0x1] sm:$0x1] %vm332_vm4, %v331_v51  }
  0xd2   :  { %v324_v50 = vpop.permute.xlu0 %323  }
  0xd3   :  { %327 = vst.msk [vmem:[#allocation0 + $0x2] sm:$0x1] %vm325_vm3, %v324_v50   ;;  %vm432_vm3 = vcmask 56336  }
  0xd4   :  { %v344_v53 = vpop.permute.xlu1 %343  }
  0xd5   :  { %347 = vst.msk [vmem:[#allocation0 + $0x2] sm:$0x1] %vm345_vm6, %v344_v53  }
  0xd6   :  { %v338_v52 = vpop.permute.xlu0 %337  }
  0xd7   :  { %340 = vst.msk [vmem:[#allocation0] sm:$0x1] %vm339_vm5, %v338_v52  }
  0xd8   :  { %v358_v55 = vpop.permute.xlu1 %357  }
  0xd9   :  { %360 = vst.msk [vmem:[#allocation0] sm:$0x1] %vm359_vm8, %v358_v55  }
  0xda   :  { %v351_v54 = vpop.permute.xlu0 %350  }
  0xdb   :  { %354 = vst.msk [vmem:[#allocation0 + $0x1] sm:$0x1] %vm352_vm7, %v351_v54  }
  0xdc   :  { %v371_v57 = vpop.permute.xlu1 %370  }
  0xdd   :  { %374 = vst.msk [vmem:[#allocation0 + $0x1] sm:$0x1] %vm372_vm10, %v371_v57  }
  0xde   :  { %v364_v56 = vpop.permute.xlu0 %363  }
  0xdf   :  { %367 = vst.msk [vmem:[#allocation0 + $0x2] sm:$0x1] %vm365_vm9, %v364_v56  }
  0xe0   :  { %v384_v59 = vpop.permute.xlu1 %383  }
  0xe1   :  { %387 = vst.msk [vmem:[#allocation0 + $0x2] sm:$0x1] %vm385_vm12, %v384_v59  }
  0xe2   :  { %v378_v58 = vpop.permute.xlu0 %377  }
  0xe3   :  { %380 = vst.msk [vmem:[#allocation0] sm:$0x1] %vm379_vm11, %v378_v58  }
  0xe4   :  { %v398_v61 = vpop.permute.xlu1 %397  }
  0xe5   :  { %400 = vst.msk [vmem:[#allocation0] sm:$0x1] %vm399_vm14, %v398_v61  }
  0xe6   :  { %v391_v60 = vpop.permute.xlu0 %390  }
  0xe7   :  { %394 = vst.msk [vmem:[#allocation0 + $0x1] sm:$0x1] %vm392_vm13, %v391_v60  }
  0xe8   :  { %v411_v63 = vpop.permute.xlu1 %410  }
  0xe9   :  { %414 = vst.msk [vmem:[#allocation0 + $0x1] sm:$0x1] %vm412_vm0, %v411_v63  }
  0xea   :  { %v404_v62 = vpop.permute.xlu0 %403  }
  0xeb   :  { %407 = vst.msk [vmem:[#allocation0 + $0x2] sm:$0x1] %vm405_vm15, %v404_v62  }
  0xec   :  { %v424_v1 = vpop.permute.xlu1 %423  }
  0xed   :  { %427 = vst.msk [vmem:[#allocation0 + $0x2] sm:$0x1] %vm425_vm2, %v424_v1  }
  0xee   :  { %v418_v0 = vpop.permute.xlu0 %417  }
  0xef   :  { %420 = vst.msk [vmem:[#allocation0] sm:$0x1] %vm419_vm1, %v418_v0  }
  0xf2   :  { %v431_v2 = vpop.permute.xlu0 %430  }
  0xf3   :  { %434 = vst.msk [vmem:[#allocation0 + $0x1] sm:$0x1] %vm432_vm3, %v431_v2  }
  0xfa   :  { %v438_v3 = vld [vmem:[#allocation0] sm:$0xf] }
  0xfb   :  { %440 = vst [vmem:[%s844_s1] sm:$0xf] %v438_v3 }

// kernel: transformer_model_forward.7
= control target key start
LH: loop header
LB: loop body
LE: loop exit
PB: predicated region body
PF: predicated region fallthrough
CT: control target
= control target key end

     0   :  { %v1875_v47 = vmov 1983009808   ;;  %v356_v49 = vlaneseq  ;;  %s2939_s0 = inlined_call_operand.vmem [shape: f32[2,2560], index: 0, kind: input, shape index: {}]   ;;  %s2940_s1 = inlined_call_operand.vmem [shape: f32[2560,3], index: 1, kind: input, shape index: {}]   ;;  %s2941_s2 = inlined_call_operand.vmem [shape: f32[1,3], index: 2, kind: input, shape index: {}]   ;;  %s2942_s3 = inlined_call_operand.hbm [shape: f32[2,3], index: 3, kind: output, shape index: {}]  }
   0x1   :  { %v36_v0 = vld [vmem:[%s2940_s1 + $0x80] sm:$0xff]  ;;  %v37_v1 = vld [vmem:[%s2940_s1 + $0x88] sm:$0xff]  ;;  %v38_v11 = vld [vmem:[%s2940_s1 + $0x90] sm:$0xff]  ;;  %v354_v48 = vunpack.c.l.s4 %v1875_v47 }
   0x2   :  { %v20_v2 = vld [vmem:[%s2940_s1] sm:$0xff]  ;;  %v1524_v3 = vpack.c.bf16 %v37_v1, %v36_v0  ;;  %v21_v4 = vld [vmem:[%s2940_s1 + $0x8] sm:$0xff]  ;;  %v39_v13 = vld [vmem:[%s2940_s1 + $0x98] sm:$0xff]  ;;  %v357_v0 = vshrl.u32 %v356_v49, 7 }
   0x3   :  { %v68_v5 = vld [vmem:[%s2940_s1 + $0x180] sm:$0xff]  ;;  %v69_v6 = vld [vmem:[%s2940_s1 + $0x188] sm:$0xff]  ;;  %v1526_v7 = vpack.c.bf16 %v21_v4, %v20_v2  ;;  %v22_v14 = vld [vmem:[%s2940_s1 + $0x10] sm:$0xff]  ;;  %v1528_v16 = vpack.c.bf16 %v39_v13, %v38_v11  ;;  %v355_v63 = vunpack.c.0.s8 %v354_v48 }
   0x4   :  { %v1556_v8 = vpack.c.bf16 %v69_v6, %v68_v5  ;;  %v52_v9 = vld [vmem:[%s2940_s1 + $0x100] sm:$0xff]  ;;  %v53_v10 = vld [vmem:[%s2940_s1 + $0x108] sm:$0xff]  ;;  %1525 = vmatprep.subr.bf16.mxu0 %v1524_v3  ;;  %v23_v15 = vld [vmem:[%s2940_s1 + $0x18] sm:$0xff] }
   0x5   :  { %v1558_v12 = vpack.c.bf16 %v53_v10, %v52_v9  ;;  %1527 = vmatpush3.bf16.msra.mxu0 %v1526_v7  ;;  %v1530_v17 = vpack.c.bf16 %v23_v15, %v22_v14  ;;  %v70_v18 = vld [vmem:[%s2940_s1 + $0x190] sm:$0xff]  ;;  %v71_v19 = vld [vmem:[%s2940_s1 + $0x198] sm:$0xff]  ;;  %v40_v23 = vld [vmem:[%s2940_s1 + $0xa0] sm:$0xff]  ;;  %v2047_v13 = vsub.s32 %v355_v63, %v357_v0 }
   0x6   :  { %1557 = vmatprep.subr.bf16.mxu1 %v1556_v8  ;;  %v54_v20 = vld [vmem:[%s2940_s1 + $0x110] sm:$0xff]  ;;  %v1560_v21 = vpack.c.bf16 %v71_v19, %v70_v18  ;;  %v55_v22 = vld [vmem:[%s2940_s1 + $0x118] sm:$0xff]  ;;  %v41_v24 = vld [vmem:[%s2940_s1 + $0xa8] sm:$0xff]  ;;  %1529 = vmatprep.subr.bf16.mxu0 %v1528_v16 }
   0x7   :  { %1559 = vmatpush3.bf16.msra.mxu1 %v1558_v12  ;;  %v1562_v25 = vpack.c.bf16 %v55_v22, %v54_v20  ;;  %v1532_v26 = vpack.c.bf16 %v41_v24, %v40_v23  ;;  %v24_v27 = vld [vmem:[%s2940_s1 + $0x20] sm:$0xff]  ;;  %v25_v28 = vld [vmem:[%s2940_s1 + $0x28] sm:$0xff]  ;;  %v42_v35 = vld [vmem:[%s2940_s1 + $0xb0] sm:$0xff] }
   0x8   :  { %v72_v29 = vld [vmem:[%s2940_s1 + $0x1a0] sm:$0xff]  ;;  %1561 = vmatprep.subr.bf16.mxu1 %v1560_v21  ;;  %v73_v30 = vld [vmem:[%s2940_s1 + $0x1a8] sm:$0xff]  ;;  %v1534_v33 = vpack.c.bf16 %v25_v28, %v24_v27  ;;  %v43_v36 = vld [vmem:[%s2940_s1 + $0xb8] sm:$0xff] }
   0x9   :  { %v56_v31 = vld [vmem:[%s2940_s1 + $0x120] sm:$0xff]  ;;  %v57_v32 = vld [vmem:[%s2940_s1 + $0x128] sm:$0xff]  ;;  %1531 = vmatpush3.bf16.msra.mxu0 %v1530_v17  ;;  %v1564_v34 = vpack.c.bf16 %v73_v30, %v72_v29  ;;  %v26_v37 = vld [vmem:[%s2940_s1 + $0x30] sm:$0xff]  ;;  %v1536_v39 = vpack.c.bf16 %v43_v36, %v42_v35 }
   0xa   :  { %1533 = vmatprep.subr.bf16.mxu0 %v1532_v26  ;;  %v1566_v38 = vpack.c.bf16 %v57_v32, %v56_v31  ;;  %v27_v40 = vld [vmem:[%s2940_s1 + $0x38] sm:$0xff]  ;;  %v74_v41 = vld [vmem:[%s2940_s1 + $0x1b0] sm:$0xff]  ;;  %v44_v46 = vld [vmem:[%s2940_s1 + $0xc0] sm:$0xff] }
   0xb   :  { %1563 = vmatpush3.bf16.msra.mxu1 %v1562_v25  ;;  %v75_v42 = vld [vmem:[%s2940_s1 + $0x1b8] sm:$0xff]  ;;  %v58_v44 = vld [vmem:[%s2940_s1 + $0x130] sm:$0xff]  ;;  %v45_v50 = vld [vmem:[%s2940_s1 + $0xc8] sm:$0xff]  ;;  %v1538_v51 = vpack.c.bf16 %v27_v40, %v26_v37 }
   0xc   :  { %1565 = vmatprep.subr.bf16.mxu1 %v1564_v34  ;;  %v1568_v43 = vpack.c.bf16 %v75_v42, %v74_v41  ;;  %v59_v45 = vld [vmem:[%s2940_s1 + $0x138] sm:$0xff]  ;;  %v76_v52 = vld [vmem:[%s2940_s1 + $0x1c0] sm:$0xff]  ;;  %v77_v53 = vld [vmem:[%s2940_s1 + $0x1c8] sm:$0xff]  ;;  %v1540_v55 = vpack.c.bf16 %v45_v50, %v44_v46 }
   0xd   :  { %1535 = vmatpush3.bf16.msra.mxu0 %v1534_v33  ;;  %v1570_v54 = vpack.c.bf16 %v59_v45, %v58_v44  ;;  %v28_v56 = vld [vmem:[%s2940_s1 + $0x40] sm:$0xff]  ;;  %v29_v57 = vld [vmem:[%s2940_s1 + $0x48] sm:$0xff]  ;;  %v1572_v59 = vpack.c.bf16 %v77_v53, %v76_v52  ;;  %v46_v61 = vld [vmem:[%s2940_s1 + $0xd0] sm:$0xff] }
   0xe   :  { %1537 = vmatprep.subr.bf16.mxu0 %v1536_v39  ;;  %v60_v58 = vld [vmem:[%s2940_s1 + $0x140] sm:$0xff]  ;;  %v61_v60 = vld [vmem:[%s2940_s1 + $0x148] sm:$0xff]  ;;  %v47_v62 = vld [vmem:[%s2940_s1 + $0xd8] sm:$0xff]  ;;  %v1542_v3 = vpack.c.bf16 %v29_v57, %v28_v56 }
   0xf   :  { %1567 = vmatpush3.bf16.msra.mxu1 %v1566_v38  ;;  %v78_v1 = vld [vmem:[%s2940_s1 + $0x1d0] sm:$0xff]  ;;  %v79_v2 = vld [vmem:[%s2940_s1 + $0x1d8] sm:$0xff]  ;;  %v1574_v4 = vpack.c.bf16 %v61_v60, %v60_v58  ;;  %v1544_v5 = vpack.c.bf16 %v47_v62, %v46_v61  ;;  %v48_v11 = vld [vmem:[%s2940_s1 + $0xe0] sm:$0xff] }
  0x10   :  { %1569 = vmatprep.subr.bf16.mxu1 %v1568_v43  ;;  %v30_v6 = vld [vmem:[%s2940_s1 + $0x50] sm:$0xff]  ;;  %v31_v7 = vld [vmem:[%s2940_s1 + $0x58] sm:$0xff]  ;;  %v1576_v9 = vpack.c.bf16 %v79_v2, %v78_v1  ;;  %v49_v12 = vld [vmem:[%s2940_s1 + $0xe8] sm:$0xff] }
  0x11   :  { %1539 = vmatpush3.bf16.msra.mxu0 %v1538_v51  ;;  %v62_v8 = vld [vmem:[%s2940_s1 + $0x150] sm:$0xff]  ;;  %v63_v10 = vld [vmem:[%s2940_s1 + $0x158] sm:$0xff]  ;;  %v80_v14 = vld [vmem:[%s2940_s1 + $0x1e0] sm:$0xff]  ;;  %v1546_v16 = vpack.c.bf16 %v31_v7, %v30_v6  ;;  %v1548_v19 = vpack.c.bf16 %v49_v12, %v48_v11 }
  0x12   :  { %1541 = vmatprep.subr.bf16.mxu0 %v1540_v55  ;;  %v81_v15 = vld [vmem:[%s2940_s1 + $0x1e8] sm:$0xff]  ;;  %v32_v17 = vld [vmem:[%s2940_s1 + $0x60] sm:$0xff]  ;;  %v1578_v18 = vpack.c.bf16 %v63_v10, %v62_v8  ;;  %v50_v25 = vld [vmem:[%s2940_s1 + $0xf0] sm:$0xff] }
  0x13   :  { %1571 = vmatpush3.bf16.msra.mxu1 %v1570_v54  ;;  %v33_v20 = vld [vmem:[%s2940_s1 + $0x68] sm:$0xff]  ;;  %v64_v21 = vld [vmem:[%s2940_s1 + $0x160] sm:$0xff]  ;;  %v1580_v23 = vpack.c.bf16 %v81_v15, %v80_v14  ;;  %v51_v26 = vld [vmem:[%s2940_s1 + $0xf8] sm:$0xff] }
  0x14   :  { %1573 = vmatprep.subr.bf16.mxu1 %v1572_v59  ;;  %v15_v22 = vld [vmem:[%s2939_s0] sm:$0xff]  ;;  %v65_v24 = vld [vmem:[%s2940_s1 + $0x168] sm:$0xff]  ;;  %v82_v29 = vld [vmem:[%s2940_s1 + $0x1f0] sm:$0xff]  ;;  %v1550_v31 = vpack.c.bf16 %v33_v20, %v32_v17  ;;  %v1552_v35 = vpack.c.bf16 %v51_v26, %v50_v25 }
  0x15   :  { %1543 = vmatpush3.bf16.msra.mxu0 %v1542_v3  ;;  %v359_v27 = vrot.slane %v15_v22, %v2047_v13  ;;  %v352_v28 = vcombine.high %v15_v22, %v15_v22  ;;  %v83_v30 = vld [vmem:[%s2940_s1 + $0x1f8] sm:$0xff]  ;;  %v1582_v34 = vpack.c.bf16 %v65_v24, %v64_v21  ;;  %v34_v36 = vld [vmem:[%s2940_s1 + $0x70] sm:$0xff]  ;;  %v100_v41 = vld [vmem:[%s2940_s1 + $0x280] sm:$0xff] }
  0x16   :  { %1545 = vmatprep.subr.bf16.mxu0 %v1544_v5  ;;  %v35_v37 = vld [vmem:[%s2940_s1 + $0x78] sm:$0xff]  ;;  %v66_v38 = vld [vmem:[%s2940_s1 + $0x170] sm:$0xff]  ;;  %v1584_v39 = vpack.c.bf16 %v83_v30, %v82_v29  ;;  %v101_v42 = vld [vmem:[%s2940_s1 + $0x288] sm:$0xff] }
  0x17   :  { %1575 = vmatpush3.bf16.msra.mxu1 %v1574_v4  ;;  %v367_v32 = vcombine.high %v359_v27, %v359_v27  ;;  %v366_v33 = vrot.slane %v352_v28, %v2047_v13  ;;  %v67_v40 = vld [vmem:[%s2940_s1 + $0x178] sm:$0xff]  ;;  %v132_v44 = vld [vmem:[%s2940_s1 + $0x380] sm:$0xff]  ;;  %v133_v45 = vld [vmem:[%s2940_s1 + $0x388] sm:$0xff]  ;;  %v1554_v46 = vpack.c.bf16 %v35_v37, %v34_v36  ;;  %v1588_v48 = vpack.c.bf16 %v101_v42, %v100_v41 }
  0x18   :  { %1577 = vmatprep.subr.bf16.mxu1 %v1576_v9  ;;  %v1586_v47 = vpack.c.bf16 %v67_v40, %v66_v38  ;;  %v84_v49 = vld [vmem:[%s2940_s1 + $0x200] sm:$0xff]  ;;  %v85_v50 = vld [vmem:[%s2940_s1 + $0x208] sm:$0xff]  ;;  %v1620_v52 = vpack.c.bf16 %v133_v45, %v132_v44  ;;  %v102_v54 = vld [vmem:[%s2940_s1 + $0x290] sm:$0xff] }
  0x19   :  { %1547 = vmatpush3.bf16.msra.mxu0 %v1546_v16  ;;  %521 = vmatprep.mubr.f32.mxu0 %v367_v32  ;;  %v368_v43 = vcombine.high %v366_v33, %v366_v33  ;;  %v116_v51 = vld [vmem:[%s2940_s1 + $0x300] sm:$0xff]  ;;  %v117_v53 = vld [vmem:[%s2940_s1 + $0x308] sm:$0xff]  ;;  %v103_v55 = vld [vmem:[%s2940_s1 + $0x298] sm:$0xff]  ;;  %v1590_v58 = vpack.c.bf16 %v85_v50, %v84_v49 }
  0x1a   :  { %1549 = vmatprep.subr.bf16.mxu0 %v1548_v19  ;;  %v134_v56 = vld [vmem:[%s2940_s1 + $0x390] sm:$0xff]  ;;  %v135_v57 = vld [vmem:[%s2940_s1 + $0x398] sm:$0xff]  ;;  %v1622_v59 = vpack.c.bf16 %v117_v53, %v116_v51  ;;  %v1592_v60 = vpack.c.bf16 %v103_v55, %v102_v54  ;;  %v104_v2 = vld [vmem:[%s2940_s1 + $0x2a0] sm:$0xff] }
  0x1b   :  { %1579 = vmatpush3.bf16.msra.mxu1 %v1578_v18  ;;  %591 = vmatprep.mubr.f32.mxu1 %v368_v43  ;;  %v86_v61 = vld [vmem:[%s2940_s1 + $0x210] sm:$0xff]  ;;  %v87_v62 = vld [vmem:[%s2940_s1 + $0x218] sm:$0xff]  ;;  %v1624_v0 = vpack.c.bf16 %v135_v57, %v134_v56  ;;  %v105_v3 = vld [vmem:[%s2940_s1 + $0x2a8] sm:$0xff] }
  0x1c   :  { %1581 = vmatprep.subr.bf16.mxu1 %v1580_v23  ;;  %v118_v63 = vld [vmem:[%s2940_s1 + $0x310] sm:$0xff]  ;;  %v119_v1 = vld [vmem:[%s2940_s1 + $0x318] sm:$0xff]  ;;  %v136_v4 = vld [vmem:[%s2940_s1 + $0x3a0] sm:$0xff]  ;;  %v1594_v6 = vpack.c.bf16 %v87_v62, %v86_v61  ;;  %v1596_v8 = vpack.c.bf16 %v105_v3, %v104_v2 }
  0x1d   :  { %1551 = vmatpush3.bf16.msra.mxu0 %v1550_v31  ;;  %v137_v5 = vld [vmem:[%s2940_s1 + $0x3a8] sm:$0xff]  ;;  %v1626_v7 = vpack.c.bf16 %v119_v1, %v118_v63  ;;  %v88_v9 = vld [vmem:[%s2940_s1 + $0x220] sm:$0xff]  ;;  %v106_v15 = vld [vmem:[%s2940_s1 + $0x2b0] sm:$0xff] }
  0x1e   :  { %1553 = vmatprep.subr.bf16.mxu0 %v1552_v35  ;;  %v89_v10 = vld [vmem:[%s2940_s1 + $0x228] sm:$0xff]  ;;  %v120_v11 = vld [vmem:[%s2940_s1 + $0x320] sm:$0xff]  ;;  %v1628_v12 = vpack.c.bf16 %v137_v5, %v136_v4  ;;  %v107_v16 = vld [vmem:[%s2940_s1 + $0x2b8] sm:$0xff] }
  0x1f   :  { %1583 = vmatpush3.bf16.msra.mxu1 %v1582_v34  ;;  %v121_v14 = vld [vmem:[%s2940_s1 + $0x328] sm:$0xff]  ;;  %v138_v17 = vld [vmem:[%s2940_s1 + $0x3b0] sm:$0xff]  ;;  %v139_v18 = vld [vmem:[%s2940_s1 + $0x3b8] sm:$0xff]  ;;  %v1598_v19 = vpack.c.bf16 %v89_v10, %v88_v9  ;;  %v1600_v21 = vpack.c.bf16 %v107_v16, %v106_v15 }
  0x20   :  { %1585 = vmatprep.subr.bf16.mxu1 %v1584_v39  ;;  %v1630_v20 = vpack.c.bf16 %v121_v14, %v120_v11  ;;  %v90_v22 = vld [vmem:[%s2940_s1 + $0x230] sm:$0xff]  ;;  %v91_v23 = vld [vmem:[%s2940_s1 + $0x238] sm:$0xff]  ;;  %v1632_v25 = vpack.c.bf16 %v139_v18, %v138_v17  ;;  %v109_v28 = vld [vmem:[%s2940_s1 + $0x2c8] sm:$0xff] }
  0x21   :  { %1555 = vmatpush3.bf16.msra.mxu0 %v1554_v46  ;;  %v122_v24 = vld [vmem:[%s2940_s1 + $0x330] sm:$0xff]  ;;  %v123_v26 = vld [vmem:[%s2940_s1 + $0x338] sm:$0xff]  ;;  %v140_v29 = vld [vmem:[%s2940_s1 + $0x3c0] sm:$0xff]  ;;  %v1602_v32 = vpack.c.bf16 %v91_v23, %v90_v22 }
  0x22   :  { %1589 = vmatprep.subr.bf16.mxu0 %v1588_v48  ;;  %v141_v30 = vld [vmem:[%s2940_s1 + $0x3c8] sm:$0xff]  ;;  %v1634_v35 = vpack.c.bf16 %v123_v26, %v122_v24  ;;  %v92_v37 = vld [vmem:[%s2940_s1 + $0x240] sm:$0xff]  ;;  %v110_v42 = vld [vmem:[%s2940_s1 + $0x2d0] sm:$0xff] }
  0x23   :  { %1587 = vmatpush3.bf16.msra.mxu1 %v1586_v47  ;;  %v16_v31 = vld [vmem:[%s2939_s0 + $0x8] sm:$0xff]  ;;  %v124_v39 = vld [vmem:[%s2940_s1 + $0x340] sm:$0xff]  ;;  %v1636_v40 = vpack.c.bf16 %v141_v30, %v140_v29  ;;  %v111_v43 = vld [vmem:[%s2940_s1 + $0x2d8] sm:$0xff] }
  0x24   :  { %1621 = vmatprep.subr.bf16.mxu1 %v1620_v52  ;;  %522 = vmatmul.mubr.f32.vlgmr.msra.gmra.mrb[0].mxu0 %v359_v27  ;;  %v108_v27 = vld [vmem:[%s2940_s1 + $0x2c0] sm:$0xff]  ;;  %v369_v34 = vcombine.high %v16_v31, %v16_v31  ;;  %v93_v38 = vld [vmem:[%s2940_s1 + $0x248] sm:$0xff]  ;;  %v142_v46 = vld [vmem:[%s2940_s1 + $0x3d0] sm:$0xff]  ;;  %v1608_v51 = vpack.c.bf16 %v111_v43, %v110_v42 }
  0x25   :  { %1591 = vmatpush3.bf16.msra.mxu0 %v1590_v58  ;;  %v1604_v36 = vpack.c.bf16 %v109_v28, %v108_v27  ;;  %v125_v41 = vld [vmem:[%s2940_s1 + $0x348] sm:$0xff]  ;;  %v143_v47 = vld [vmem:[%s2940_s1 + $0x3d8] sm:$0xff]  ;;  %v1606_v48 = vpack.c.bf16 %v93_v38, %v92_v37  ;;  %v94_v52 = vld [vmem:[%s2940_s1 + $0x250] sm:$0xff] }
  0x26   :  { %592 = vmatmul.mubr.f32.vlgmr.msra.gmra.mrb[0].mxu1 %v366_v33  ;;  %1593 = vmatprep.subr.bf16.mxu0 %v1592_v60  ;;  %v2208_v33 = vrot.slane %v16_v31, %v2047_v13  ;;  %v2231_v45 = vrot.slane %v369_v34, %v2047_v13  ;;  %v1638_v50 = vpack.c.bf16 %v125_v41, %v124_v39  ;;  %v95_v53 = vld [vmem:[%s2940_s1 + $0x258] sm:$0xff]  ;;  %v126_v54 = vld [vmem:[%s2940_s1 + $0x350] sm:$0xff]  ;;  %v112_v57 = vld [vmem:[%s2940_s1 + $0x2e0] sm:$0xff] }
  0x27   :  { %1623 = vmatpush3.bf16.msra.mxu1 %v1622_v59  ;;  %v1640_v55 = vpack.c.bf16 %v143_v47, %v142_v46  ;;  %v127_v56 = vld [vmem:[%s2940_s1 + $0x358] sm:$0xff]  ;;  %v113_v58 = vld [vmem:[%s2940_s1 + $0x2e8] sm:$0xff]  ;;  %v144_v59 = vld [vmem:[%s2940_s1 + $0x3e0] sm:$0xff]  ;;  %v1610_v61 = vpack.c.bf16 %v95_v53, %v94_v52 }
  0x28   :  { %1625 = vmatprep.subr.bf16.mxu1 %v1624_v0  ;;  %v384_v44 = vcombine.high %v2208_v33, %v2208_v33  ;;  %v385_v49 = vcombine.high %v2231_v45, %v2231_v45  ;;  %v145_v60 = vld [vmem:[%s2940_s1 + $0x3e8] sm:$0xff]  ;;  %v1642_v62 = vpack.c.bf16 %v127_v56, %v126_v54  ;;  %v1612_v63 = vpack.c.bf16 %v113_v58, %v112_v57  ;;  %v96_v0 = vld [vmem:[%s2940_s1 + $0x260] sm:$0xff]  ;;  %v114_v5 = vld [vmem:[%s2940_s1 + $0x2f0] sm:$0xff] }
  0x29   :  { %1595 = vmatpush3.bf16.msra.mxu0 %v1594_v6  ;;  %v97_v1 = vld [vmem:[%s2940_s1 + $0x268] sm:$0xff]  ;;  %v128_v2 = vld [vmem:[%s2940_s1 + $0x360] sm:$0xff]  ;;  %v1644_v3 = vpack.c.bf16 %v145_v60, %v144_v59  ;;  %v115_v6 = vld [vmem:[%s2940_s1 + $0x2f8] sm:$0xff] }
  0x2a   :  { %1597 = vmatprep.subr.bf16.mxu0 %v1596_v8  ;;  %661 = vmatprep.mubr.f32.mxu0 %v384_v44  ;;  %v129_v4 = vld [vmem:[%s2940_s1 + $0x368] sm:$0xff]  ;;  %v147_v8 = vld [vmem:[%s2940_s1 + $0x3f8] sm:$0xff]  ;;  %v1614_v9 = vpack.c.bf16 %v97_v1, %v96_v0  ;;  %v1616_v11 = vpack.c.bf16 %v115_v6, %v114_v5  ;;  %v130_v15 = vld [vmem:[%s2940_s1 + $0x370] sm:$0xff] }
  0x2b   :  { %1627 = vmatpush3.bf16.msra.mxu1 %v1626_v7  ;;  %731 = vmatprep.mubr.f32.mxu1 %v385_v49  ;;  %v146_v7 = vld [vmem:[%s2940_s1 + $0x3f0] sm:$0xff]  ;;  %v1646_v10 = vpack.c.bf16 %v129_v4, %v128_v2  ;;  %v99_v14 = vld [vmem:[%s2940_s1 + $0x278] sm:$0xff]  ;;  %v164_v18 = vld [vmem:[%s2940_s1 + $0x480] sm:$0xff] }
  0x2c   :  { %1629 = vmatprep.subr.bf16.mxu1 %v1628_v12  ;;  %v98_v12 = vld [vmem:[%s2940_s1 + $0x270] sm:$0xff]  ;;  %v1648_v16 = vpack.c.bf16 %v147_v8, %v146_v7  ;;  %v131_v17 = vld [vmem:[%s2940_s1 + $0x378] sm:$0xff]  ;;  %v148_v23 = vld [vmem:[%s2940_s1 + $0x400] sm:$0xff] }
  0x2d   :  { %1599 = vmatpush3.bf16.msra.mxu0 %v1598_v19  ;;  %v165_v19 = vld [vmem:[%s2940_s1 + $0x488] sm:$0xff]  ;;  %v1618_v22 = vpack.c.bf16 %v99_v14, %v98_v12  ;;  %v1650_v24 = vpack.c.bf16 %v131_v17, %v130_v15  ;;  %v180_v27 = vld [vmem:[%s2940_s1 + $0x500] sm:$0xff]  ;;  %v166_v30 = vld [vmem:[%s2940_s1 + $0x490] sm:$0xff] }
  0x2e   :  { %1601 = vmatprep.subr.bf16.mxu0 %v1600_v21  ;;  %v197_v21 = vld [vmem:[%s2940_s1 + $0x588] sm:$0xff]  ;;  %v167_v31 = vld [vmem:[%s2940_s1 + $0x498] sm:$0xff]  ;;  %v17_v37 = vld [vmem:[%s2939_s0 + $0x10] sm:$0xff] }
  0x2f   :  { %1631 = vmatpush3.bf16.msra.mxu1 %v1630_v20  ;;  %v196_v20 = vld [vmem:[%s2940_s1 + $0x580] sm:$0xff]  ;;  %v149_v26 = vld [vmem:[%s2940_s1 + $0x408] sm:$0xff]  ;;  %v199_v34 = vld [vmem:[%s2940_s1 + $0x598] sm:$0xff]  ;;  %v1656_v38 = vpack.c.bf16 %v167_v31, %v166_v30  ;;  %v2350_v42 = vrot.slane %v17_v37, %v2047_v13  ;;  %v386_v43 = vcombine.high %v17_v37, %v17_v37 }
  0x30   :  { %1633 = vmatprep.subr.bf16.mxu1 %v1632_v25  ;;  %v1652_v25 = vpack.c.bf16 %v165_v19, %v164_v18  ;;  %v181_v28 = vld [vmem:[%s2940_s1 + $0x508] sm:$0xff]  ;;  %v1684_v29 = vpack.c.bf16 %v197_v21, %v196_v20  ;;  %v150_v39 = vld [vmem:[%s2940_s1 + $0x410] sm:$0xff]  ;;  %v183_v46 = vld [vmem:[%s2940_s1 + $0x518] sm:$0xff] }
  0x31   :  { %1603 = vmatpush3.bf16.msra.mxu0 %v1602_v32  ;;  %v198_v32 = vld [vmem:[%s2940_s1 + $0x590] sm:$0xff]  ;;  %v168_v47 = vld [vmem:[%s2940_s1 + $0x4a0] sm:$0xff]  ;;  %v2371_v52 = vrot.slane %v386_v43, %v2047_v13  ;;  %v153_v56 = vld [vmem:[%s2940_s1 + $0x428] sm:$0xff] }
  0x32   :  { %1605 = vmatprep.subr.bf16.mxu0 %v1604_v36  ;;  %v1686_v36 = vpack.c.bf16 %v181_v28, %v180_v27  ;;  %v182_v41 = vld [vmem:[%s2940_s1 + $0x510] sm:$0xff]  ;;  %v1688_v44 = vpack.c.bf16 %v199_v34, %v198_v32  ;;  %v200_v49 = vld [vmem:[%s2940_s1 + $0x5a0] sm:$0xff]  ;;  %v185_v59 = vld [vmem:[%s2940_s1 + $0x528] sm:$0xff] }
  0x33   :  { %1635 = vmatpush3.bf16.msra.mxu1 %v1634_v35  ;;  %v1654_v35 = vpack.c.bf16 %v149_v26, %v148_v23  ;;  %v184_v57 = vld [vmem:[%s2940_s1 + $0x520] sm:$0xff]  ;;  %v170_v60 = vld [vmem:[%s2940_s1 + $0x4b0] sm:$0xff]  ;;  %v155_v4 = vld [vmem:[%s2940_s1 + $0x438] sm:$0xff] }
  0x34   :  { %1637 = vmatprep.subr.bf16.mxu1 %v1636_v40  ;;  %v151_v40 = vld [vmem:[%s2940_s1 + $0x418] sm:$0xff]  ;;  %v1694_v1 = vpack.c.bf16 %v185_v59, %v184_v57  ;;  %v186_v5 = vld [vmem:[%s2940_s1 + $0x530] sm:$0xff]  ;;  %v172_v8 = vld [vmem:[%s2940_s1 + $0x4c0] sm:$0xff] }
  0x35   :  { %1607 = vmatpush3.bf16.msra.mxu0 %v1606_v48  ;;  %v169_v48 = vld [vmem:[%s2940_s1 + $0x4a8] sm:$0xff]  ;;  %v1658_v53 = vpack.c.bf16 %v151_v40, %v150_v39  ;;  %v187_v7 = vld [vmem:[%s2940_s1 + $0x538] sm:$0xff]  ;;  %v188_v18 = vld [vmem:[%s2940_s1 + $0x540] sm:$0xff] }
  0x36   :  { %1609 = vmatprep.subr.bf16.mxu0 %v1608_v51  ;;  %v401_v51 = vcombine.high %v2350_v42, %v2350_v42  ;;  %v1660_v54 = vpack.c.bf16 %v169_v48, %v168_v47  ;;  %v1698_v14 = vpack.c.bf16 %v187_v7, %v186_v5  ;;  %v157_v17 = vld [vmem:[%s2940_s1 + $0x448] sm:$0xff]  ;;  %v174_v21 = vld [vmem:[%s2940_s1 + $0x4d0] sm:$0xff]  ;;  %v191_v32 = vld [vmem:[%s2940_s1 + $0x558] sm:$0xff] }
  0x37   :  { %1639 = vmatpush3.bf16.msra.mxu1 %v1638_v50  ;;  %v201_v50 = vld [vmem:[%s2940_s1 + $0x5a8] sm:$0xff]  ;;  %v206_v23 = vld [vmem:[%s2940_s1 + $0x5d0] sm:$0xff]  ;;  %v176_v34 = vld [vmem:[%s2940_s1 + $0x4e0] sm:$0xff] }
  0x38   :  { %1641 = vmatprep.subr.bf16.mxu1 %v1640_v55  ;;  %v152_v55 = vld [vmem:[%s2940_s1 + $0x420] sm:$0xff]  ;;  %v1692_v58 = vpack.c.bf16 %v201_v50, %v200_v49  ;;  %v189_v20 = vld [vmem:[%s2940_s1 + $0x548] sm:$0xff]  ;;  %v158_v28 = vld [vmem:[%s2940_s1 + $0x450] sm:$0xff] }
  0x39   :  { %1611 = vmatpush3.bf16.msra.mxu0 %v1610_v61  ;;  %v171_v61 = vld [vmem:[%s2940_s1 + $0x4b8] sm:$0xff]  ;;  %v1662_v0 = vpack.c.bf16 %v153_v56, %v152_v55  ;;  %v1702_v26 = vpack.c.bf16 %v189_v20, %v188_v18  ;;  %v190_v30 = vld [vmem:[%s2940_s1 + $0x550] sm:$0xff]  ;;  %v209_v37 = vld [vmem:[%s2940_s1 + $0x5e8] sm:$0xff] }
  0x3a   :  { %1613 = vmatprep.subr.bf16.mxu0 %v1612_v63  ;;  %v203_v63 = vld [vmem:[%s2940_s1 + $0x5b8] sm:$0xff]  ;;  %v1664_v2 = vpack.c.bf16 %v171_v61, %v170_v60  ;;  %v1706_v39 = vpack.c.bf16 %v191_v32, %v190_v30  ;;  %v161_v43 = vld [vmem:[%s2940_s1 + $0x468] sm:$0xff]  ;;  %v178_v48 = vld [vmem:[%s2940_s1 + $0x4f0] sm:$0xff] }
  0x3b   :  { %1643 = vmatpush3.bf16.msra.mxu1 %v1642_v62  ;;  %v202_v62 = vld [vmem:[%s2940_s1 + $0x5b0] sm:$0xff]  ;;  %v193_v47 = vld [vmem:[%s2940_s1 + $0x568] sm:$0xff]  ;;  %v179_v49 = vld [vmem:[%s2940_s1 + $0x4f8] sm:$0xff] }
  0x3c   :  { %1645 = vmatprep.subr.bf16.mxu1 %v1644_v3  ;;  %v154_v3 = vld [vmem:[%s2940_s1 + $0x430] sm:$0xff]  ;;  %v1696_v6 = vpack.c.bf16 %v203_v63, %v202_v62  ;;  %v1680_v55 = vpack.c.bf16 %v179_v49, %v178_v48  ;;  %v163_v57 = vld [vmem:[%s2940_s1 + $0x478] sm:$0xff]  ;;  %v228_v60 = vld [vmem:[%s2940_s1 + $0x680] sm:$0xff] }
  0x3d   :  { %1615 = vmatpush3.bf16.msra.mxu0 %v1614_v9  ;;  %v173_v9 = vld [vmem:[%s2940_s1 + $0x4c8] sm:$0xff]  ;;  %v1666_v12 = vpack.c.bf16 %v155_v4, %v154_v3  ;;  %v210_v50 = vld [vmem:[%s2940_s1 + $0x5f0] sm:$0xff]  ;;  %v195_v59 = vld [vmem:[%s2940_s1 + $0x578] sm:$0xff] }
  0x3e   :  { %1617 = vmatprep.subr.bf16.mxu0 %v1616_v11  ;;  %v205_v11 = vld [vmem:[%s2940_s1 + $0x5c8] sm:$0xff]  ;;  %v1668_v15 = vpack.c.bf16 %v173_v9, %v172_v8  ;;  %v162_v56 = vld [vmem:[%s2940_s1 + $0x470] sm:$0xff]  ;;  %v260_v62 = vld [vmem:[%s2940_s1 + $0x780] sm:$0xff] }
  0x3f   :  { %1647 = vmatpush3.bf16.msra.mxu1 %v1646_v10  ;;  %v204_v10 = vld [vmem:[%s2940_s1 + $0x5c0] sm:$0xff]  ;;  %v229_v61 = vld [vmem:[%s2940_s1 + $0x688] sm:$0xff]  ;;  %v230_v9 = vld [vmem:[%s2940_s1 + $0x690] sm:$0xff] }
  0x40   :  { %1649 = vmatprep.subr.bf16.mxu1 %v1648_v16  ;;  %v156_v16 = vld [vmem:[%s2940_s1 + $0x440] sm:$0xff]  ;;  %v1700_v19 = vpack.c.bf16 %v205_v11, %v204_v10  ;;  %v261_v63 = vld [vmem:[%s2940_s1 + $0x788] sm:$0xff]  ;;  %v1716_v3 = vpack.c.bf16 %v229_v61, %v228_v60  ;;  %v231_v10 = vld [vmem:[%s2940_s1 + $0x698] sm:$0xff] }
  0x41   :  { %1619 = vmatpush3.bf16.msra.mxu0 %v1618_v22  ;;  %v175_v22 = vld [vmem:[%s2940_s1 + $0x4d8] sm:$0xff]  ;;  %v212_v4 = vld [vmem:[%s2940_s1 + $0x600] sm:$0xff]  ;;  %v213_v5 = vld [vmem:[%s2940_s1 + $0x608] sm:$0xff]  ;;  %v1748_v7 = vpack.c.bf16 %v261_v63, %v260_v62  ;;  %v1720_v18 = vpack.c.bf16 %v231_v10, %v230_v9 }
  0x42   :  { %1653 = vmatprep.subr.bf16.mxu0 %v1652_v25  ;;  %v1670_v25 = vpack.c.bf16 %v157_v17, %v156_v16  ;;  %v1672_v27 = vpack.c.bf16 %v175_v22, %v174_v21  ;;  %v245_v8 = vld [vmem:[%s2940_s1 + $0x708] sm:$0xff]  ;;  %v1718_v16 = vpack.c.bf16 %v213_v5, %v212_v4  ;;  %v215_v20 = vld [vmem:[%s2940_s1 + $0x618] sm:$0xff]  ;;  %v246_v21 = vld [vmem:[%s2940_s1 + $0x710] sm:$0xff] }
  0x43   :  { %1651 = vmatpush3.bf16.msra.mxu1 %v1650_v24  ;;  %v207_v24 = vld [vmem:[%s2940_s1 + $0x5d8] sm:$0xff]  ;;  %v250_v48 = vld [vmem:[%s2940_s1 + $0x730] sm:$0xff] }
  0x44   :  { %1685 = vmatprep.subr.bf16.mxu1 %v1684_v29  ;;  %662 = vmatmul.mubr.f32.vlgmr.msra.gmra.mrb[2].mxu0 %v2208_v33  ;;  %v1690_v33 = vpack.c.bf16 %v183_v46, %v182_v41  ;;  %v159_v29 = vld [vmem:[%s2940_s1 + $0x458] sm:$0xff]  ;;  %v1704_v31 = vpack.c.bf16 %v207_v24, %v206_v23  ;;  %v160_v41 = vld [vmem:[%s2940_s1 + $0x460] sm:$0xff] }
  0x45   :  { %1655 = vmatpush3.bf16.msra.mxu0 %v1654_v35  ;;  %801 = vmatprep.mubr.f32.mxu0 %v401_v51  ;;  %v177_v35 = vld [vmem:[%s2940_s1 + $0x4e8] sm:$0xff]  ;;  %v211_v51 = vld [vmem:[%s2940_s1 + $0x5f8] sm:$0xff]  ;;  %v232_v24 = vld [vmem:[%s2940_s1 + $0x6a0] sm:$0xff] }
  0x46   :  { %732 = vmatmul.mubr.f32.vlgmr.msra.gmra.mrb[2].mxu1 %v2231_v45  ;;  %1657 = vmatprep.subr.bf16.mxu0 %v1656_v38  ;;  %v402_v45 = vcombine.high %v2371_v52, %v2371_v52  ;;  %v1674_v38 = vpack.c.bf16 %v159_v29, %v158_v28  ;;  %v1676_v40 = vpack.c.bf16 %v177_v35, %v176_v34  ;;  %v247_v23 = vld [vmem:[%s2940_s1 + $0x718] sm:$0xff]  ;;  %v265_v28 = vld [vmem:[%s2940_s1 + $0x7a8] sm:$0xff]  ;;  %v248_v35 = vld [vmem:[%s2940_s1 + $0x720] sm:$0xff] }
  0x47   :  { %1687 = vmatpush3.bf16.msra.mxu1 %v1686_v36  ;;  %v208_v36 = vld [vmem:[%s2940_s1 + $0x5e0] sm:$0xff]  ;;  %v217_v34 = vld [vmem:[%s2940_s1 + $0x628] sm:$0xff] }
  0x48   :  { %1689 = vmatprep.subr.bf16.mxu1 %v1688_v44  ;;  %871 = vmatprep.mubr.f32.mxu1 %v402_v45  ;;  %v192_v44 = vld [vmem:[%s2940_s1 + $0x560] sm:$0xff]  ;;  %v1708_v46 = vpack.c.bf16 %v209_v37, %v208_v36  ;;  %v194_v45 = vld [vmem:[%s2940_s1 + $0x570] sm:$0xff] }
  0x49   :  { %1659 = vmatpush3.bf16.msra.mxu0 %v1658_v53  ;;  %v1678_v53 = vpack.c.bf16 %v161_v43, %v160_v41  ;;  %v234_v37 = vld [vmem:[%s2940_s1 + $0x6b0] sm:$0xff] }
  0x4a   :  { %1661 = vmatprep.subr.bf16.mxu0 %v1660_v54  ;;  %v1710_v54 = vpack.c.bf16 %v193_v47, %v192_v44  ;;  %v219_v47 = vld [vmem:[%s2940_s1 + $0x638] sm:$0xff] }
  0x4b   :  { %1691 = vmatpush3.bf16.msra.mxu1 %v1690_v33  ;;  %v18_v33 = vld [vmem:[%s2939_s0 + $0x18] sm:$0xff] }
  0x4c   :  { %1693 = vmatprep.subr.bf16.mxu1 %v1692_v58  ;;  %v1712_v58 = vpack.c.bf16 %v211_v51, %v210_v50  ;;  %v2542_v11 = vrot.slane %v18_v33, %v2047_v13  ;;  %v251_v50 = vld [vmem:[%s2940_s1 + $0x738] sm:$0xff]  ;;  %v236_v51 = vld [vmem:[%s2940_s1 + $0x6c0] sm:$0xff] }
  0x4d   :  { %1663 = vmatpush3.bf16.msra.mxu0 %v1662_v0  ;;  %v403_v0 = vcombine.high %v18_v33, %v18_v33  ;;  %v268_v33 = vld [vmem:[%s2940_s1 + $0x7c0] sm:$0xff] }
  0x4e   :  { %1665 = vmatprep.subr.bf16.mxu0 %v1664_v2  ;;  %v1714_v2 = vpack.c.bf16 %v195_v59, %v194_v45 }
  0x4f   :  { %1695 = vmatpush3.bf16.msra.mxu1 %v1694_v1  ;;  %v1682_v1 = vpack.c.bf16 %v163_v57, %v162_v56 }
  0x50   :  { %1697 = vmatprep.subr.bf16.mxu1 %v1696_v6  ;;  %v244_v6 = vld [vmem:[%s2940_s1 + $0x700] sm:$0xff] }
  0x51   :  { %1667 = vmatpush3.bf16.msra.mxu0 %v1666_v12  ;;  %v262_v12 = vld [vmem:[%s2940_s1 + $0x790] sm:$0xff]  ;;  %v1750_v17 = vpack.c.bf16 %v245_v8, %v244_v6 }
  0x52   :  { %1669 = vmatprep.subr.bf16.mxu0 %v1668_v15  ;;  %v2551_v15 = vrot.slane %v403_v0, %v2047_v13 }
  0x53   :  { %1699 = vmatpush3.bf16.msra.mxu1 %v1698_v14  ;;  %v263_v14 = vld [vmem:[%s2940_s1 + $0x798] sm:$0xff] }
  0x54   :  { %1701 = vmatprep.subr.bf16.mxu1 %v1700_v19  ;;  %v214_v19 = vld [vmem:[%s2940_s1 + $0x610] sm:$0xff]  ;;  %v1752_v22 = vpack.c.bf16 %v263_v14, %v262_v12  ;;  %v419_v29 = vcombine.high %v2551_v15, %v2551_v15 }
  0x55   :  { %1671 = vmatpush3.bf16.msra.mxu0 %v1670_v25  ;;  %v233_v25 = vld [vmem:[%s2940_s1 + $0x6a8] sm:$0xff]  ;;  %v1722_v30 = vpack.c.bf16 %v215_v20, %v214_v19 }
  0x56   :  { %1673 = vmatprep.subr.bf16.mxu0 %v1672_v27  ;;  %v264_v27 = vld [vmem:[%s2940_s1 + $0x7a0] sm:$0xff]  ;;  %v1724_v32 = vpack.c.bf16 %v233_v25, %v232_v24 }
  0x57   :  { %1703 = vmatpush3.bf16.msra.mxu1 %v1702_v26  ;;  %v418_v26 = vcombine.high %v2542_v11, %v2542_v11  ;;  %v1756_v36 = vpack.c.bf16 %v265_v28, %v264_v27 }
  0x58   :  { %1705 = vmatprep.subr.bf16.mxu1 %v1704_v31  ;;  %v1754_v31 = vpack.c.bf16 %v247_v23, %v246_v21 }
  0x59   :  { %1675 = vmatpush3.bf16.msra.mxu0 %v1674_v38  ;;  %v235_v38 = vld [vmem:[%s2940_s1 + $0x6b8] sm:$0xff] }
  0x5a   :  { %1677 = vmatprep.subr.bf16.mxu0 %v1676_v40  ;;  %v267_v40 = vld [vmem:[%s2940_s1 + $0x7b8] sm:$0xff]  ;;  %v1728_v44 = vpack.c.bf16 %v235_v38, %v234_v37 }
  0x5b   :  { %1707 = vmatpush3.bf16.msra.mxu1 %v1706_v39  ;;  %v266_v39 = vld [vmem:[%s2940_s1 + $0x7b0] sm:$0xff] }
  0x5c   :  { %1709 = vmatprep.subr.bf16.mxu1 %v1708_v46  ;;  %v218_v46 = vld [vmem:[%s2940_s1 + $0x630] sm:$0xff]  ;;  %v1760_v49 = vpack.c.bf16 %v267_v40, %v266_v39 }
  0x5d   :  { %1679 = vmatpush3.bf16.msra.mxu0 %v1678_v53  ;;  %v237_v53 = vld [vmem:[%s2940_s1 + $0x6c8] sm:$0xff] }
  0x5e   :  { %1681 = vmatprep.subr.bf16.mxu0 %v1680_v55  ;;  %v1730_v55 = vpack.c.bf16 %v219_v47, %v218_v46 }
  0x5f   :  { %1711 = vmatpush3.bf16.msra.mxu1 %v1710_v54  ;;  %v269_v54 = vld [vmem:[%s2940_s1 + $0x7c8] sm:$0xff] }
  0x60   :  { %1713 = vmatprep.subr.bf16.mxu1 %v1712_v58 }
  0x61   :  { %1683 = vmatpush3.bf16.msra.mxu0 %v1682_v1 }
  0x62   :  { %1717 = vmatprep.subr.bf16.mxu0 %v1716_v3 }
  0x63   :  { %1715 = vmatpush3.bf16.msra.mxu1 %v1714_v2 }
  0x64   :  { %1749 = vmatprep.subr.bf16.mxu1 %v1748_v7  ;;  %802 = vmatmul.mubr.f32.vlgmr.msra.gmra.mrb[4].mxu0 %v2350_v42  ;;  %v216_v42 = vld [vmem:[%s2940_s1 + $0x620] sm:$0xff] }
  0x65   :  { %1719 = vmatpush3.bf16.msra.mxu0 %v1718_v16  ;;  %941 = vmatprep.mubr.f32.mxu0 %v418_v26  ;;  %v1726_v41 = vpack.c.bf16 %v217_v34, %v216_v42 }
  0x66   :  { %872 = vmatmul.mubr.f32.vlgmr.msra.gmra.mrb[4].mxu1 %v2371_v52  ;;  %1721 = vmatprep.subr.bf16.mxu0 %v1720_v18  ;;  %v249_v52 = vld [vmem:[%s2940_s1 + $0x728] sm:$0xff] }
  0x67   :  { %1751 = vmatpush3.bf16.msra.mxu1 %v1750_v17  ;;  %1011 = vmatprep.mubr.f32.mxu1 %v419_v29  ;;  %v1758_v43 = vpack.c.bf16 %v249_v52, %v248_v35 }
  0x68   :  { %1753 = vmatprep.subr.bf16.mxu1 %v1752_v22 }
  0x69   :  { %1723 = vmatpush3.bf16.msra.mxu0 %v1722_v30 }
  0x6a   :  { %1725 = vmatprep.subr.bf16.mxu0 %v1724_v32 }
  0x6b   :  { %1755 = vmatpush3.bf16.msra.mxu1 %v1754_v31 }
  0x6c   :  { %1757 = vmatprep.subr.bf16.mxu1 %v1756_v36 }
  0x6d   :  { %1727 = vmatpush3.bf16.msra.mxu0 %v1726_v41 }
  0x6e   :  { %8 = vsyncpa [#allocation3], 0  ;;  %1729 = vmatprep.subr.bf16.mxu0 %v1728_v44  ;;  %v1762_v56 = vpack.c.bf16 %v251_v50, %v250_v48  ;;  %v1732_v57 = vpack.c.bf16 %v237_v53, %v236_v51  ;;  %v220_v45 = vld [vmem:[%s2940_s1 + $0x640] sm:$0xff]  ;;  %v221_v58 = vld [vmem:[%s2940_s1 + $0x648] sm:$0xff]  ;;  %v1764_v60 = vpack.c.bf16 %v269_v54, %v268_v33  ;;  %vm1157_vm0 = vcmask 17408  }
  0x6f   :  { %1759 = vmatpush3.bf16.msra.mxu1 %v1758_v43  ;;  %v252_v59 = vld [vmem:[%s2940_s1 + $0x740] sm:$0xff]  ;;  %v253_v61 = vld [vmem:[%s2940_s1 + $0x748] sm:$0xff]  ;;  %v238_v62 = vld [vmem:[%s2940_s1 + $0x6d0] sm:$0xff]  ;;  %v1734_v2 = vpack.c.bf16 %v221_v58, %v220_v45 }
  0x70   :  { %1761 = vmatprep.subr.bf16.mxu1 %v1760_v49  ;;  %v239_v63 = vld [vmem:[%s2940_s1 + $0x6d8] sm:$0xff]  ;;  %v270_v0 = vld [vmem:[%s2940_s1 + $0x7d0] sm:$0xff]  ;;  %v1766_v3 = vpack.c.bf16 %v253_v61, %v252_v59  ;;  %v240_v10 = vld [vmem:[%s2940_s1 + $0x6e0] sm:$0xff] }
  0x71   :  { %v271_v1 = vld [vmem:[%s2940_s1 + $0x7d8] sm:$0xff]  ;;  %1731 = vmatpush3.bf16.msra.mxu0 %v1730_v55  ;;  %v1736_v4 = vpack.c.bf16 %v239_v63, %v238_v62  ;;  %v222_v5 = vld [vmem:[%s2940_s1 + $0x650] sm:$0xff]  ;;  %v241_v12 = vld [vmem:[%s2940_s1 + $0x6e8] sm:$0xff] }
  0x72   :  { %1733 = vmatprep.subr.bf16.mxu0 %v1732_v57  ;;  %v223_v6 = vld [vmem:[%s2940_s1 + $0x658] sm:$0xff]  ;;  %v254_v7 = vld [vmem:[%s2940_s1 + $0x750] sm:$0xff]  ;;  %v1768_v8 = vpack.c.bf16 %v271_v1, %v270_v0  ;;  %v272_v14 = vld [vmem:[%s2940_s1 + $0x7e0] sm:$0xff]  ;;  %v1740_v19 = vpack.c.bf16 %v241_v12, %v240_v10 }
  0x73   :  { %1763 = vmatpush3.bf16.msra.mxu1 %v1762_v56  ;;  %v255_v9 = vld [vmem:[%s2940_s1 + $0x758] sm:$0xff]  ;;  %v273_v16 = vld [vmem:[%s2940_s1 + $0x7e8] sm:$0xff]  ;;  %v1738_v17 = vpack.c.bf16 %v223_v6, %v222_v5  ;;  %v224_v20 = vld [vmem:[%s2940_s1 + $0x660] sm:$0xff] }
  0x74   :  { %1765 = vmatprep.subr.bf16.mxu1 %v1764_v60  ;;  %v1770_v18 = vpack.c.bf16 %v255_v9, %v254_v7  ;;  %v225_v21 = vld [vmem:[%s2940_s1 + $0x668] sm:$0xff]  ;;  %v256_v22 = vld [vmem:[%s2940_s1 + $0x760] sm:$0xff]  ;;  %v1772_v23 = vpack.c.bf16 %v273_v16, %v272_v14  ;;  %v242_v25 = vld [vmem:[%s2940_s1 + $0x6f0] sm:$0xff] }
  0x75   :  { %1735 = vmatpush3.bf16.msra.mxu0 %v1734_v2  ;;  %v257_v24 = vld [vmem:[%s2940_s1 + $0x768] sm:$0xff]  ;;  %v243_v26 = vld [vmem:[%s2940_s1 + $0x6f8] sm:$0xff]  ;;  %v274_v27 = vld [vmem:[%s2940_s1 + $0x7f0] sm:$0xff]  ;;  %v1742_v29 = vpack.c.bf16 %v225_v21, %v224_v20 }
  0x76   :  { %1737 = vmatprep.subr.bf16.mxu0 %v1736_v4  ;;  %v275_v28 = vld [vmem:[%s2940_s1 + $0x7f8] sm:$0xff]  ;;  %v19_v30 = vld [vmem:[%s2939_s0 + $0x20] sm:$0xff]  ;;  %v1774_v31 = vpack.c.bf16 %v257_v24, %v256_v22  ;;  %v1744_v32 = vpack.c.bf16 %v243_v26, %v242_v25  ;;  %v226_v42 = vld [vmem:[%s2940_s1 + $0x670] sm:$0xff] }
  0x77   :  { %1767 = vmatpush3.bf16.msra.mxu1 %v1766_v3  ;;  %v227_v34 = vld [vmem:[%s2940_s1 + $0x678] sm:$0xff]  ;;  %v258_v35 = vld [vmem:[%s2940_s1 + $0x770] sm:$0xff]  ;;  %v1776_v36 = vpack.c.bf16 %v275_v28, %v274_v27  ;;  %v292_v37 = vld [vmem:[%s2940_s1 + $0x880] sm:$0xff]  ;;  %v420_v41 = vcombine.high %v19_v30, %v19_v30  ;;  %v2749_v54 = vrot.slane %v19_v30, %v2047_v13 }
  0x78   :  { %1769 = vmatprep.subr.bf16.mxu1 %v1768_v8  ;;  %v259_v52 = vld [vmem:[%s2940_s1 + $0x778] sm:$0xff]  ;;  %v293_v38 = vld [vmem:[%s2940_s1 + $0x888] sm:$0xff]  ;;  %v324_v39 = vld [vmem:[%s2940_s1 + $0x980] sm:$0xff]  ;;  %v1746_v43 = vpack.c.bf16 %v227_v34, %v226_v42 }
  0x79   :  { %1739 = vmatpush3.bf16.msra.mxu0 %v1738_v17  ;;  %v325_v40 = vld [vmem:[%s2940_s1 + $0x988] sm:$0xff]  ;;  %v1778_v44 = vpack.c.bf16 %v259_v52, %v258_v35  ;;  %v1780_v46 = vpack.c.bf16 %v293_v38, %v292_v37  ;;  %v276_v47 = vld [vmem:[%s2940_s1 + $0x800] sm:$0xff]  ;;  %v294_v53 = vld [vmem:[%s2940_s1 + $0x890] sm:$0xff]  ;;  %v2758_v57 = vrot.slane %v420_v41, %v2047_v13  ;;  %v435_v2 = vcombine.high %v2749_v54, %v2749_v54 }
  0x7a   :  { %1741 = vmatprep.subr.bf16.mxu0 %v1740_v19  ;;  %v277_v48 = vld [vmem:[%s2940_s1 + $0x808] sm:$0xff]  ;;  %v308_v49 = vld [vmem:[%s2940_s1 + $0x900] sm:$0xff]  ;;  %v1812_v50 = vpack.c.bf16 %v325_v40, %v324_v39  ;;  %v295_v33 = vld [vmem:[%s2940_s1 + $0x898] sm:$0xff] }
  0x7b   :  { %1771 = vmatpush3.bf16.msra.mxu1 %v1770_v18  ;;  %v309_v51 = vld [vmem:[%s2940_s1 + $0x908] sm:$0xff]  ;;  %v326_v55 = vld [vmem:[%s2940_s1 + $0x990] sm:$0xff]  ;;  %v327_v56 = vld [vmem:[%s2940_s1 + $0x998] sm:$0xff]  ;;  %v1782_v45 = vpack.c.bf16 %v277_v48, %v276_v47  ;;  %v1784_v59 = vpack.c.bf16 %v295_v33, %v294_v53  ;;  %v436_v5 = vcombine.high %v2758_v57, %v2758_v57 }
  0x7c   :  { %1773 = vmatprep.subr.bf16.mxu1 %v1772_v23  ;;  %v1814_v58 = vpack.c.bf16 %v309_v51, %v308_v49  ;;  %v278_v60 = vld [vmem:[%s2940_s1 + $0x810] sm:$0xff]  ;;  %v279_v61 = vld [vmem:[%s2940_s1 + $0x818] sm:$0xff]  ;;  %v1816_v13 = vpack.c.bf16 %v327_v56, %v326_v55  ;;  %v296_v0 = vld [vmem:[%s2940_s1 + $0x8a0] sm:$0xff] }
  0x7d   :  { %1743 = vmatpush3.bf16.msra.mxu0 %v1742_v29  ;;  %v310_v62 = vld [vmem:[%s2940_s1 + $0x910] sm:$0xff]  ;;  %v311_v63 = vld [vmem:[%s2940_s1 + $0x918] sm:$0xff]  ;;  %v297_v1 = vld [vmem:[%s2940_s1 + $0x8a8] sm:$0xff]  ;;  %v1786_v6 = vpack.c.bf16 %v279_v61, %v278_v60 }
  0x7e   :  { %1745 = vmatprep.subr.bf16.mxu0 %v1744_v32  ;;  %v328_v3 = vld [vmem:[%s2940_s1 + $0x9a0] sm:$0xff]  ;;  %v329_v4 = vld [vmem:[%s2940_s1 + $0x9a8] sm:$0xff]  ;;  %v1818_v7 = vpack.c.bf16 %v311_v63, %v310_v62  ;;  %v1788_v8 = vpack.c.bf16 %v297_v1, %v296_v0  ;;  %v298_v14 = vld [vmem:[%s2940_s1 + $0x8b0] sm:$0xff] }
  0x7f   :  { %1775 = vmatpush3.bf16.msra.mxu1 %v1774_v31  ;;  %v281_v9 = vld [vmem:[%s2940_s1 + $0x828] sm:$0xff]  ;;  %v312_v10 = vld [vmem:[%s2940_s1 + $0x920] sm:$0xff]  ;;  %v1820_v12 = vpack.c.bf16 %v329_v4, %v328_v3  ;;  %v299_v16 = vld [vmem:[%s2940_s1 + $0x8b8] sm:$0xff] }
  0x80   :  { %1777 = vmatprep.subr.bf16.mxu1 %v1776_v36  ;;  %v330_v17 = vld [vmem:[%s2940_s1 + $0x9b0] sm:$0xff]  ;;  %v331_v18 = vld [vmem:[%s2940_s1 + $0x9b8] sm:$0xff]  ;;  %v1792_v21 = vpack.c.bf16 %v299_v16, %v298_v14  ;;  %v300_v27 = vld [vmem:[%s2940_s1 + $0x8c0] sm:$0xff] }
  0x81   :  { %1747 = vmatpush3.bf16.msra.mxu0 %v1746_v43  ;;  %v282_v22 = vld [vmem:[%s2940_s1 + $0x830] sm:$0xff]  ;;  %v283_v23 = vld [vmem:[%s2940_s1 + $0x838] sm:$0xff]  ;;  %v1824_v25 = vpack.c.bf16 %v331_v18, %v330_v17  ;;  %v301_v28 = vld [vmem:[%s2940_s1 + $0x8c8] sm:$0xff] }
  0x82   :  { %1781 = vmatprep.subr.bf16.mxu0 %v1780_v46  ;;  %v314_v24 = vld [vmem:[%s2940_s1 + $0x930] sm:$0xff]  ;;  %v315_v26 = vld [vmem:[%s2940_s1 + $0x938] sm:$0xff]  ;;  %v332_v29 = vld [vmem:[%s2940_s1 + $0x9c0] sm:$0xff]  ;;  %v1794_v31 = vpack.c.bf16 %v283_v23, %v282_v22  ;;  %v1796_v42 = vpack.c.bf16 %v301_v28, %v300_v27 }
  0x83   :  { %1779 = vmatpush3.bf16.msra.mxu1 %v1778_v44  ;;  %v333_v30 = vld [vmem:[%s2940_s1 + $0x9c8] sm:$0xff]  ;;  %v1826_v32 = vpack.c.bf16 %v315_v26, %v314_v24  ;;  %v284_v34 = vld [vmem:[%s2940_s1 + $0x840] sm:$0xff]  ;;  %v302_v38 = vld [vmem:[%s2940_s1 + $0x8d0] sm:$0xff] }
  0x84   :  { %1813 = vmatprep.subr.bf16.mxu1 %v1812_v50  ;;  %942 = vmatmul.mubr.f32.vlgmr.msra.gmra.mrb[6].mxu0 %v2542_v11  ;;  %v280_v11 = vld [vmem:[%s2940_s1 + $0x820] sm:$0xff]  ;;  %v285_v35 = vld [vmem:[%s2940_s1 + $0x848] sm:$0xff]  ;;  %v1828_v52 = vpack.c.bf16 %v333_v30, %v332_v29  ;;  %v303_v39 = vld [vmem:[%s2940_s1 + $0x8d8] sm:$0xff] }
  0x85   :  { %1783 = vmatpush3.bf16.msra.mxu0 %v1782_v45  ;;  %1081 = vmatprep.mubr.f32.mxu0 %v435_v2  ;;  %v1790_v19 = vpack.c.bf16 %v281_v9, %v280_v11  ;;  %v316_v36 = vld [vmem:[%s2940_s1 + $0x940] sm:$0xff]  ;;  %v317_v37 = vld [vmem:[%s2940_s1 + $0x948] sm:$0xff]  ;;  %v334_v40 = vld [vmem:[%s2940_s1 + $0x9d0] sm:$0xff]  ;;  %v1798_v43 = vpack.c.bf16 %v285_v35, %v284_v34  ;;  %v1800_v46 = vpack.c.bf16 %v303_v39, %v302_v38 }
  0x86   :  { %1012 = vmatmul.mubr.f32.vlgmr.msra.gmra.mrb[6].mxu1 %v2551_v15  ;;  %1785 = vmatprep.subr.bf16.mxu0 %v1784_v59  ;;  %v313_v15 = vld [vmem:[%s2940_s1 + $0x928] sm:$0xff]  ;;  %v335_v41 = vld [vmem:[%s2940_s1 + $0x9d8] sm:$0xff]  ;;  %v1830_v44 = vpack.c.bf16 %v317_v37, %v316_v36  ;;  %v286_v47 = vld [vmem:[%s2940_s1 + $0x850] sm:$0xff] }
  0x87   :  { %1815 = vmatpush3.bf16.msra.mxu1 %v1814_v58  ;;  %1151 = vmatprep.mubr.f32.mxu1 %v436_v5  ;;  %v1822_v20 = vpack.c.bf16 %v313_v15, %v312_v10  ;;  %v287_v48 = vld [vmem:[%s2940_s1 + $0x858] sm:$0xff]  ;;  %v318_v49 = vld [vmem:[%s2940_s1 + $0x950] sm:$0xff]  ;;  %v1832_v50 = vpack.c.bf16 %v335_v41, %v334_v40  ;;  %v304_v53 = vld [vmem:[%s2940_s1 + $0x8e0] sm:$0xff] }
  0x88   :  { %1817 = vmatprep.subr.bf16.mxu1 %v1816_v13  ;;  %v319_v51 = vld [vmem:[%s2940_s1 + $0x958] sm:$0xff]  ;;  %v305_v33 = vld [vmem:[%s2940_s1 + $0x8e8] sm:$0xff]  ;;  %v336_v55 = vld [vmem:[%s2940_s1 + $0x9e0] sm:$0xff]  ;;  %v1802_v45 = vpack.c.bf16 %v287_v48, %v286_v47 }
  0x89   :  { %1787 = vmatpush3.bf16.msra.mxu0 %v1786_v6  ;;  %v337_v56 = vld [vmem:[%s2940_s1 + $0x9e8] sm:$0xff]  ;;  %v1834_v58 = vpack.c.bf16 %v319_v51, %v318_v49  ;;  %v1804_v59 = vpack.c.bf16 %v305_v33, %v304_v53  ;;  %v288_v60 = vld [vmem:[%s2940_s1 + $0x860] sm:$0xff]  ;;  %v306_v0 = vld [vmem:[%s2940_s1 + $0x8f0] sm:$0xff] }
  0x8a   :  { %1789 = vmatprep.subr.bf16.mxu0 %v1788_v8  ;;  %v289_v61 = vld [vmem:[%s2940_s1 + $0x868] sm:$0xff]  ;;  %v320_v62 = vld [vmem:[%s2940_s1 + $0x960] sm:$0xff]  ;;  %v1836_v13 = vpack.c.bf16 %v337_v56, %v336_v55  ;;  %v307_v1 = vld [vmem:[%s2940_s1 + $0x8f8] sm:$0xff] }
  0x8b   :  { %1819 = vmatpush3.bf16.msra.mxu1 %v1818_v7  ;;  %v321_v63 = vld [vmem:[%s2940_s1 + $0x968] sm:$0xff]  ;;  %v338_v2 = vld [vmem:[%s2940_s1 + $0x9f0] sm:$0xff]  ;;  %v339_v3 = vld [vmem:[%s2940_s1 + $0x9f8] sm:$0xff]  ;;  %v1806_v4 = vpack.c.bf16 %v289_v61, %v288_v60  ;;  %v1808_v6 = vpack.c.bf16 %v307_v1, %v306_v0 }
  0x8c   :  { %1821 = vmatprep.subr.bf16.mxu1 %v1820_v12  ;;  %v1838_v5 = vpack.c.bf16 %v321_v63, %v320_v62  ;;  %v290_v7 = vld [vmem:[%s2940_s1 + $0x870] sm:$0xff]  ;;  %v291_v8 = vld [vmem:[%s2940_s1 + $0x878] sm:$0xff]  ;;  %v1840_v11 = vpack.c.bf16 %v339_v3, %v338_v2  ;;  %v1173_v16 = vld [vmem:[%s2941_s2] ss:$0 sm:$0xff] }
  0x8d   :  { %1791 = vmatpush3.bf16.msra.mxu0 %v1790_v19  ;;  %v322_v9 = vld [vmem:[%s2940_s1 + $0x970] sm:$0xff]  ;;  %v323_v10 = vld [vmem:[%s2940_s1 + $0x978] sm:$0xff]  ;;  %v1810_v12 = vpack.c.bf16 %v291_v8, %v290_v7  ;;  %s1876_s1 = smov [#allocation2]  }
  0x8e   :  { %1793 = vmatprep.subr.bf16.mxu0 %v1792_v21  ;;  %v1842_v15 = vpack.c.bf16 %v323_v10, %v322_v9  ;;  %s1165_s2 = sshll.u32 %s1876_s1, 4  ;;  %s1166_s2 = int_to_ptr.vmem [resolvable:$true] %s1165_s2 }
  0x8f   :  { %1823 = vmatpush3.bf16.msra.mxu1 %v1822_v20  ;;  %s1851_s11 = scalar_lea.vmem %s1166_s2, 32  ;;  %p1856_p1 = scmp.lt.s32.totalorder %s1166_s2, %s1166_s2 }
  0x90   :  { %1825 = vmatprep.subr.bf16.mxu1 %v1824_v25  ;;  %p1852_p0 = scmp.ne.s32.totalorder %s1166_s2, %s1851_s11  ;;  %p1857_p2 = scmp.lt.s32.totalorder %s1851_s11, %s1851_s11 }
  0x91   :  { %1795 = vmatpush3.bf16.msra.mxu0 %v1794_v31 }
  0x92   :  { %1797 = vmatprep.subr.bf16.mxu0 %v1796_v42  ;;  %p1858_p3 = por %p1857_p2, %p1856_p1 }
  0x93   :  { %1827 = vmatpush3.bf16.msra.mxu1 %v1826_v32 }
  0x94   :  { %1829 = vmatprep.subr.bf16.mxu1 %v1828_v52  ;;  %p1859_p4 = pnand %p1858_p3, %p1852_p0 }
  0x95   :  { %1799 = vmatpush3.bf16.msra.mxu0 %v1798_v43 }
  0x96   :  { %1801 = vmatprep.subr.bf16.mxu0 %v1800_v46 }
  0x97   :  { %1831 = vmatpush3.bf16.msra.mxu1 %v1830_v44 }
  0x98   :  { %1833 = vmatprep.subr.bf16.mxu1 %v1832_v50 }
  0x99   :  { %1803 = vmatpush3.bf16.msra.mxu0 %v1802_v45 }
  0x9a   :  { %1805 = vmatprep.subr.bf16.mxu0 %v1804_v59 }
  0x9b   :  { %1835 = vmatpush3.bf16.msra.mxu1 %v1834_v58 }
  0x9c   :  { %1837 = vmatprep.subr.bf16.mxu1 %v1836_v13 }
  0x9d   :  { %1807 = vmatpush3.bf16.msra.mxu0 %v1806_v4 }
  0x9e   :  { %1809 = vmatprep.subr.bf16.mxu0 %v1808_v6 }
  0x9f   :  { %1839 = vmatpush3.bf16.msra.mxu1 %v1838_v5 }
  0xa0   :  { %1841 = vmatprep.subr.bf16.mxu1 %v1840_v11 }
  0xa1   :  { %1811 = vmatpush3.bf16.msra.mxu0 %v1810_v12 }
  0xa3   :  { %1843 = vmatpush3.bf16.msra.mxu1 %v1842_v15 }
  0xa4   :  { %1082 = vmatmul.mubr.f32.vlgmr.msra.gmra.mrb[8].mxu0 %v2749_v54 }
  0xa6   :  { %1152 = vmatmul.mubr.f32.vlgmr.msra.gmra.mrb[8].mxu1 %v2758_v57 }
  0xf7   :  { %v1206_v14 = vpop.f32.mrb[0].mxu0 }
  0xf8   :  { %v1207_v17 = vpop.f32.mrb[1].mxu0 }
  0xf9   :  { %v1241_v18 = vpop.f32.mrb[0].mxu1  ;;  %v1208_v19 = vadd.f32 %v1207_v17, %v1206_v14 }
  0xfa   :  { %v1242_v20 = vpop.f32.mrb[1].mxu1 }
  0xfb   :  { %v1243_v21 = vadd.f32 %v1242_v20, %v1241_v18  ;;  %v524_v22 = vadd.f32 %v1208_v19, %v1173_v16 }
  0xfd   :  { %v594_v23 = vadd.f32 %v1243_v21, %v524_v22 }
 0x117   :  { %v1276_v24 = vpop.f32.mrb[2].mxu0 }
 0x118   :  { %v1277_v25 = vpop.f32.mrb[3].mxu0 }
 0x119   :  { %v1311_v26 = vpop.f32.mrb[2].mxu1  ;;  %v1278_v27 = vadd.f32 %v1277_v25, %v1276_v24 }
 0x11a   :  { %v1312_v28 = vpop.f32.mrb[3].mxu1 }
 0x11b   :  { %v1313_v54 = vadd.f32 %v1312_v28, %v1311_v26  ;;  %v664_v29 = vadd.f32 %v1278_v27, %v594_v23 }
 0x11d   :  { %v734_v57 = vadd.f32 %v1313_v54, %v664_v29 }
 0x137   :  { %v1346_v30 = vpop.f32.mrb[4].mxu0 }
 0x138   :  { %v1347_v31 = vpop.f32.mrb[5].mxu0 }
 0x139   :  { %v1381_v32 = vpop.f32.mrb[4].mxu1  ;;  %v1348_v42 = vadd.f32 %v1347_v31, %v1346_v30 }
 0x13a   :  { %v1382_v34 = vpop.f32.mrb[5].mxu1 }
 0x13b   :  { %v1383_v35 = vadd.f32 %v1382_v34, %v1381_v32  ;;  %v804_v36 = vadd.f32 %v1348_v42, %v734_v57 }
 0x13d   :  { %v874_v52 = vadd.f32 %v1383_v35, %v804_v36 }
 0x157   :  { %v1416_v37 = vpop.f32.mrb[6].mxu0 }
 0x158   :  { %v1417_v38 = vpop.f32.mrb[7].mxu0 }
 0x159   :  { %v1451_v39 = vpop.f32.mrb[6].mxu1  ;;  %v1418_v40 = vadd.f32 %v1417_v38, %v1416_v37 }
 0x15a   :  { %v1452_v41 = vpop.f32.mrb[7].mxu1 }
 0x15b   :  { %v1453_v43 = vadd.f32 %v1452_v41, %v1451_v39  ;;  %v944_v44 = vadd.f32 %v1418_v40, %v874_v52 }
 0x15d   :  { %v1014_v46 = vadd.f32 %v1453_v43, %v944_v44 }
 0x177   :  { %v1486_v47 = vpop.f32.mrb[8].mxu0 }
 0x178   :  { %v1487_v48 = vpop.f32.mrb[9].mxu0 }
 0x179   :  { %v1521_v49 = vpop.f32.mrb[8].mxu1  ;;  %v1488_v50 = vadd.f32 %v1487_v48, %v1486_v47 }
 0x17a   :  { %v1522_v51 = vpop.f32.mrb[9].mxu1 }
 0x17b   :  { %v1523_v53 = vadd.f32 %v1522_v51, %v1521_v49  ;;  %v1084_v33 = vadd.f32 %v1488_v50, %v1014_v46 }
 0x17d   :  { %v1154_v55 = vadd.f32 %v1523_v53, %v1084_v33 }
 0x17f   :  { %1158 = vst.msk [vmem:[#allocation2] sm:$0x3] %vm1157_vm0, %v1154_v55 }
 0x180   :  { %1862 = shalt.err (!%p1859_p4)
}
 0x181   :  { %s1863_s14 = scalar_lea.hbm %s2942_s3, 32 }
 0x182   :  { %p1864_p5 = scmp.ne.s32.totalorder %s2942_s3, %s1863_s14  ;;  %p1867_p6 = scmp.lt.u32.totalorder %s1863_s14, %s2942_s3 }
 0x184   :  { %p1869_p7 = pnand %p1867_p6, %p1864_p5 }
 0x186   :  { %1872 = shalt.err (!%p1869_p7)
}
 0x187   :  { %1168 = dma.vmem_to_hbm [thread:$0]  %s1166_s2, 32, %s2942_s3, [#allocation3]  }
 0x188   :  { %1873 = dma.done.wait [#allocation3], 32  }
 0x189   :  { %1874 = vsyncadd [#allocation3], 4294967264 }
 0x18a   :  { %1172 = vsyncpa [#allocation3], 1 }

</bundles_post_ra>
